<compile_context>
chip_gen: v7x
topology: tpu7x:2x2x1
jax: 0.10.0
libtpu: 0.0.40
codegen_flags: <defaults>
</compile_context>

<pallas_src>
import functools

import jax
import jax.numpy as jnp
from jax.experimental import pallas as pl
from jax.experimental.pallas import tpu as pltpu


def _vmem_spec():
    return pl.BlockSpec(memory_space=pltpu.MemorySpace.VMEM)


def _gru_gates(gxb, ghb, h, hd):
    """PyTorch GRU gate math given pre-biased projections.

    gxb = x_t @ W_ih + b_ih   (B_pad, 3*hd), gates stacked column-wise [r|z|n]
    ghb = h   @ W_hh + b_hh   (B_pad, 3*hd)
    One sigmoid over the contiguous [r|z] block; b_hn stays inside r*(...).
    """
    rz = jax.nn.sigmoid(gxb[:, :2 * hd] + ghb[:, :2 * hd])
    r = rz[:, :hd]
    z = rz[:, hd:]
    n = jnp.tanh(gxb[:, 2 * hd:] + r * ghb[:, 2 * hd:])
    return (1.0 - z) * n + z * h


def _attention_thingy_kernel(B, B_pad, T, H, O,
                             xin_ref,                                   # (B*T, I)
                             wp0_ref, bp0_ref, wp1_ref, bp1_ref,        # prenet
                             wih0_ref, whh0_ref, bih0_ref, bhh0_ref,    # attnrnn
                             wih1_ref, whh1_ref, bih1_ref, bhh1_ref,    # decrnn0
                             wih2_ref, whh2_ref, bih2_ref, bhh2_ref,    # decrnn1
                             h0_in_ref, h1_in_ref, h2_in_ref,           # (1,B,*)
                             out_ref, h0_ref, h1_ref, h2_ref,           # outputs
                             xt_ref, seq2_ref):                         # scratch
    f32 = jnp.float32
    I = xin_ref.shape[1]

    # ---- 1. Batch-major -> time-major repack, padded to B_pad sublane rows.
    # One-time, in-VMEM; the wrapper does only free reshapes.
    if B_pad != B:
        xt_ref[...] = jnp.zeros((T * B_pad, I), f32)
    for t in range(T):
        # rows {b*T + t} of the batch-major input -> aligned slab t
        xt_ref[t * B_pad:t * B_pad + B, :] = xin_ref[pl.ds(t, B, stride=T), :]

    # ---- 2. Prenet (Linear+ReLU x2; dropout == identity) + hoisted attnrnn
    #         input projection: three big row-order-agnostic MXU matmuls.
    xt = xt_ref[...]
    p = jnp.maximum(
        jnp.dot(xt, wp0_ref[...], preferred_element_type=f32) + bp0_ref[...], 0.0)
    p = jnp.maximum(
        jnp.dot(p, wp1_ref[...], preferred_element_type=f32) + bp1_ref[...], 0.0)
    gx0 = jnp.dot(p, wih0_ref[...], preferred_element_type=f32) + bih0_ref[...]

    # ---- 3. Hoist weight loads and bias broadcasts out of the recurrence.
    whh0 = whh0_ref[...]
    wih1 = wih1_ref[...]
    whh1 = whh1_ref[...]
    wih2 = wih2_ref[...]
    whh2 = whh2_ref[...]
    bhh0 = jnp.broadcast_to(bhh0_ref[...], (B_pad, 3 * H))
    bih1 = jnp.broadcast_to(bih1_ref[...], (B_pad, 3 * H))
    bhh1 = jnp.broadcast_to(bhh1_ref[...], (B_pad, 3 * H))
    bih2 = jnp.broadcast_to(bih2_ref[...], (B_pad, 3 * O))
    bhh2 = jnp.broadcast_to(bhh2_ref[...], (B_pad, 3 * O))

    # ---- 4. Initial hidden states, padded to B_pad rows (pad rows = zeros;
    #         rows never mix, so padding cannot contaminate real rows).
    def pad_rows(v):
        if B_pad == B:
            return v
        return jnp.concatenate(
            [v, jnp.zeros((B_pad - B, v.shape[1]), f32)], axis=0)

    h0 = pad_rows(h0_in_ref[0])
    h1 = pad_rows(h1_in_ref[0])
    h2 = pad_rows(h2_in_ref[0])

    # ---- 5. Wavefront over the three GRU layers -----------------------------
    # Step s: attnrnn@t=s, decrnn0@t=s-1, decrnn1@t=s-2 — mutually independent,
    # so the per-step matmuls / sigmoids / tanhs overlap.  T is small & static,
    # so the loop is fully unrolled; liveness is bounded by the 2-step delay
    # line (h0_seq keeps 2 entries live, h1_seq keeps 1).
    h0_seq = [None] * T
    h1_seq = [None] * T
    for s in range(T + 2):
        if s < T:                                        # attnrnn, step s
            ghb = jnp.dot(h0, whh0, preferred_element_type=f32) + bhh0
            h0 = _gru_gates(gx0[s * B_pad:(s + 1) * B_pad, :], ghb, h0, H)
            h0_seq[s] = h0
        if 1 <= s <= T:                                  # decrnn0, step s-1
            t1 = s - 1
            gxb = jnp.dot(h0_seq[t1], wih1, preferred_element_type=f32) + bih1
            ghb = jnp.dot(h1, whh1, preferred_element_type=f32) + bhh1
            h1 = _gru_gates(gxb, ghb, h1, H)
            h1_seq[t1] = h1
        if s >= 2:                                       # decrnn1, step s-2
            t2 = s - 2
            x2 = h0_seq[t2] + h1_seq[t2]                 # residual out0 + out
            gxb = jnp.dot(x2, wih2, preferred_element_type=f32) + bih2
            ghb = jnp.dot(h2, whh2, preferred_element_type=f32) + bhh2
            h2 = _gru_gates(gxb, ghb, h2, O)
            seq2_ref[t2 * B_pad:(t2 + 1) * B_pad, :] = h2   # aligned 8-row slab

    # ---- 6. Final hidden states (real rows only; refs alias the inputs). ----
    h0_ref[0] = h0[:B, :]
    h1_ref[0] = h1[:B, :]
    h2_ref[0] = h2[:B, :]

    # ---- 7. Time-major -> batch-major output, in-VMEM (strided gather per b).
    for b in range(B):
        out_ref[b * T:(b + 1) * T, :] = seq2_ref[pl.ds(b, T, stride=B_pad), :]


def attention_thingy_forward(x, params, h0=None, h1=None, h2=None):
    """x: (B, T, in_size) batch_first. Returns (out, h0, h1, h2) like PyTorch."""
    B, T, I = x.shape
    H = params['attnrnn']['whh'].shape[0]
    O = params['decrnn1']['whh'].shape[0]
    B_pad = ((B + 7) // 8) * 8                   # one sublane tile minimum

    if h0 is None:
        h0 = jnp.zeros((1, B, H), jnp.float32)
    if h1 is None:
        h1 = jnp.zeros((1, B, H), jnp.float32)
    if h2 is None:
        h2 = jnp.zeros((1, B, O), jnp.float32)

    x2 = x.reshape(B * T, I)                     # free reshape, stays batch-major

    args = [x2,
            params['prenet0']['w'], params['prenet0']['b'],
            params['prenet1']['w'], params['prenet1']['b']]
    for name in ('attnrnn', 'decrnn0', 'decrnn1'):
        g = params[name]
        args += [g['wih'], g['whh'], g['bih'], g['bhh']]
    args += [h0, h1, h2]
    n_in = len(args)

    # Advisory cost estimate for XLA scheduling around the tiny custom call.
    rows = B_pad * T
    flops = 2 * rows * (I * I + I * H + H * 3 * H        # prenet + gx0 hoist
                        + H * 3 * H                       # attnrnn hidden proj
                        + 2 * H * 3 * H                   # decrnn0 in + hidden
                        + H * 3 * O + O * 3 * O)          # decrnn1 in + hidden
    transcendentals = rows * (3 * H + 3 * H + 3 * O)
    bytes_accessed = 4 * (sum(int(a.size) for a in args)
                          + B * T * O + 2 * B * H + B * O)

    kern = functools.partial(_attention_thingy_kernel, B, B_pad, T, H, O)
    out_flat, hn0, hn1, hn2 = pl.pallas_call(
        kern,
        out_shape=(jax.ShapeDtypeStruct((B * T, O), jnp.float32),
                   jax.ShapeDtypeStruct((1, B, H), jnp.float32),
                   jax.ShapeDtypeStruct((1, B, H), jnp.float32),
                   jax.ShapeDtypeStruct((1, B, O), jnp.float32)),
        in_specs=[_vmem_spec() for _ in range(n_in)],
        out_specs=(_vmem_spec(), _vmem_spec(), _vmem_spec(), _vmem_spec()),
        scratch_shapes=[pltpu.VMEM((T * B_pad, I), jnp.float32),   # time-major x
                        pltpu.VMEM((T * B_pad, O), jnp.float32)],  # decrnn1 seq
        input_output_aliases={n_in - 3: 1, n_in - 2: 2, n_in - 1: 3},
        compiler_params=pltpu.CompilerParams(vmem_limit_bytes=32 * 1024 * 1024),
        cost_estimate=pl.CostEstimate(flops=flops,
                                      transcendentals=transcendentals,
                                      bytes_accessed=bytes_accessed),
    )(*args)

    out = out_flat.reshape(B, T, O)              # free reshape (batch-major)
    return out, hn0, hn1, hn2


# ----------------------------------------------------------------------------
# Deterministic synthetic parameters (shapes match the nn.Module).
# GRU weights are stored pre-transposed, gates stacked column-wise as [r|z|n].
# NOTE: real PyTorch weight_ih/weight_hh are (3H, in)/(3H, H) row-stacked and
# would need transposition + column-stacking to this layout.
# ----------------------------------------------------------------------------
def init_params(key, in_size, hidden_size, out_size):
    holder = [key]

    def nxt():
        holder[0], sub = jax.random.split(holder[0])
        return sub

    def lin(ci, co):
        return dict(w=0.1 * jax.random.normal(nxt(), (ci, co), jnp.float32),
                    b=0.1 * jax.random.normal(nxt(), (1, co), jnp.float32))

    def gru(ci, hd):
        return dict(wih=0.1 * jax.random.normal(nxt(), (ci, 3 * hd), jnp.float32),
                    whh=0.1 * jax.random.normal(nxt(), (hd, 3 * hd), jnp.float32),
                    bih=0.1 * jax.random.normal(nxt(), (1, 3 * hd), jnp.float32),
                    bhh=0.1 * jax.random.normal(nxt(), (1, 3 * hd), jnp.float32))

    return dict(prenet0=lin(in_size, in_size),
                prenet1=lin(in_size, hidden_size),
                attnrnn=gru(hidden_size, hidden_size),
                decrnn0=gru(hidden_size, hidden_size),
                decrnn1=gru(hidden_size, out_size))


if __name__ == "__main__":
    B, T = 2, 8
    IN_SIZE, HIDDEN_SIZE, OUT_SIZE = 16, 32, 32

    key = jax.random.PRNGKey(0)
    key, xk = jax.random.split(key)
    x = jax.random.normal(xk, (B, T, IN_SIZE), jnp.float32)
    params = init_params(key, IN_SIZE, HIDDEN_SIZE, OUT_SIZE)

    out, h0, h1, h2 = jax.jit(attention_thingy_forward)(x, params)
    out, h0, h1, h2 = jax.block_until_ready((out, h0, h1, h2))

    assert out.shape == (B, T, OUT_SIZE), out.shape
    assert h0.shape == (1, B, HIDDEN_SIZE), h0.shape
    assert h1.shape == (1, B, HIDDEN_SIZE), h1.shape
    assert h2.shape == (1, B, OUT_SIZE), h2.shape
    for a in (out, h0, h1, h2):
        assert bool(jnp.all(jnp.isfinite(a)))
    print("KERNEL_OK")
</pallas_src>

<mosaic_0001>
module attributes {stable_mosaic.version = 11 : i64} {
  func.func @_attention_thingy_kernel(%arg0: memref<16x16xf32, #tpu.memory_space<vmem>>, %arg1: memref<16x16xf32, #tpu.memory_space<vmem>>, %arg2: memref<1x16xf32, #tpu.memory_space<vmem>>, %arg3: memref<16x32xf32, #tpu.memory_space<vmem>>, %arg4: memref<1x32xf32, #tpu.memory_space<vmem>>, %arg5: memref<32x96xf32, #tpu.memory_space<vmem>>, %arg6: memref<32x96xf32, #tpu.memory_space<vmem>>, %arg7: memref<1x96xf32, #tpu.memory_space<vmem>>, %arg8: memref<1x96xf32, #tpu.memory_space<vmem>>, %arg9: memref<32x96xf32, #tpu.memory_space<vmem>>, %arg10: memref<32x96xf32, #tpu.memory_space<vmem>>, %arg11: memref<1x96xf32, #tpu.memory_space<vmem>>, %arg12: memref<1x96xf32, #tpu.memory_space<vmem>>, %arg13: memref<32x96xf32, #tpu.memory_space<vmem>>, %arg14: memref<32x96xf32, #tpu.memory_space<vmem>>, %arg15: memref<1x96xf32, #tpu.memory_space<vmem>>, %arg16: memref<1x96xf32, #tpu.memory_space<vmem>>, %arg17: memref<1x2x32xf32, #tpu.memory_space<vmem>>, %arg18: memref<1x2x32xf32, #tpu.memory_space<vmem>>, %arg19: memref<1x2x32xf32, #tpu.memory_space<vmem>>, %arg20: memref<16x32xf32, #tpu.memory_space<vmem>>, %arg21: memref<1x2x32xf32, #tpu.memory_space<vmem>>, %arg22: memref<1x2x32xf32, #tpu.memory_space<vmem>>, %arg23: memref<1x2x32xf32, #tpu.memory_space<vmem>>, %arg24: memref<64x16xf32, #tpu.memory_space<vmem>>, %arg25: memref<64x32xf32, #tpu.memory_space<vmem>>) attributes {dimension_semantics = [], scalar_prefetch = 0 : i64, scratch_operands = 2 : i64, tpu.core_type = #tpu.core_type<tc>} {
    %cst = arith.constant 0.000000e+00 : f32
    %0 = vector.broadcast %cst : f32 to vector<64x16xf32>
    %c0 = arith.constant 0 : index
    %c0_0 = arith.constant 0 : index
    %1 = vector.load %arg24[%c0, %c0_0] : memref<64x16xf32, #tpu.memory_space<vmem>>, vector<64x16xf32>
    tpu.vector_store %arg24[%c0, %c0_0], %0 {strides = array<i32>} : memref<64x16xf32, #tpu.memory_space<vmem>>, vector<64x16xf32>,
    %c0_1 = arith.constant 0 : index
    %c0_2 = arith.constant 0 : index
    %2 = tpu.strided_load %arg0[%c0_1, %c0_2] {strides = array<i32: 8, 1>} : memref<16x16xf32, #tpu.memory_space<vmem>>, vector<2x16xf32>
    %c0_3 = arith.constant 0 : index
    %c0_4 = arith.constant 0 : index
    %3 = vector.load %arg24[%c0_3, %c0_4] : memref<64x16xf32, #tpu.memory_space<vmem>>, vector<2x16xf32>
    tpu.vector_store %arg24[%c0_3, %c0_4], %2 {strides = array<i32>} : memref<64x16xf32, #tpu.memory_space<vmem>>, vector<2x16xf32>,
    %c1 = arith.constant 1 : index
    %c0_5 = arith.constant 0 : index
    %4 = tpu.strided_load %arg0[%c1, %c0_5] {strides = array<i32: 8, 1>} : memref<16x16xf32, #tpu.memory_space<vmem>>, vector<2x16xf32>
    %c8 = arith.constant 8 : index
    %c0_6 = arith.constant 0 : index
    %5 = vector.load %arg24[%c8, %c0_6] : memref<64x16xf32, #tpu.memory_space<vmem>>, vector<2x16xf32>
    tpu.vector_store %arg24[%c8, %c0_6], %4 {strides = array<i32>} : memref<64x16xf32, #tpu.memory_space<vmem>>, vector<2x16xf32>,
    %c2 = arith.constant 2 : index
    %c0_7 = arith.constant 0 : index
    %6 = tpu.strided_load %arg0[%c2, %c0_7] {strides = array<i32: 8, 1>} : memref<16x16xf32, #tpu.memory_space<vmem>>, vector<2x16xf32>
    %c16 = arith.constant 16 : index
    %c0_8 = arith.constant 0 : index
    %7 = vector.load %arg24[%c16, %c0_8] : memref<64x16xf32, #tpu.memory_space<vmem>>, vector<2x16xf32>
    tpu.vector_store %arg24[%c16, %c0_8], %6 {strides = array<i32>} : memref<64x16xf32, #tpu.memory_space<vmem>>, vector<2x16xf32>,
    %c3 = arith.constant 3 : index
    %c0_9 = arith.constant 0 : index
    %8 = tpu.strided_load %arg0[%c3, %c0_9] {strides = array<i32: 8, 1>} : memref<16x16xf32, #tpu.memory_space<vmem>>, vector<2x16xf32>
    %c24 = arith.constant 24 : index
    %c0_10 = arith.constant 0 : index
    %9 = vector.load %arg24[%c24, %c0_10] : memref<64x16xf32, #tpu.memory_space<vmem>>, vector<2x16xf32>
    tpu.vector_store %arg24[%c24, %c0_10], %8 {strides = array<i32>} : memref<64x16xf32, #tpu.memory_space<vmem>>, vector<2x16xf32>,
    %c4 = arith.constant 4 : index
    %c0_11 = arith.constant 0 : index
    %10 = tpu.strided_load %arg0[%c4, %c0_11] {strides = array<i32: 8, 1>} : memref<16x16xf32, #tpu.memory_space<vmem>>, vector<2x16xf32>
    %c32 = arith.constant 32 : index
    %c0_12 = arith.constant 0 : index
    %11 = vector.load %arg24[%c32, %c0_12] : memref<64x16xf32, #tpu.memory_space<vmem>>, vector<2x16xf32>
    tpu.vector_store %arg24[%c32, %c0_12], %10 {strides = array<i32>} : memref<64x16xf32, #tpu.memory_space<vmem>>, vector<2x16xf32>,
    %c5 = arith.constant 5 : index
    %c0_13 = arith.constant 0 : index
    %12 = tpu.strided_load %arg0[%c5, %c0_13] {strides = array<i32: 8, 1>} : memref<16x16xf32, #tpu.memory_space<vmem>>, vector<2x16xf32>
    %c40 = arith.constant 40 : index
    %c0_14 = arith.constant 0 : index
    %13 = vector.load %arg24[%c40, %c0_14] : memref<64x16xf32, #tpu.memory_space<vmem>>, vector<2x16xf32>
    tpu.vector_store %arg24[%c40, %c0_14], %12 {strides = array<i32>} : memref<64x16xf32, #tpu.memory_space<vmem>>, vector<2x16xf32>,
    %c6 = arith.constant 6 : index
    %c0_15 = arith.constant 0 : index
    %14 = tpu.strided_load %arg0[%c6, %c0_15] {strides = array<i32: 8, 1>} : memref<16x16xf32, #tpu.memory_space<vmem>>, vector<2x16xf32>
    %c48 = arith.constant 48 : index
    %c0_16 = arith.constant 0 : index
    %15 = vector.load %arg24[%c48, %c0_16] : memref<64x16xf32, #tpu.memory_space<vmem>>, vector<2x16xf32>
    tpu.vector_store %arg24[%c48, %c0_16], %14 {strides = array<i32>} : memref<64x16xf32, #tpu.memory_space<vmem>>, vector<2x16xf32>,
    %c7 = arith.constant 7 : index
    %c0_17 = arith.constant 0 : index
    %16 = tpu.strided_load %arg0[%c7, %c0_17] {strides = array<i32: 8, 1>} : memref<16x16xf32, #tpu.memory_space<vmem>>, vector<2x16xf32>
    %c56 = arith.constant 56 : index
    %c0_18 = arith.constant 0 : index
    %17 = vector.load %arg24[%c56, %c0_18] : memref<64x16xf32, #tpu.memory_space<vmem>>, vector<2x16xf32>
    tpu.vector_store %arg24[%c56, %c0_18], %16 {strides = array<i32>} : memref<64x16xf32, #tpu.memory_space<vmem>>, vector<2x16xf32>,
    %c0_19 = arith.constant 0 : index
    %c0_20 = arith.constant 0 : index
    %18 = vector.load %arg24[%c0_19, %c0_20] : memref<64x16xf32, #tpu.memory_space<vmem>>, vector<64x16xf32>
    %c0_21 = arith.constant 0 : index
    %c0_22 = arith.constant 0 : index
    %19 = vector.load %arg1[%c0_21, %c0_22] : memref<16x16xf32, #tpu.memory_space<vmem>>, vector<16x16xf32>
    %cst_23 = arith.constant dense<0.000000e+00> : vector<64x16xf32>
    %20 = tpu.matmul %18, %19, %cst_23 {dimension_numbers = #tpu.dot_dimension_numbers<[1], [0], [0], [1], [0, 0, 1, 1], [], []>} : vector<64x16xf32>, vector<16x16xf32>, vector<64x16xf32> -> vector<64x16xf32>
    %c0_24 = arith.constant 0 : index
    %c0_25 = arith.constant 0 : index
    %21 = vector.load %arg2[%c0_24, %c0_25] : memref<1x16xf32, #tpu.memory_space<vmem>>, vector<1x16xf32>
    %22 = vector.broadcast %21 : vector<1x16xf32> to vector<64x16xf32>
    %23 = arith.addf %20, %22 : vector<64x16xf32>
    %cst_26 = arith.constant 0.000000e+00 : f32
    %24 = vector.broadcast %cst_26 : f32 to vector<64x16xf32>
    %25 = arith.maximumf %23, %24 : vector<64x16xf32>
    %c0_27 = arith.constant 0 : index
    %c0_28 = arith.constant 0 : index
    %26 = vector.load %arg3[%c0_27, %c0_28] : memref<16x32xf32, #tpu.memory_space<vmem>>, vector<16x32xf32>
    %cst_29 = arith.constant dense<0.000000e+00> : vector<64x32xf32>
    %27 = tpu.matmul %25, %26, %cst_29 {dimension_numbers = #tpu.dot_dimension_numbers<[1], [0], [0], [1], [0, 0, 1, 1], [], []>} : vector<64x16xf32>, vector<16x32xf32>, vector<64x32xf32> -> vector<64x32xf32>
    %c0_30 = arith.constant 0 : index
    %c0_31 = arith.constant 0 : index
    %28 = vector.load %arg4[%c0_30, %c0_31] : memref<1x32xf32, #tpu.memory_space<vmem>>, vector<1x32xf32>
    %29 = vector.broadcast %28 : vector<1x32xf32> to vector<64x32xf32>
    %30 = arith.addf %27, %29 : vector<64x32xf32>
    %cst_32 = arith.constant 0.000000e+00 : f32
    %31 = vector.broadcast %cst_32 : f32 to vector<64x32xf32>
    %32 = arith.maximumf %30, %31 : vector<64x32xf32>
    %c0_33 = arith.constant 0 : index
    %c0_34 = arith.constant 0 : index
    %33 = vector.load %arg5[%c0_33, %c0_34] : memref<32x96xf32, #tpu.memory_space<vmem>>, vector<32x96xf32>
    %cst_35 = arith.constant dense<0.000000e+00> : vector<64x96xf32>
    %34 = tpu.matmul %32, %33, %cst_35 {dimension_numbers = #tpu.dot_dimension_numbers<[1], [0], [0], [1], [0, 0, 1, 1], [], []>} : vector<64x32xf32>, vector<32x96xf32>, vector<64x96xf32> -> vector<64x96xf32>
    %c0_36 = arith.constant 0 : index
    %c0_37 = arith.constant 0 : index
    %35 = vector.load %arg7[%c0_36, %c0_37] : memref<1x96xf32, #tpu.memory_space<vmem>>, vector<1x96xf32>
    %36 = vector.broadcast %35 : vector<1x96xf32> to vector<64x96xf32>
    %37 = arith.addf %34, %36 : vector<64x96xf32>
    %c0_38 = arith.constant 0 : index
    %c0_39 = arith.constant 0 : index
    %38 = vector.load %arg6[%c0_38, %c0_39] : memref<32x96xf32, #tpu.memory_space<vmem>>, vector<32x96xf32>
    %c0_40 = arith.constant 0 : index
    %c0_41 = arith.constant 0 : index
    %39 = vector.load %arg9[%c0_40, %c0_41] : memref<32x96xf32, #tpu.memory_space<vmem>>, vector<32x96xf32>
    %c0_42 = arith.constant 0 : index
    %c0_43 = arith.constant 0 : index
    %40 = vector.load %arg10[%c0_42, %c0_43] : memref<32x96xf32, #tpu.memory_space<vmem>>, vector<32x96xf32>
    %c0_44 = arith.constant 0 : index
    %c0_45 = arith.constant 0 : index
    %41 = vector.load %arg13[%c0_44, %c0_45] : memref<32x96xf32, #tpu.memory_space<vmem>>, vector<32x96xf32>
    %c0_46 = arith.constant 0 : index
    %c0_47 = arith.constant 0 : index
    %42 = vector.load %arg14[%c0_46, %c0_47] : memref<32x96xf32, #tpu.memory_space<vmem>>, vector<32x96xf32>
    %c0_48 = arith.constant 0 : index
    %c0_49 = arith.constant 0 : index
    %43 = vector.load %arg8[%c0_48, %c0_49] : memref<1x96xf32, #tpu.memory_space<vmem>>, vector<1x96xf32>
    %44 = vector.shape_cast %43 : vector<1x96xf32> to vector<1x96xf32>
    %45 = vector.broadcast %44 : vector<1x96xf32> to vector<8x96xf32>
    %c0_50 = arith.constant 0 : index
    %c0_51 = arith.constant 0 : index
    %46 = vector.load %arg11[%c0_50, %c0_51] : memref<1x96xf32, #tpu.memory_space<vmem>>, vector<1x96xf32>
    %47 = vector.shape_cast %46 : vector<1x96xf32> to vector<1x96xf32>
    %48 = vector.broadcast %47 : vector<1x96xf32> to vector<8x96xf32>
    %c0_52 = arith.constant 0 : index
    %c0_53 = arith.constant 0 : index
    %49 = vector.load %arg12[%c0_52, %c0_53] : memref<1x96xf32, #tpu.memory_space<vmem>>, vector<1x96xf32>
    %50 = vector.shape_cast %49 : vector<1x96xf32> to vector<1x96xf32>
    %51 = vector.broadcast %50 : vector<1x96xf32> to vector<8x96xf32>
    %c0_54 = arith.constant 0 : index
    %c0_55 = arith.constant 0 : index
    %52 = vector.load %arg15[%c0_54, %c0_55] : memref<1x96xf32, #tpu.memory_space<vmem>>, vector<1x96xf32>
    %53 = vector.shape_cast %52 : vector<1x96xf32> to vector<1x96xf32>
    %54 = vector.broadcast %53 : vector<1x96xf32> to vector<8x96xf32>
    %c0_56 = arith.constant 0 : index
    %c0_57 = arith.constant 0 : index
    %55 = vector.load %arg16[%c0_56, %c0_57] : memref<1x96xf32, #tpu.memory_space<vmem>>, vector<1x96xf32>
    %56 = vector.shape_cast %55 : vector<1x96xf32> to vector<1x96xf32>
    %57 = vector.broadcast %56 : vector<1x96xf32> to vector<8x96xf32>
    %c0_58 = arith.constant 0 : index
    %c0_59 = arith.constant 0 : index
    %c0_60 = arith.constant 0 : index
    %58 = vector.load %arg17[%c0_58, %c0_59, %c0_60] : memref<1x2x32xf32, #tpu.memory_space<vmem>>, vector<1x2x32xf32>
    %59 = vector.shape_cast %58 : vector<1x2x32xf32> to vector<2x32xf32>
    %cst_61 = arith.constant 0.000000e+00 : f32
    %60 = vector.broadcast %cst_61 : f32 to vector<6x32xf32>
    %61 = tpu.concatenate %59, %60 in 0 : vector<2x32xf32>, vector<6x32xf32> -> vector<8x32xf32>
    %c0_62 = arith.constant 0 : index
    %c0_63 = arith.constant 0 : index
    %c0_64 = arith.constant 0 : index
    %62 = vector.load %arg18[%c0_62, %c0_63, %c0_64] : memref<1x2x32xf32, #tpu.memory_space<vmem>>, vector<1x2x32xf32>
    %63 = vector.shape_cast %62 : vector<1x2x32xf32> to vector<2x32xf32>
    %cst_65 = arith.constant 0.000000e+00 : f32
    %64 = vector.broadcast %cst_65 : f32 to vector<6x32xf32>
    %65 = tpu.concatenate %63, %64 in 0 : vector<2x32xf32>, vector<6x32xf32> -> vector<8x32xf32>
    %c0_66 = arith.constant 0 : index
    %c0_67 = arith.constant 0 : index
    %c0_68 = arith.constant 0 : index
    %66 = vector.load %arg19[%c0_66, %c0_67, %c0_68] : memref<1x2x32xf32, #tpu.memory_space<vmem>>, vector<1x2x32xf32>
    %67 = vector.shape_cast %66 : vector<1x2x32xf32> to vector<2x32xf32>
    %cst_69 = arith.constant 0.000000e+00 : f32
    %68 = vector.broadcast %cst_69 : f32 to vector<6x32xf32>
    %69 = tpu.concatenate %67, %68 in 0 : vector<2x32xf32>, vector<6x32xf32> -> vector<8x32xf32>
    %cst_70 = arith.constant dense<0.000000e+00> : vector<8x96xf32>
    %70 = tpu.matmul %61, %38, %cst_70 {dimension_numbers = #tpu.dot_dimension_numbers<[1], [0], [0], [1], [0, 0, 1, 1], [], []>} : vector<8x32xf32>, vector<32x96xf32>, vector<8x96xf32> -> vector<8x96xf32>
    %71 = arith.addf %70, %45 : vector<8x96xf32>
    %72 = vector.extract_strided_slice %37 {offsets = [0, 0], sizes = [8, 96], strides = [1, 1]} : vector<64x96xf32> to vector<8x96xf32>
    %73 = vector.extract_strided_slice %72 {offsets = [0, 0], sizes = [8, 64], strides = [1, 1]} : vector<8x96xf32> to vector<8x64xf32>
    %74 = vector.extract_strided_slice %71 {offsets = [0, 0], sizes = [8, 64], strides = [1, 1]} : vector<8x96xf32> to vector<8x64xf32>
    %75 = arith.addf %73, %74 : vector<8x64xf32>
    %76 = arith.negf %75 : vector<8x64xf32>
    %77 = math.exp %76 : vector<8x64xf32>
    %cst_71 = arith.constant 1.000000e+00 : f32
    %78 = vector.broadcast %cst_71 : f32 to vector<8x64xf32>
    %79 = arith.addf %78, %77 : vector<8x64xf32>
    %80 = arith.divf %78, %79 : vector<8x64xf32>
    %81 = vector.extract_strided_slice %80 {offsets = [0, 0], sizes = [8, 32], strides = [1, 1]} : vector<8x64xf32> to vector<8x32xf32>
    %82 = vector.extract_strided_slice %80 {offsets = [0, 32], sizes = [8, 32], strides = [1, 1]} : vector<8x64xf32> to vector<8x32xf32>
    %83 = vector.extract_strided_slice %72 {offsets = [0, 64], sizes = [8, 32], strides = [1, 1]} : vector<8x96xf32> to vector<8x32xf32>
    %84 = vector.extract_strided_slice %71 {offsets = [0, 64], sizes = [8, 32], strides = [1, 1]} : vector<8x96xf32> to vector<8x32xf32>
    %85 = arith.mulf %81, %84 : vector<8x32xf32>
    %86 = arith.addf %83, %85 : vector<8x32xf32>
    %87 = math.tanh %86 : vector<8x32xf32>
    %cst_72 = arith.constant 1.000000e+00 : f32
    %88 = vector.broadcast %cst_72 : f32 to vector<8x32xf32>
    %89 = arith.subf %88, %82 : vector<8x32xf32>
    %90 = arith.mulf %89, %87 : vector<8x32xf32>
    %91 = arith.mulf %82, %61 : vector<8x32xf32>
    %92 = arith.addf %90, %91 : vector<8x32xf32>
    %cst_73 = arith.constant dense<0.000000e+00> : vector<8x96xf32>
    %93 = tpu.matmul %92, %38, %cst_73 {dimension_numbers = #tpu.dot_dimension_numbers<[1], [0], [0], [1], [0, 0, 1, 1], [], []>} : vector<8x32xf32>, vector<32x96xf32>, vector<8x96xf32> -> vector<8x96xf32>
    %94 = arith.addf %93, %45 : vector<8x96xf32>
    %95 = vector.extract_strided_slice %37 {offsets = [8, 0], sizes = [8, 96], strides = [1, 1]} : vector<64x96xf32> to vector<8x96xf32>
    %96 = vector.extract_strided_slice %95 {offsets = [0, 0], sizes = [8, 64], strides = [1, 1]} : vector<8x96xf32> to vector<8x64xf32>
    %97 = vector.extract_strided_slice %94 {offsets = [0, 0], sizes = [8, 64], strides = [1, 1]} : vector<8x96xf32> to vector<8x64xf32>
    %98 = arith.addf %96, %97 : vector<8x64xf32>
    %99 = arith.negf %98 : vector<8x64xf32>
    %100 = math.exp %99 : vector<8x64xf32>
    %cst_74 = arith.constant 1.000000e+00 : f32
    %101 = vector.broadcast %cst_74 : f32 to vector<8x64xf32>
    %102 = arith.addf %101, %100 : vector<8x64xf32>
    %103 = arith.divf %101, %102 : vector<8x64xf32>
    %104 = vector.extract_strided_slice %103 {offsets = [0, 0], sizes = [8, 32], strides = [1, 1]} : vector<8x64xf32> to vector<8x32xf32>
    %105 = vector.extract_strided_slice %103 {offsets = [0, 32], sizes = [8, 32], strides = [1, 1]} : vector<8x64xf32> to vector<8x32xf32>
    %106 = vector.extract_strided_slice %95 {offsets = [0, 64], sizes = [8, 32], strides = [1, 1]} : vector<8x96xf32> to vector<8x32xf32>
    %107 = vector.extract_strided_slice %94 {offsets = [0, 64], sizes = [8, 32], strides = [1, 1]} : vector<8x96xf32> to vector<8x32xf32>
    %108 = arith.mulf %104, %107 : vector<8x32xf32>
    %109 = arith.addf %106, %108 : vector<8x32xf32>
    %110 = math.tanh %109 : vector<8x32xf32>
    %cst_75 = arith.constant 1.000000e+00 : f32
    %111 = vector.broadcast %cst_75 : f32 to vector<8x32xf32>
    %112 = arith.subf %111, %105 : vector<8x32xf32>
    %113 = arith.mulf %112, %110 : vector<8x32xf32>
    %114 = arith.mulf %105, %92 : vector<8x32xf32>
    %115 = arith.addf %113, %114 : vector<8x32xf32>
    %cst_76 = arith.constant dense<0.000000e+00> : vector<8x96xf32>
    %116 = tpu.matmul %92, %39, %cst_76 {dimension_numbers = #tpu.dot_dimension_numbers<[1], [0], [0], [1], [0, 0, 1, 1], [], []>} : vector<8x32xf32>, vector<32x96xf32>, vector<8x96xf32> -> vector<8x96xf32>
    %117 = arith.addf %116, %48 : vector<8x96xf32>
    %cst_77 = arith.constant dense<0.000000e+00> : vector<8x96xf32>
    %118 = tpu.matmul %65, %40, %cst_77 {dimension_numbers = #tpu.dot_dimension_numbers<[1], [0], [0], [1], [0, 0, 1, 1], [], []>} : vector<8x32xf32>, vector<32x96xf32>, vector<8x96xf32> -> vector<8x96xf32>
    %119 = arith.addf %118, %51 : vector<8x96xf32>
    %120 = vector.extract_strided_slice %117 {offsets = [0, 0], sizes = [8, 64], strides = [1, 1]} : vector<8x96xf32> to vector<8x64xf32>
    %121 = vector.extract_strided_slice %119 {offsets = [0, 0], sizes = [8, 64], strides = [1, 1]} : vector<8x96xf32> to vector<8x64xf32>
    %122 = arith.addf %120, %121 : vector<8x64xf32>
    %123 = arith.negf %122 : vector<8x64xf32>
    %124 = math.exp %123 : vector<8x64xf32>
    %cst_78 = arith.constant 1.000000e+00 : f32
    %125 = vector.broadcast %cst_78 : f32 to vector<8x64xf32>
    %126 = arith.addf %125, %124 : vector<8x64xf32>
    %127 = arith.divf %125, %126 : vector<8x64xf32>
    %128 = vector.extract_strided_slice %127 {offsets = [0, 0], sizes = [8, 32], strides = [1, 1]} : vector<8x64xf32> to vector<8x32xf32>
    %129 = vector.extract_strided_slice %127 {offsets = [0, 32], sizes = [8, 32], strides = [1, 1]} : vector<8x64xf32> to vector<8x32xf32>
    %130 = vector.extract_strided_slice %117 {offsets = [0, 64], sizes = [8, 32], strides = [1, 1]} : vector<8x96xf32> to vector<8x32xf32>
    %131 = vector.extract_strided_slice %119 {offsets = [0, 64], sizes = [8, 32], strides = [1, 1]} : vector<8x96xf32> to vector<8x32xf32>
    %132 = arith.mulf %128, %131 : vector<8x32xf32>
    %133 = arith.addf %130, %132 : vector<8x32xf32>
    %134 = math.tanh %133 : vector<8x32xf32>
    %cst_79 = arith.constant 1.000000e+00 : f32
    %135 = vector.broadcast %cst_79 : f32 to vector<8x32xf32>
    %136 = arith.subf %135, %129 : vector<8x32xf32>
    %137 = arith.mulf %136, %134 : vector<8x32xf32>
    %138 = arith.mulf %129, %65 : vector<8x32xf32>
    %139 = arith.addf %137, %138 : vector<8x32xf32>
    %cst_80 = arith.constant dense<0.000000e+00> : vector<8x96xf32>
    %140 = tpu.matmul %115, %38, %cst_80 {dimension_numbers = #tpu.dot_dimension_numbers<[1], [0], [0], [1], [0, 0, 1, 1], [], []>} : vector<8x32xf32>, vector<32x96xf32>, vector<8x96xf32> -> vector<8x96xf32>
    %141 = arith.addf %140, %45 : vector<8x96xf32>
    %142 = vector.extract_strided_slice %37 {offsets = [16, 0], sizes = [8, 96], strides = [1, 1]} : vector<64x96xf32> to vector<8x96xf32>
    %143 = vector.extract_strided_slice %142 {offsets = [0, 0], sizes = [8, 64], strides = [1, 1]} : vector<8x96xf32> to vector<8x64xf32>
    %144 = vector.extract_strided_slice %141 {offsets = [0, 0], sizes = [8, 64], strides = [1, 1]} : vector<8x96xf32> to vector<8x64xf32>
    %145 = arith.addf %143, %144 : vector<8x64xf32>
    %146 = arith.negf %145 : vector<8x64xf32>
    %147 = math.exp %146 : vector<8x64xf32>
    %cst_81 = arith.constant 1.000000e+00 : f32
    %148 = vector.broadcast %cst_81 : f32 to vector<8x64xf32>
    %149 = arith.addf %148, %147 : vector<8x64xf32>
    %150 = arith.divf %148, %149 : vector<8x64xf32>
    %151 = vector.extract_strided_slice %150 {offsets = [0, 0], sizes = [8, 32], strides = [1, 1]} : vector<8x64xf32> to vector<8x32xf32>
    %152 = vector.extract_strided_slice %150 {offsets = [0, 32], sizes = [8, 32], strides = [1, 1]} : vector<8x64xf32> to vector<8x32xf32>
    %153 = vector.extract_strided_slice %142 {offsets = [0, 64], sizes = [8, 32], strides = [1, 1]} : vector<8x96xf32> to vector<8x32xf32>
    %154 = vector.extract_strided_slice %141 {offsets = [0, 64], sizes = [8, 32], strides = [1, 1]} : vector<8x96xf32> to vector<8x32xf32>
    %155 = arith.mulf %151, %154 : vector<8x32xf32>
    %156 = arith.addf %153, %155 : vector<8x32xf32>
    %157 = math.tanh %156 : vector<8x32xf32>
    %cst_82 = arith.constant 1.000000e+00 : f32
    %158 = vector.broadcast %cst_82 : f32 to vector<8x32xf32>
    %159 = arith.subf %158, %152 : vector<8x32xf32>
    %160 = arith.mulf %159, %157 : vector<8x32xf32>
    %161 = arith.mulf %152, %115 : vector<8x32xf32>
    %162 = arith.addf %160, %161 : vector<8x32xf32>
    %cst_83 = arith.constant dense<0.000000e+00> : vector<8x96xf32>
    %163 = tpu.matmul %115, %39, %cst_83 {dimension_numbers = #tpu.dot_dimension_numbers<[1], [0], [0], [1], [0, 0, 1, 1], [], []>} : vector<8x32xf32>, vector<32x96xf32>, vector<8x96xf32> -> vector<8x96xf32>
    %164 = arith.addf %163, %48 : vector<8x96xf32>
    %cst_84 = arith.constant dense<0.000000e+00> : vector<8x96xf32>
    %165 = tpu.matmul %139, %40, %cst_84 {dimension_numbers = #tpu.dot_dimension_numbers<[1], [0], [0], [1], [0, 0, 1, 1], [], []>} : vector<8x32xf32>, vector<32x96xf32>, vector<8x96xf32> -> vector<8x96xf32>
    %166 = arith.addf %165, %51 : vector<8x96xf32>
    %167 = vector.extract_strided_slice %164 {offsets = [0, 0], sizes = [8, 64], strides = [1, 1]} : vector<8x96xf32> to vector<8x64xf32>
    %168 = vector.extract_strided_slice %166 {offsets = [0, 0], sizes = [8, 64], strides = [1, 1]} : vector<8x96xf32> to vector<8x64xf32>
    %169 = arith.addf %167, %168 : vector<8x64xf32>
    %170 = arith.negf %169 : vector<8x64xf32>
    %171 = math.exp %170 : vector<8x64xf32>
    %cst_85 = arith.constant 1.000000e+00 : f32
    %172 = vector.broadcast %cst_85 : f32 to vector<8x64xf32>
    %173 = arith.addf %172, %171 : vector<8x64xf32>
    %174 = arith.divf %172, %173 : vector<8x64xf32>
    %175 = vector.extract_strided_slice %174 {offsets = [0, 0], sizes = [8, 32], strides = [1, 1]} : vector<8x64xf32> to vector<8x32xf32>
    %176 = vector.extract_strided_slice %174 {offsets = [0, 32], sizes = [8, 32], strides = [1, 1]} : vector<8x64xf32> to vector<8x32xf32>
    %177 = vector.extract_strided_slice %164 {offsets = [0, 64], sizes = [8, 32], strides = [1, 1]} : vector<8x96xf32> to vector<8x32xf32>
    %178 = vector.extract_strided_slice %166 {offsets = [0, 64], sizes = [8, 32], strides = [1, 1]} : vector<8x96xf32> to vector<8x32xf32>
    %179 = arith.mulf %175, %178 : vector<8x32xf32>
    %180 = arith.addf %177, %179 : vector<8x32xf32>
    %181 = math.tanh %180 : vector<8x32xf32>
    %cst_86 = arith.constant 1.000000e+00 : f32
    %182 = vector.broadcast %cst_86 : f32 to vector<8x32xf32>
    %183 = arith.subf %182, %176 : vector<8x32xf32>
    %184 = arith.mulf %183, %181 : vector<8x32xf32>
    %185 = arith.mulf %176, %139 : vector<8x32xf32>
    %186 = arith.addf %184, %185 : vector<8x32xf32>
    %187 = arith.addf %92, %139 : vector<8x32xf32>
    %cst_87 = arith.constant dense<0.000000e+00> : vector<8x96xf32>
    %188 = tpu.matmul %187, %41, %cst_87 {dimension_numbers = #tpu.dot_dimension_numbers<[1], [0], [0], [1], [0, 0, 1, 1], [], []>} : vector<8x32xf32>, vector<32x96xf32>, vector<8x96xf32> -> vector<8x96xf32>
    %189 = arith.addf %188, %54 : vector<8x96xf32>
    %cst_88 = arith.constant dense<0.000000e+00> : vector<8x96xf32>
    %190 = tpu.matmul %69, %42, %cst_88 {dimension_numbers = #tpu.dot_dimension_numbers<[1], [0], [0], [1], [0, 0, 1, 1], [], []>} : vector<8x32xf32>, vector<32x96xf32>, vector<8x96xf32> -> vector<8x96xf32>
    %191 = arith.addf %190, %57 : vector<8x96xf32>
    %192 = vector.extract_strided_slice %189 {offsets = [0, 0], sizes = [8, 64], strides = [1, 1]} : vector<8x96xf32> to vector<8x64xf32>
    %193 = vector.extract_strided_slice %191 {offsets = [0, 0], sizes = [8, 64], strides = [1, 1]} : vector<8x96xf32> to vector<8x64xf32>
    %194 = arith.addf %192, %193 : vector<8x64xf32>
    %195 = arith.negf %194 : vector<8x64xf32>
    %196 = math.exp %195 : vector<8x64xf32>
    %cst_89 = arith.constant 1.000000e+00 : f32
    %197 = vector.broadcast %cst_89 : f32 to vector<8x64xf32>
    %198 = arith.addf %197, %196 : vector<8x64xf32>
    %199 = arith.divf %197, %198 : vector<8x64xf32>
    %200 = vector.extract_strided_slice %199 {offsets = [0, 0], sizes = [8, 32], strides = [1, 1]} : vector<8x64xf32> to vector<8x32xf32>
    %201 = vector.extract_strided_slice %199 {offsets = [0, 32], sizes = [8, 32], strides = [1, 1]} : vector<8x64xf32> to vector<8x32xf32>
    %202 = vector.extract_strided_slice %189 {offsets = [0, 64], sizes = [8, 32], strides = [1, 1]} : vector<8x96xf32> to vector<8x32xf32>
    %203 = vector.extract_strided_slice %191 {offsets = [0, 64], sizes = [8, 32], strides = [1, 1]} : vector<8x96xf32> to vector<8x32xf32>
    %204 = arith.mulf %200, %203 : vector<8x32xf32>
    %205 = arith.addf %202, %204 : vector<8x32xf32>
    %206 = math.tanh %205 : vector<8x32xf32>
    %cst_90 = arith.constant 1.000000e+00 : f32
    %207 = vector.broadcast %cst_90 : f32 to vector<8x32xf32>
    %208 = arith.subf %207, %201 : vector<8x32xf32>
    %209 = arith.mulf %208, %206 : vector<8x32xf32>
    %210 = arith.mulf %201, %69 : vector<8x32xf32>
    %211 = arith.addf %209, %210 : vector<8x32xf32>
    %c0_91 = arith.constant 0 : index
    %c0_92 = arith.constant 0 : index
    %212 = vector.load %arg25[%c0_91, %c0_92] : memref<64x32xf32, #tpu.memory_space<vmem>>, vector<8x32xf32>
    tpu.vector_store %arg25[%c0_91, %c0_92], %211 {strides = array<i32>} : memref<64x32xf32, #tpu.memory_space<vmem>>, vector<8x32xf32>,
    %cst_93 = arith.constant dense<0.000000e+00> : vector<8x96xf32>
    %213 = tpu.matmul %162, %38, %cst_93 {dimension_numbers = #tpu.dot_dimension_numbers<[1], [0], [0], [1], [0, 0, 1, 1], [], []>} : vector<8x32xf32>, vector<32x96xf32>, vector<8x96xf32> -> vector<8x96xf32>
    %214 = arith.addf %213, %45 : vector<8x96xf32>
    %215 = vector.extract_strided_slice %37 {offsets = [24, 0], sizes = [8, 96], strides = [1, 1]} : vector<64x96xf32> to vector<8x96xf32>
    %216 = vector.extract_strided_slice %215 {offsets = [0, 0], sizes = [8, 64], strides = [1, 1]} : vector<8x96xf32> to vector<8x64xf32>
    %217 = vector.extract_strided_slice %214 {offsets = [0, 0], sizes = [8, 64], strides = [1, 1]} : vector<8x96xf32> to vector<8x64xf32>
    %218 = arith.addf %216, %217 : vector<8x64xf32>
    %219 = arith.negf %218 : vector<8x64xf32>
    %220 = math.exp %219 : vector<8x64xf32>
    %cst_94 = arith.constant 1.000000e+00 : f32
    %221 = vector.broadcast %cst_94 : f32 to vector<8x64xf32>
    %222 = arith.addf %221, %220 : vector<8x64xf32>
    %223 = arith.divf %221, %222 : vector<8x64xf32>
    %224 = vector.extract_strided_slice %223 {offsets = [0, 0], sizes = [8, 32], strides = [1, 1]} : vector<8x64xf32> to vector<8x32xf32>
    %225 = vector.extract_strided_slice %223 {offsets = [0, 32], sizes = [8, 32], strides = [1, 1]} : vector<8x64xf32> to vector<8x32xf32>
    %226 = vector.extract_strided_slice %215 {offsets = [0, 64], sizes = [8, 32], strides = [1, 1]} : vector<8x96xf32> to vector<8x32xf32>
    %227 = vector.extract_strided_slice %214 {offsets = [0, 64], sizes = [8, 32], strides = [1, 1]} : vector<8x96xf32> to vector<8x32xf32>
    %228 = arith.mulf %224, %227 : vector<8x32xf32>
    %229 = arith.addf %226, %228 : vector<8x32xf32>
    %230 = math.tanh %229 : vector<8x32xf32>
    %cst_95 = arith.constant 1.000000e+00 : f32
    %231 = vector.broadcast %cst_95 : f32 to vector<8x32xf32>
    %232 = arith.subf %231, %225 : vector<8x32xf32>
    %233 = arith.mulf %232, %230 : vector<8x32xf32>
    %234 = arith.mulf %225, %162 : vector<8x32xf32>
    %235 = arith.addf %233, %234 : vector<8x32xf32>
    %cst_96 = arith.constant dense<0.000000e+00> : vector<8x96xf32>
    %236 = tpu.matmul %162, %39, %cst_96 {dimension_numbers = #tpu.dot_dimension_numbers<[1], [0], [0], [1], [0, 0, 1, 1], [], []>} : vector<8x32xf32>, vector<32x96xf32>, vector<8x96xf32> -> vector<8x96xf32>
    %237 = arith.addf %236, %48 : vector<8x96xf32>
    %cst_97 = arith.constant dense<0.000000e+00> : vector<8x96xf32>
    %238 = tpu.matmul %186, %40, %cst_97 {dimension_numbers = #tpu.dot_dimension_numbers<[1], [0], [0], [1], [0, 0, 1, 1], [], []>} : vector<8x32xf32>, vector<32x96xf32>, vector<8x96xf32> -> vector<8x96xf32>
    %239 = arith.addf %238, %51 : vector<8x96xf32>
    %240 = vector.extract_strided_slice %237 {offsets = [0, 0], sizes = [8, 64], strides = [1, 1]} : vector<8x96xf32> to vector<8x64xf32>
    %241 = vector.extract_strided_slice %239 {offsets = [0, 0], sizes = [8, 64], strides = [1, 1]} : vector<8x96xf32> to vector<8x64xf32>
    %242 = arith.addf %240, %241 : vector<8x64xf32>
    %243 = arith.negf %242 : vector<8x64xf32>
    %244 = math.exp %243 : vector<8x64xf32>
    %cst_98 = arith.constant 1.000000e+00 : f32
    %245 = vector.broadcast %cst_98 : f32 to vector<8x64xf32>
    %246 = arith.addf %245, %244 : vector<8x64xf32>
    %247 = arith.divf %245, %246 : vector<8x64xf32>
    %248 = vector.extract_strided_slice %247 {offsets = [0, 0], sizes = [8, 32], strides = [1, 1]} : vector<8x64xf32> to vector<8x32xf32>
    %249 = vector.extract_strided_slice %247 {offsets = [0, 32], sizes = [8, 32], strides = [1, 1]} : vector<8x64xf32> to vector<8x32xf32>
    %250 = vector.extract_strided_slice %237 {offsets = [0, 64], sizes = [8, 32], strides = [1, 1]} : vector<8x96xf32> to vector<8x32xf32>
    %251 = vector.extract_strided_slice %239 {offsets = [0, 64], sizes = [8, 32], strides = [1, 1]} : vector<8x96xf32> to vector<8x32xf32>
    %252 = arith.mulf %248, %251 : vector<8x32xf32>
    %253 = arith.addf %250, %252 : vector<8x32xf32>
    %254 = math.tanh %253 : vector<8x32xf32>
    %cst_99 = arith.constant 1.000000e+00 : f32
    %255 = vector.broadcast %cst_99 : f32 to vector<8x32xf32>
    %256 = arith.subf %255, %249 : vector<8x32xf32>
    %257 = arith.mulf %256, %254 : vector<8x32xf32>
    %258 = arith.mulf %249, %186 : vector<8x32xf32>
    %259 = arith.addf %257, %258 : vector<8x32xf32>
    %260 = arith.addf %115, %186 : vector<8x32xf32>
    %cst_100 = arith.constant dense<0.000000e+00> : vector<8x96xf32>
    %261 = tpu.matmul %260, %41, %cst_100 {dimension_numbers = #tpu.dot_dimension_numbers<[1], [0], [0], [1], [0, 0, 1, 1], [], []>} : vector<8x32xf32>, vector<32x96xf32>, vector<8x96xf32> -> vector<8x96xf32>
    %262 = arith.addf %261, %54 : vector<8x96xf32>
    %cst_101 = arith.constant dense<0.000000e+00> : vector<8x96xf32>
    %263 = tpu.matmul %211, %42, %cst_101 {dimension_numbers = #tpu.dot_dimension_numbers<[1], [0], [0], [1], [0, 0, 1, 1], [], []>} : vector<8x32xf32>, vector<32x96xf32>, vector<8x96xf32> -> vector<8x96xf32>
    %264 = arith.addf %263, %57 : vector<8x96xf32>
    %265 = vector.extract_strided_slice %262 {offsets = [0, 0], sizes = [8, 64], strides = [1, 1]} : vector<8x96xf32> to vector<8x64xf32>
    %266 = vector.extract_strided_slice %264 {offsets = [0, 0], sizes = [8, 64], strides = [1, 1]} : vector<8x96xf32> to vector<8x64xf32>
    %267 = arith.addf %265, %266 : vector<8x64xf32>
    %268 = arith.negf %267 : vector<8x64xf32>
    %269 = math.exp %268 : vector<8x64xf32>
    %cst_102 = arith.constant 1.000000e+00 : f32
    %270 = vector.broadcast %cst_102 : f32 to vector<8x64xf32>
    %271 = arith.addf %270, %269 : vector<8x64xf32>
    %272 = arith.divf %270, %271 : vector<8x64xf32>
    %273 = vector.extract_strided_slice %272 {offsets = [0, 0], sizes = [8, 32], strides = [1, 1]} : vector<8x64xf32> to vector<8x32xf32>
    %274 = vector.extract_strided_slice %272 {offsets = [0, 32], sizes = [8, 32], strides = [1, 1]} : vector<8x64xf32> to vector<8x32xf32>
    %275 = vector.extract_strided_slice %262 {offsets = [0, 64], sizes = [8, 32], strides = [1, 1]} : vector<8x96xf32> to vector<8x32xf32>
    %276 = vector.extract_strided_slice %264 {offsets = [0, 64], sizes = [8, 32], strides = [1, 1]} : vector<8x96xf32> to vector<8x32xf32>
    %277 = arith.mulf %273, %276 : vector<8x32xf32>
    %278 = arith.addf %275, %277 : vector<8x32xf32>
    %279 = math.tanh %278 : vector<8x32xf32>
    %cst_103 = arith.constant 1.000000e+00 : f32
    %280 = vector.broadcast %cst_103 : f32 to vector<8x32xf32>
    %281 = arith.subf %280, %274 : vector<8x32xf32>
    %282 = arith.mulf %281, %279 : vector<8x32xf32>
    %283 = arith.mulf %274, %211 : vector<8x32xf32>
    %284 = arith.addf %282, %283 : vector<8x32xf32>
    %c8_104 = arith.constant 8 : index
    %c0_105 = arith.constant 0 : index
    %285 = vector.load %arg25[%c8_104, %c0_105] : memref<64x32xf32, #tpu.memory_space<vmem>>, vector<8x32xf32>
    tpu.vector_store %arg25[%c8_104, %c0_105], %284 {strides = array<i32>} : memref<64x32xf32, #tpu.memory_space<vmem>>, vector<8x32xf32>,
    %cst_106 = arith.constant dense<0.000000e+00> : vector<8x96xf32>
    %286 = tpu.matmul %235, %38, %cst_106 {dimension_numbers = #tpu.dot_dimension_numbers<[1], [0], [0], [1], [0, 0, 1, 1], [], []>} : vector<8x32xf32>, vector<32x96xf32>, vector<8x96xf32> -> vector<8x96xf32>
    %287 = arith.addf %286, %45 : vector<8x96xf32>
    %288 = vector.extract_strided_slice %37 {offsets = [32, 0], sizes = [8, 96], strides = [1, 1]} : vector<64x96xf32> to vector<8x96xf32>
    %289 = vector.extract_strided_slice %288 {offsets = [0, 0], sizes = [8, 64], strides = [1, 1]} : vector<8x96xf32> to vector<8x64xf32>
    %290 = vector.extract_strided_slice %287 {offsets = [0, 0], sizes = [8, 64], strides = [1, 1]} : vector<8x96xf32> to vector<8x64xf32>
    %291 = arith.addf %289, %290 : vector<8x64xf32>
    %292 = arith.negf %291 : vector<8x64xf32>
    %293 = math.exp %292 : vector<8x64xf32>
    %cst_107 = arith.constant 1.000000e+00 : f32
    %294 = vector.broadcast %cst_107 : f32 to vector<8x64xf32>
    %295 = arith.addf %294, %293 : vector<8x64xf32>
    %296 = arith.divf %294, %295 : vector<8x64xf32>
    %297 = vector.extract_strided_slice %296 {offsets = [0, 0], sizes = [8, 32], strides = [1, 1]} : vector<8x64xf32> to vector<8x32xf32>
    %298 = vector.extract_strided_slice %296 {offsets = [0, 32], sizes = [8, 32], strides = [1, 1]} : vector<8x64xf32> to vector<8x32xf32>
    %299 = vector.extract_strided_slice %288 {offsets = [0, 64], sizes = [8, 32], strides = [1, 1]} : vector<8x96xf32> to vector<8x32xf32>
    %300 = vector.extract_strided_slice %287 {offsets = [0, 64], sizes = [8, 32], strides = [1, 1]} : vector<8x96xf32> to vector<8x32xf32>
    %301 = arith.mulf %297, %300 : vector<8x32xf32>
    %302 = arith.addf %299, %301 : vector<8x32xf32>
    %303 = math.tanh %302 : vector<8x32xf32>
    %cst_108 = arith.constant 1.000000e+00 : f32
    %304 = vector.broadcast %cst_108 : f32 to vector<8x32xf32>
    %305 = arith.subf %304, %298 : vector<8x32xf32>
    %306 = arith.mulf %305, %303 : vector<8x32xf32>
    %307 = arith.mulf %298, %235 : vector<8x32xf32>
    %308 = arith.addf %306, %307 : vector<8x32xf32>
    %cst_109 = arith.constant dense<0.000000e+00> : vector<8x96xf32>
    %309 = tpu.matmul %235, %39, %cst_109 {dimension_numbers = #tpu.dot_dimension_numbers<[1], [0], [0], [1], [0, 0, 1, 1], [], []>} : vector<8x32xf32>, vector<32x96xf32>, vector<8x96xf32> -> vector<8x96xf32>
    %310 = arith.addf %309, %48 : vector<8x96xf32>
    %cst_110 = arith.constant dense<0.000000e+00> : vector<8x96xf32>
    %311 = tpu.matmul %259, %40, %cst_110 {dimension_numbers = #tpu.dot_dimension_numbers<[1], [0], [0], [1], [0, 0, 1, 1], [], []>} : vector<8x32xf32>, vector<32x96xf32>, vector<8x96xf32> -> vector<8x96xf32>
    %312 = arith.addf %311, %51 : vector<8x96xf32>
    %313 = vector.extract_strided_slice %310 {offsets = [0, 0], sizes = [8, 64], strides = [1, 1]} : vector<8x96xf32> to vector<8x64xf32>
    %314 = vector.extract_strided_slice %312 {offsets = [0, 0], sizes = [8, 64], strides = [1, 1]} : vector<8x96xf32> to vector<8x64xf32>
    %315 = arith.addf %313, %314 : vector<8x64xf32>
    %316 = arith.negf %315 : vector<8x64xf32>
    %317 = math.exp %316 : vector<8x64xf32>
    %cst_111 = arith.constant 1.000000e+00 : f32
    %318 = vector.broadcast %cst_111 : f32 to vector<8x64xf32>
    %319 = arith.addf %318, %317 : vector<8x64xf32>
    %320 = arith.divf %318, %319 : vector<8x64xf32>
    %321 = vector.extract_strided_slice %320 {offsets = [0, 0], sizes = [8, 32], strides = [1, 1]} : vector<8x64xf32> to vector<8x32xf32>
    %322 = vector.extract_strided_slice %320 {offsets = [0, 32], sizes = [8, 32], strides = [1, 1]} : vector<8x64xf32> to vector<8x32xf32>
    %323 = vector.extract_strided_slice %310 {offsets = [0, 64], sizes = [8, 32], strides = [1, 1]} : vector<8x96xf32> to vector<8x32xf32>
    %324 = vector.extract_strided_slice %312 {offsets = [0, 64], sizes = [8, 32], strides = [1, 1]} : vector<8x96xf32> to vector<8x32xf32>
    %325 = arith.mulf %321, %324 : vector<8x32xf32>
    %326 = arith.addf %323, %325 : vector<8x32xf32>
    %327 = math.tanh %326 : vector<8x32xf32>
    %cst_112 = arith.constant 1.000000e+00 : f32
    %328 = vector.broadcast %cst_112 : f32 to vector<8x32xf32>
    %329 = arith.subf %328, %322 : vector<8x32xf32>
    %330 = arith.mulf %329, %327 : vector<8x32xf32>
    %331 = arith.mulf %322, %259 : vector<8x32xf32>
    %332 = arith.addf %330, %331 : vector<8x32xf32>
    %333 = arith.addf %162, %259 : vector<8x32xf32>
    %cst_113 = arith.constant dense<0.000000e+00> : vector<8x96xf32>
    %334 = tpu.matmul %333, %41, %cst_113 {dimension_numbers = #tpu.dot_dimension_numbers<[1], [0], [0], [1], [0, 0, 1, 1], [], []>} : vector<8x32xf32>, vector<32x96xf32>, vector<8x96xf32> -> vector<8x96xf32>
    %335 = arith.addf %334, %54 : vector<8x96xf32>
    %cst_114 = arith.constant dense<0.000000e+00> : vector<8x96xf32>
    %336 = tpu.matmul %284, %42, %cst_114 {dimension_numbers = #tpu.dot_dimension_numbers<[1], [0], [0], [1], [0, 0, 1, 1], [], []>} : vector<8x32xf32>, vector<32x96xf32>, vector<8x96xf32> -> vector<8x96xf32>
    %337 = arith.addf %336, %57 : vector<8x96xf32>
    %338 = vector.extract_strided_slice %335 {offsets = [0, 0], sizes = [8, 64], strides = [1, 1]} : vector<8x96xf32> to vector<8x64xf32>
    %339 = vector.extract_strided_slice %337 {offsets = [0, 0], sizes = [8, 64], strides = [1, 1]} : vector<8x96xf32> to vector<8x64xf32>
    %340 = arith.addf %338, %339 : vector<8x64xf32>
    %341 = arith.negf %340 : vector<8x64xf32>
    %342 = math.exp %341 : vector<8x64xf32>
    %cst_115 = arith.constant 1.000000e+00 : f32
    %343 = vector.broadcast %cst_115 : f32 to vector<8x64xf32>
    %344 = arith.addf %343, %342 : vector<8x64xf32>
    %345 = arith.divf %343, %344 : vector<8x64xf32>
    %346 = vector.extract_strided_slice %345 {offsets = [0, 0], sizes = [8, 32], strides = [1, 1]} : vector<8x64xf32> to vector<8x32xf32>
    %347 = vector.extract_strided_slice %345 {offsets = [0, 32], sizes = [8, 32], strides = [1, 1]} : vector<8x64xf32> to vector<8x32xf32>
    %348 = vector.extract_strided_slice %335 {offsets = [0, 64], sizes = [8, 32], strides = [1, 1]} : vector<8x96xf32> to vector<8x32xf32>
    %349 = vector.extract_strided_slice %337 {offsets = [0, 64], sizes = [8, 32], strides = [1, 1]} : vector<8x96xf32> to vector<8x32xf32>
    %350 = arith.mulf %346, %349 : vector<8x32xf32>
    %351 = arith.addf %348, %350 : vector<8x32xf32>
    %352 = math.tanh %351 : vector<8x32xf32>
    %cst_116 = arith.constant 1.000000e+00 : f32
    %353 = vector.broadcast %cst_116 : f32 to vector<8x32xf32>
    %354 = arith.subf %353, %347 : vector<8x32xf32>
    %355 = arith.mulf %354, %352 : vector<8x32xf32>
    %356 = arith.mulf %347, %284 : vector<8x32xf32>
    %357 = arith.addf %355, %356 : vector<8x32xf32>
    %c16_117 = arith.constant 16 : index
    %c0_118 = arith.constant 0 : index
    %358 = vector.load %arg25[%c16_117, %c0_118] : memref<64x32xf32, #tpu.memory_space<vmem>>, vector<8x32xf32>
    tpu.vector_store %arg25[%c16_117, %c0_118], %357 {strides = array<i32>} : memref<64x32xf32, #tpu.memory_space<vmem>>, vector<8x32xf32>,
    %cst_119 = arith.constant dense<0.000000e+00> : vector<8x96xf32>
    %359 = tpu.matmul %308, %38, %cst_119 {dimension_numbers = #tpu.dot_dimension_numbers<[1], [0], [0], [1], [0, 0, 1, 1], [], []>} : vector<8x32xf32>, vector<32x96xf32>, vector<8x96xf32> -> vector<8x96xf32>
    %360 = arith.addf %359, %45 : vector<8x96xf32>
    %361 = vector.extract_strided_slice %37 {offsets = [40, 0], sizes = [8, 96], strides = [1, 1]} : vector<64x96xf32> to vector<8x96xf32>
    %362 = vector.extract_strided_slice %361 {offsets = [0, 0], sizes = [8, 64], strides = [1, 1]} : vector<8x96xf32> to vector<8x64xf32>
    %363 = vector.extract_strided_slice %360 {offsets = [0, 0], sizes = [8, 64], strides = [1, 1]} : vector<8x96xf32> to vector<8x64xf32>
    %364 = arith.addf %362, %363 : vector<8x64xf32>
    %365 = arith.negf %364 : vector<8x64xf32>
    %366 = math.exp %365 : vector<8x64xf32>
    %cst_120 = arith.constant 1.000000e+00 : f32
    %367 = vector.broadcast %cst_120 : f32 to vector<8x64xf32>
    %368 = arith.addf %367, %366 : vector<8x64xf32>
    %369 = arith.divf %367, %368 : vector<8x64xf32>
    %370 = vector.extract_strided_slice %369 {offsets = [0, 0], sizes = [8, 32], strides = [1, 1]} : vector<8x64xf32> to vector<8x32xf32>
    %371 = vector.extract_strided_slice %369 {offsets = [0, 32], sizes = [8, 32], strides = [1, 1]} : vector<8x64xf32> to vector<8x32xf32>
    %372 = vector.extract_strided_slice %361 {offsets = [0, 64], sizes = [8, 32], strides = [1, 1]} : vector<8x96xf32> to vector<8x32xf32>
    %373 = vector.extract_strided_slice %360 {offsets = [0, 64], sizes = [8, 32], strides = [1, 1]} : vector<8x96xf32> to vector<8x32xf32>
    %374 = arith.mulf %370, %373 : vector<8x32xf32>
    %375 = arith.addf %372, %374 : vector<8x32xf32>
    %376 = math.tanh %375 : vector<8x32xf32>
    %cst_121 = arith.constant 1.000000e+00 : f32
    %377 = vector.broadcast %cst_121 : f32 to vector<8x32xf32>
    %378 = arith.subf %377, %371 : vector<8x32xf32>
    %379 = arith.mulf %378, %376 : vector<8x32xf32>
    %380 = arith.mulf %371, %308 : vector<8x32xf32>
    %381 = arith.addf %379, %380 : vector<8x32xf32>
    %cst_122 = arith.constant dense<0.000000e+00> : vector<8x96xf32>
    %382 = tpu.matmul %308, %39, %cst_122 {dimension_numbers = #tpu.dot_dimension_numbers<[1], [0], [0], [1], [0, 0, 1, 1], [], []>} : vector<8x32xf32>, vector<32x96xf32>, vector<8x96xf32> -> vector<8x96xf32>
    %383 = arith.addf %382, %48 : vector<8x96xf32>
    %cst_123 = arith.constant dense<0.000000e+00> : vector<8x96xf32>
    %384 = tpu.matmul %332, %40, %cst_123 {dimension_numbers = #tpu.dot_dimension_numbers<[1], [0], [0], [1], [0, 0, 1, 1], [], []>} : vector<8x32xf32>, vector<32x96xf32>, vector<8x96xf32> -> vector<8x96xf32>
    %385 = arith.addf %384, %51 : vector<8x96xf32>
    %386 = vector.extract_strided_slice %383 {offsets = [0, 0], sizes = [8, 64], strides = [1, 1]} : vector<8x96xf32> to vector<8x64xf32>
    %387 = vector.extract_strided_slice %385 {offsets = [0, 0], sizes = [8, 64], strides = [1, 1]} : vector<8x96xf32> to vector<8x64xf32>
    %388 = arith.addf %386, %387 : vector<8x64xf32>
    %389 = arith.negf %388 : vector<8x64xf32>
    %390 = math.exp %389 : vector<8x64xf32>
    %cst_124 = arith.constant 1.000000e+00 : f32
    %391 = vector.broadcast %cst_124 : f32 to vector<8x64xf32>
    %392 = arith.addf %391, %390 : vector<8x64xf32>
    %393 = arith.divf %391, %392 : vector<8x64xf32>
    %394 = vector.extract_strided_slice %393 {offsets = [0, 0], sizes = [8, 32], strides = [1, 1]} : vector<8x64xf32> to vector<8x32xf32>
    %395 = vector.extract_strided_slice %393 {offsets = [0, 32], sizes = [8, 32], strides = [1, 1]} : vector<8x64xf32> to vector<8x32xf32>
    %396 = vector.extract_strided_slice %383 {offsets = [0, 64], sizes = [8, 32], strides = [1, 1]} : vector<8x96xf32> to vector<8x32xf32>
    %397 = vector.extract_strided_slice %385 {offsets = [0, 64], sizes = [8, 32], strides = [1, 1]} : vector<8x96xf32> to vector<8x32xf32>
    %398 = arith.mulf %394, %397 : vector<8x32xf32>
    %399 = arith.addf %396, %398 : vector<8x32xf32>
    %400 = math.tanh %399 : vector<8x32xf32>
    %cst_125 = arith.constant 1.000000e+00 : f32
    %401 = vector.broadcast %cst_125 : f32 to vector<8x32xf32>
    %402 = arith.subf %401, %395 : vector<8x32xf32>
    %403 = arith.mulf %402, %400 : vector<8x32xf32>
    %404 = arith.mulf %395, %332 : vector<8x32xf32>
    %405 = arith.addf %403, %404 : vector<8x32xf32>
    %406 = arith.addf %235, %332 : vector<8x32xf32>
    %cst_126 = arith.constant dense<0.000000e+00> : vector<8x96xf32>
    %407 = tpu.matmul %406, %41, %cst_126 {dimension_numbers = #tpu.dot_dimension_numbers<[1], [0], [0], [1], [0, 0, 1, 1], [], []>} : vector<8x32xf32>, vector<32x96xf32>, vector<8x96xf32> -> vector<8x96xf32>
    %408 = arith.addf %407, %54 : vector<8x96xf32>
    %cst_127 = arith.constant dense<0.000000e+00> : vector<8x96xf32>
    %409 = tpu.matmul %357, %42, %cst_127 {dimension_numbers = #tpu.dot_dimension_numbers<[1], [0], [0], [1], [0, 0, 1, 1], [], []>} : vector<8x32xf32>, vector<32x96xf32>, vector<8x96xf32> -> vector<8x96xf32>
    %410 = arith.addf %409, %57 : vector<8x96xf32>
    %411 = vector.extract_strided_slice %408 {offsets = [0, 0], sizes = [8, 64], strides = [1, 1]} : vector<8x96xf32> to vector<8x64xf32>
    %412 = vector.extract_strided_slice %410 {offsets = [0, 0], sizes = [8, 64], strides = [1, 1]} : vector<8x96xf32> to vector<8x64xf32>
    %413 = arith.addf %411, %412 : vector<8x64xf32>
    %414 = arith.negf %413 : vector<8x64xf32>
    %415 = math.exp %414 : vector<8x64xf32>
    %cst_128 = arith.constant 1.000000e+00 : f32
    %416 = vector.broadcast %cst_128 : f32 to vector<8x64xf32>
    %417 = arith.addf %416, %415 : vector<8x64xf32>
    %418 = arith.divf %416, %417 : vector<8x64xf32>
    %419 = vector.extract_strided_slice %418 {offsets = [0, 0], sizes = [8, 32], strides = [1, 1]} : vector<8x64xf32> to vector<8x32xf32>
    %420 = vector.extract_strided_slice %418 {offsets = [0, 32], sizes = [8, 32], strides = [1, 1]} : vector<8x64xf32> to vector<8x32xf32>
    %421 = vector.extract_strided_slice %408 {offsets = [0, 64], sizes = [8, 32], strides = [1, 1]} : vector<8x96xf32> to vector<8x32xf32>
    %422 = vector.extract_strided_slice %410 {offsets = [0, 64], sizes = [8, 32], strides = [1, 1]} : vector<8x96xf32> to vector<8x32xf32>
    %423 = arith.mulf %419, %422 : vector<8x32xf32>
    %424 = arith.addf %421, %423 : vector<8x32xf32>
    %425 = math.tanh %424 : vector<8x32xf32>
    %cst_129 = arith.constant 1.000000e+00 : f32
    %426 = vector.broadcast %cst_129 : f32 to vector<8x32xf32>
    %427 = arith.subf %426, %420 : vector<8x32xf32>
    %428 = arith.mulf %427, %425 : vector<8x32xf32>
    %429 = arith.mulf %420, %357 : vector<8x32xf32>
    %430 = arith.addf %428, %429 : vector<8x32xf32>
    %c24_130 = arith.constant 24 : index
    %c0_131 = arith.constant 0 : index
    %431 = vector.load %arg25[%c24_130, %c0_131] : memref<64x32xf32, #tpu.memory_space<vmem>>, vector<8x32xf32>
    tpu.vector_store %arg25[%c24_130, %c0_131], %430 {strides = array<i32>} : memref<64x32xf32, #tpu.memory_space<vmem>>, vector<8x32xf32>,
    %cst_132 = arith.constant dense<0.000000e+00> : vector<8x96xf32>
    %432 = tpu.matmul %381, %38, %cst_132 {dimension_numbers = #tpu.dot_dimension_numbers<[1], [0], [0], [1], [0, 0, 1, 1], [], []>} : vector<8x32xf32>, vector<32x96xf32>, vector<8x96xf32> -> vector<8x96xf32>
    %433 = arith.addf %432, %45 : vector<8x96xf32>
    %434 = vector.extract_strided_slice %37 {offsets = [48, 0], sizes = [8, 96], strides = [1, 1]} : vector<64x96xf32> to vector<8x96xf32>
    %435 = vector.extract_strided_slice %434 {offsets = [0, 0], sizes = [8, 64], strides = [1, 1]} : vector<8x96xf32> to vector<8x64xf32>
    %436 = vector.extract_strided_slice %433 {offsets = [0, 0], sizes = [8, 64], strides = [1, 1]} : vector<8x96xf32> to vector<8x64xf32>
    %437 = arith.addf %435, %436 : vector<8x64xf32>
    %438 = arith.negf %437 : vector<8x64xf32>
    %439 = math.exp %438 : vector<8x64xf32>
    %cst_133 = arith.constant 1.000000e+00 : f32
    %440 = vector.broadcast %cst_133 : f32 to vector<8x64xf32>
    %441 = arith.addf %440, %439 : vector<8x64xf32>
    %442 = arith.divf %440, %441 : vector<8x64xf32>
    %443 = vector.extract_strided_slice %442 {offsets = [0, 0], sizes = [8, 32], strides = [1, 1]} : vector<8x64xf32> to vector<8x32xf32>
    %444 = vector.extract_strided_slice %442 {offsets = [0, 32], sizes = [8, 32], strides = [1, 1]} : vector<8x64xf32> to vector<8x32xf32>
    %445 = vector.extract_strided_slice %434 {offsets = [0, 64], sizes = [8, 32], strides = [1, 1]} : vector<8x96xf32> to vector<8x32xf32>
    %446 = vector.extract_strided_slice %433 {offsets = [0, 64], sizes = [8, 32], strides = [1, 1]} : vector<8x96xf32> to vector<8x32xf32>
    %447 = arith.mulf %443, %446 : vector<8x32xf32>
    %448 = arith.addf %445, %447 : vector<8x32xf32>
    %449 = math.tanh %448 : vector<8x32xf32>
    %cst_134 = arith.constant 1.000000e+00 : f32
    %450 = vector.broadcast %cst_134 : f32 to vector<8x32xf32>
    %451 = arith.subf %450, %444 : vector<8x32xf32>
    %452 = arith.mulf %451, %449 : vector<8x32xf32>
    %453 = arith.mulf %444, %381 : vector<8x32xf32>
    %454 = arith.addf %452, %453 : vector<8x32xf32>
    %cst_135 = arith.constant dense<0.000000e+00> : vector<8x96xf32>
    %455 = tpu.matmul %381, %39, %cst_135 {dimension_numbers = #tpu.dot_dimension_numbers<[1], [0], [0], [1], [0, 0, 1, 1], [], []>} : vector<8x32xf32>, vector<32x96xf32>, vector<8x96xf32> -> vector<8x96xf32>
    %456 = arith.addf %455, %48 : vector<8x96xf32>
    %cst_136 = arith.constant dense<0.000000e+00> : vector<8x96xf32>
    %457 = tpu.matmul %405, %40, %cst_136 {dimension_numbers = #tpu.dot_dimension_numbers<[1], [0], [0], [1], [0, 0, 1, 1], [], []>} : vector<8x32xf32>, vector<32x96xf32>, vector<8x96xf32> -> vector<8x96xf32>
    %458 = arith.addf %457, %51 : vector<8x96xf32>
    %459 = vector.extract_strided_slice %456 {offsets = [0, 0], sizes = [8, 64], strides = [1, 1]} : vector<8x96xf32> to vector<8x64xf32>
    %460 = vector.extract_strided_slice %458 {offsets = [0, 0], sizes = [8, 64], strides = [1, 1]} : vector<8x96xf32> to vector<8x64xf32>
    %461 = arith.addf %459, %460 : vector<8x64xf32>
    %462 = arith.negf %461 : vector<8x64xf32>
    %463 = math.exp %462 : vector<8x64xf32>
    %cst_137 = arith.constant 1.000000e+00 : f32
    %464 = vector.broadcast %cst_137 : f32 to vector<8x64xf32>
    %465 = arith.addf %464, %463 : vector<8x64xf32>
    %466 = arith.divf %464, %465 : vector<8x64xf32>
    %467 = vector.extract_strided_slice %466 {offsets = [0, 0], sizes = [8, 32], strides = [1, 1]} : vector<8x64xf32> to vector<8x32xf32>
    %468 = vector.extract_strided_slice %466 {offsets = [0, 32], sizes = [8, 32], strides = [1, 1]} : vector<8x64xf32> to vector<8x32xf32>
    %469 = vector.extract_strided_slice %456 {offsets = [0, 64], sizes = [8, 32], strides = [1, 1]} : vector<8x96xf32> to vector<8x32xf32>
    %470 = vector.extract_strided_slice %458 {offsets = [0, 64], sizes = [8, 32], strides = [1, 1]} : vector<8x96xf32> to vector<8x32xf32>
    %471 = arith.mulf %467, %470 : vector<8x32xf32>
    %472 = arith.addf %469, %471 : vector<8x32xf32>
    %473 = math.tanh %472 : vector<8x32xf32>
    %cst_138 = arith.constant 1.000000e+00 : f32
    %474 = vector.broadcast %cst_138 : f32 to vector<8x32xf32>
    %475 = arith.subf %474, %468 : vector<8x32xf32>
    %476 = arith.mulf %475, %473 : vector<8x32xf32>
    %477 = arith.mulf %468, %405 : vector<8x32xf32>
    %478 = arith.addf %476, %477 : vector<8x32xf32>
    %479 = arith.addf %308, %405 : vector<8x32xf32>
    %cst_139 = arith.constant dense<0.000000e+00> : vector<8x96xf32>
    %480 = tpu.matmul %479, %41, %cst_139 {dimension_numbers = #tpu.dot_dimension_numbers<[1], [0], [0], [1], [0, 0, 1, 1], [], []>} : vector<8x32xf32>, vector<32x96xf32>, vector<8x96xf32> -> vector<8x96xf32>
    %481 = arith.addf %480, %54 : vector<8x96xf32>
    %cst_140 = arith.constant dense<0.000000e+00> : vector<8x96xf32>
    %482 = tpu.matmul %430, %42, %cst_140 {dimension_numbers = #tpu.dot_dimension_numbers<[1], [0], [0], [1], [0, 0, 1, 1], [], []>} : vector<8x32xf32>, vector<32x96xf32>, vector<8x96xf32> -> vector<8x96xf32>
    %483 = arith.addf %482, %57 : vector<8x96xf32>
    %484 = vector.extract_strided_slice %481 {offsets = [0, 0], sizes = [8, 64], strides = [1, 1]} : vector<8x96xf32> to vector<8x64xf32>
    %485 = vector.extract_strided_slice %483 {offsets = [0, 0], sizes = [8, 64], strides = [1, 1]} : vector<8x96xf32> to vector<8x64xf32>
    %486 = arith.addf %484, %485 : vector<8x64xf32>
    %487 = arith.negf %486 : vector<8x64xf32>
    %488 = math.exp %487 : vector<8x64xf32>
    %cst_141 = arith.constant 1.000000e+00 : f32
    %489 = vector.broadcast %cst_141 : f32 to vector<8x64xf32>
    %490 = arith.addf %489, %488 : vector<8x64xf32>
    %491 = arith.divf %489, %490 : vector<8x64xf32>
    %492 = vector.extract_strided_slice %491 {offsets = [0, 0], sizes = [8, 32], strides = [1, 1]} : vector<8x64xf32> to vector<8x32xf32>
    %493 = vector.extract_strided_slice %491 {offsets = [0, 32], sizes = [8, 32], strides = [1, 1]} : vector<8x64xf32> to vector<8x32xf32>
    %494 = vector.extract_strided_slice %481 {offsets = [0, 64], sizes = [8, 32], strides = [1, 1]} : vector<8x96xf32> to vector<8x32xf32>
    %495 = vector.extract_strided_slice %483 {offsets = [0, 64], sizes = [8, 32], strides = [1, 1]} : vector<8x96xf32> to vector<8x32xf32>
    %496 = arith.mulf %492, %495 : vector<8x32xf32>
    %497 = arith.addf %494, %496 : vector<8x32xf32>
    %498 = math.tanh %497 : vector<8x32xf32>
    %cst_142 = arith.constant 1.000000e+00 : f32
    %499 = vector.broadcast %cst_142 : f32 to vector<8x32xf32>
    %500 = arith.subf %499, %493 : vector<8x32xf32>
    %501 = arith.mulf %500, %498 : vector<8x32xf32>
    %502 = arith.mulf %493, %430 : vector<8x32xf32>
    %503 = arith.addf %501, %502 : vector<8x32xf32>
    %c32_143 = arith.constant 32 : index
    %c0_144 = arith.constant 0 : index
    %504 = vector.load %arg25[%c32_143, %c0_144] : memref<64x32xf32, #tpu.memory_space<vmem>>, vector<8x32xf32>
    tpu.vector_store %arg25[%c32_143, %c0_144], %503 {strides = array<i32>} : memref<64x32xf32, #tpu.memory_space<vmem>>, vector<8x32xf32>,
    %cst_145 = arith.constant dense<0.000000e+00> : vector<8x96xf32>
    %505 = tpu.matmul %454, %38, %cst_145 {dimension_numbers = #tpu.dot_dimension_numbers<[1], [0], [0], [1], [0, 0, 1, 1], [], []>} : vector<8x32xf32>, vector<32x96xf32>, vector<8x96xf32> -> vector<8x96xf32>
    %506 = arith.addf %505, %45 : vector<8x96xf32>
    %507 = vector.extract_strided_slice %37 {offsets = [56, 0], sizes = [8, 96], strides = [1, 1]} : vector<64x96xf32> to vector<8x96xf32>
    %508 = vector.extract_strided_slice %507 {offsets = [0, 0], sizes = [8, 64], strides = [1, 1]} : vector<8x96xf32> to vector<8x64xf32>
    %509 = vector.extract_strided_slice %506 {offsets = [0, 0], sizes = [8, 64], strides = [1, 1]} : vector<8x96xf32> to vector<8x64xf32>
    %510 = arith.addf %508, %509 : vector<8x64xf32>
    %511 = arith.negf %510 : vector<8x64xf32>
    %512 = math.exp %511 : vector<8x64xf32>
    %cst_146 = arith.constant 1.000000e+00 : f32
    %513 = vector.broadcast %cst_146 : f32 to vector<8x64xf32>
    %514 = arith.addf %513, %512 : vector<8x64xf32>
    %515 = arith.divf %513, %514 : vector<8x64xf32>
    %516 = vector.extract_strided_slice %515 {offsets = [0, 0], sizes = [8, 32], strides = [1, 1]} : vector<8x64xf32> to vector<8x32xf32>
    %517 = vector.extract_strided_slice %515 {offsets = [0, 32], sizes = [8, 32], strides = [1, 1]} : vector<8x64xf32> to vector<8x32xf32>
    %518 = vector.extract_strided_slice %507 {offsets = [0, 64], sizes = [8, 32], strides = [1, 1]} : vector<8x96xf32> to vector<8x32xf32>
    %519 = vector.extract_strided_slice %506 {offsets = [0, 64], sizes = [8, 32], strides = [1, 1]} : vector<8x96xf32> to vector<8x32xf32>
    %520 = arith.mulf %516, %519 : vector<8x32xf32>
    %521 = arith.addf %518, %520 : vector<8x32xf32>
    %522 = math.tanh %521 : vector<8x32xf32>
    %cst_147 = arith.constant 1.000000e+00 : f32
    %523 = vector.broadcast %cst_147 : f32 to vector<8x32xf32>
    %524 = arith.subf %523, %517 : vector<8x32xf32>
    %525 = arith.mulf %524, %522 : vector<8x32xf32>
    %526 = arith.mulf %517, %454 : vector<8x32xf32>
    %527 = arith.addf %525, %526 : vector<8x32xf32>
    %cst_148 = arith.constant dense<0.000000e+00> : vector<8x96xf32>
    %528 = tpu.matmul %454, %39, %cst_148 {dimension_numbers = #tpu.dot_dimension_numbers<[1], [0], [0], [1], [0, 0, 1, 1], [], []>} : vector<8x32xf32>, vector<32x96xf32>, vector<8x96xf32> -> vector<8x96xf32>
    %529 = arith.addf %528, %48 : vector<8x96xf32>
    %cst_149 = arith.constant dense<0.000000e+00> : vector<8x96xf32>
    %530 = tpu.matmul %478, %40, %cst_149 {dimension_numbers = #tpu.dot_dimension_numbers<[1], [0], [0], [1], [0, 0, 1, 1], [], []>} : vector<8x32xf32>, vector<32x96xf32>, vector<8x96xf32> -> vector<8x96xf32>
    %531 = arith.addf %530, %51 : vector<8x96xf32>
    %532 = vector.extract_strided_slice %529 {offsets = [0, 0], sizes = [8, 64], strides = [1, 1]} : vector<8x96xf32> to vector<8x64xf32>
    %533 = vector.extract_strided_slice %531 {offsets = [0, 0], sizes = [8, 64], strides = [1, 1]} : vector<8x96xf32> to vector<8x64xf32>
    %534 = arith.addf %532, %533 : vector<8x64xf32>
    %535 = arith.negf %534 : vector<8x64xf32>
    %536 = math.exp %535 : vector<8x64xf32>
    %cst_150 = arith.constant 1.000000e+00 : f32
    %537 = vector.broadcast %cst_150 : f32 to vector<8x64xf32>
    %538 = arith.addf %537, %536 : vector<8x64xf32>
    %539 = arith.divf %537, %538 : vector<8x64xf32>
    %540 = vector.extract_strided_slice %539 {offsets = [0, 0], sizes = [8, 32], strides = [1, 1]} : vector<8x64xf32> to vector<8x32xf32>
    %541 = vector.extract_strided_slice %539 {offsets = [0, 32], sizes = [8, 32], strides = [1, 1]} : vector<8x64xf32> to vector<8x32xf32>
    %542 = vector.extract_strided_slice %529 {offsets = [0, 64], sizes = [8, 32], strides = [1, 1]} : vector<8x96xf32> to vector<8x32xf32>
    %543 = vector.extract_strided_slice %531 {offsets = [0, 64], sizes = [8, 32], strides = [1, 1]} : vector<8x96xf32> to vector<8x32xf32>
    %544 = arith.mulf %540, %543 : vector<8x32xf32>
    %545 = arith.addf %542, %544 : vector<8x32xf32>
    %546 = math.tanh %545 : vector<8x32xf32>
    %cst_151 = arith.constant 1.000000e+00 : f32
    %547 = vector.broadcast %cst_151 : f32 to vector<8x32xf32>
    %548 = arith.subf %547, %541 : vector<8x32xf32>
    %549 = arith.mulf %548, %546 : vector<8x32xf32>
    %550 = arith.mulf %541, %478 : vector<8x32xf32>
    %551 = arith.addf %549, %550 : vector<8x32xf32>
    %552 = arith.addf %381, %478 : vector<8x32xf32>
    %cst_152 = arith.constant dense<0.000000e+00> : vector<8x96xf32>
    %553 = tpu.matmul %552, %41, %cst_152 {dimension_numbers = #tpu.dot_dimension_numbers<[1], [0], [0], [1], [0, 0, 1, 1], [], []>} : vector<8x32xf32>, vector<32x96xf32>, vector<8x96xf32> -> vector<8x96xf32>
    %554 = arith.addf %553, %54 : vector<8x96xf32>
    %cst_153 = arith.constant dense<0.000000e+00> : vector<8x96xf32>
    %555 = tpu.matmul %503, %42, %cst_153 {dimension_numbers = #tpu.dot_dimension_numbers<[1], [0], [0], [1], [0, 0, 1, 1], [], []>} : vector<8x32xf32>, vector<32x96xf32>, vector<8x96xf32> -> vector<8x96xf32>
    %556 = arith.addf %555, %57 : vector<8x96xf32>
    %557 = vector.extract_strided_slice %554 {offsets = [0, 0], sizes = [8, 64], strides = [1, 1]} : vector<8x96xf32> to vector<8x64xf32>
    %558 = vector.extract_strided_slice %556 {offsets = [0, 0], sizes = [8, 64], strides = [1, 1]} : vector<8x96xf32> to vector<8x64xf32>
    %559 = arith.addf %557, %558 : vector<8x64xf32>
    %560 = arith.negf %559 : vector<8x64xf32>
    %561 = math.exp %560 : vector<8x64xf32>
    %cst_154 = arith.constant 1.000000e+00 : f32
    %562 = vector.broadcast %cst_154 : f32 to vector<8x64xf32>
    %563 = arith.addf %562, %561 : vector<8x64xf32>
    %564 = arith.divf %562, %563 : vector<8x64xf32>
    %565 = vector.extract_strided_slice %564 {offsets = [0, 0], sizes = [8, 32], strides = [1, 1]} : vector<8x64xf32> to vector<8x32xf32>
    %566 = vector.extract_strided_slice %564 {offsets = [0, 32], sizes = [8, 32], strides = [1, 1]} : vector<8x64xf32> to vector<8x32xf32>
    %567 = vector.extract_strided_slice %554 {offsets = [0, 64], sizes = [8, 32], strides = [1, 1]} : vector<8x96xf32> to vector<8x32xf32>
    %568 = vector.extract_strided_slice %556 {offsets = [0, 64], sizes = [8, 32], strides = [1, 1]} : vector<8x96xf32> to vector<8x32xf32>
    %569 = arith.mulf %565, %568 : vector<8x32xf32>
    %570 = arith.addf %567, %569 : vector<8x32xf32>
    %571 = math.tanh %570 : vector<8x32xf32>
    %cst_155 = arith.constant 1.000000e+00 : f32
    %572 = vector.broadcast %cst_155 : f32 to vector<8x32xf32>
    %573 = arith.subf %572, %566 : vector<8x32xf32>
    %574 = arith.mulf %573, %571 : vector<8x32xf32>
    %575 = arith.mulf %566, %503 : vector<8x32xf32>
    %576 = arith.addf %574, %575 : vector<8x32xf32>
    %c40_156 = arith.constant 40 : index
    %c0_157 = arith.constant 0 : index
    %577 = vector.load %arg25[%c40_156, %c0_157] : memref<64x32xf32, #tpu.memory_space<vmem>>, vector<8x32xf32>
    tpu.vector_store %arg25[%c40_156, %c0_157], %576 {strides = array<i32>} : memref<64x32xf32, #tpu.memory_space<vmem>>, vector<8x32xf32>,
    %cst_158 = arith.constant dense<0.000000e+00> : vector<8x96xf32>
    %578 = tpu.matmul %527, %39, %cst_158 {dimension_numbers = #tpu.dot_dimension_numbers<[1], [0], [0], [1], [0, 0, 1, 1], [], []>} : vector<8x32xf32>, vector<32x96xf32>, vector<8x96xf32> -> vector<8x96xf32>
    %579 = arith.addf %578, %48 : vector<8x96xf32>
    %cst_159 = arith.constant dense<0.000000e+00> : vector<8x96xf32>
    %580 = tpu.matmul %551, %40, %cst_159 {dimension_numbers = #tpu.dot_dimension_numbers<[1], [0], [0], [1], [0, 0, 1, 1], [], []>} : vector<8x32xf32>, vector<32x96xf32>, vector<8x96xf32> -> vector<8x96xf32>
    %581 = arith.addf %580, %51 : vector<8x96xf32>
    %582 = vector.extract_strided_slice %579 {offsets = [0, 0], sizes = [8, 64], strides = [1, 1]} : vector<8x96xf32> to vector<8x64xf32>
    %583 = vector.extract_strided_slice %581 {offsets = [0, 0], sizes = [8, 64], strides = [1, 1]} : vector<8x96xf32> to vector<8x64xf32>
    %584 = arith.addf %582, %583 : vector<8x64xf32>
    %585 = arith.negf %584 : vector<8x64xf32>
    %586 = math.exp %585 : vector<8x64xf32>
    %cst_160 = arith.constant 1.000000e+00 : f32
    %587 = vector.broadcast %cst_160 : f32 to vector<8x64xf32>
    %588 = arith.addf %587, %586 : vector<8x64xf32>
    %589 = arith.divf %587, %588 : vector<8x64xf32>
    %590 = vector.extract_strided_slice %589 {offsets = [0, 0], sizes = [8, 32], strides = [1, 1]} : vector<8x64xf32> to vector<8x32xf32>
    %591 = vector.extract_strided_slice %589 {offsets = [0, 32], sizes = [8, 32], strides = [1, 1]} : vector<8x64xf32> to vector<8x32xf32>
    %592 = vector.extract_strided_slice %579 {offsets = [0, 64], sizes = [8, 32], strides = [1, 1]} : vector<8x96xf32> to vector<8x32xf32>
    %593 = vector.extract_strided_slice %581 {offsets = [0, 64], sizes = [8, 32], strides = [1, 1]} : vector<8x96xf32> to vector<8x32xf32>
    %594 = arith.mulf %590, %593 : vector<8x32xf32>
    %595 = arith.addf %592, %594 : vector<8x32xf32>
    %596 = math.tanh %595 : vector<8x32xf32>
    %cst_161 = arith.constant 1.000000e+00 : f32
    %597 = vector.broadcast %cst_161 : f32 to vector<8x32xf32>
    %598 = arith.subf %597, %591 : vector<8x32xf32>
    %599 = arith.mulf %598, %596 : vector<8x32xf32>
    %600 = arith.mulf %591, %551 : vector<8x32xf32>
    %601 = arith.addf %599, %600 : vector<8x32xf32>
    %602 = arith.addf %454, %551 : vector<8x32xf32>
    %cst_162 = arith.constant dense<0.000000e+00> : vector<8x96xf32>
    %603 = tpu.matmul %602, %41, %cst_162 {dimension_numbers = #tpu.dot_dimension_numbers<[1], [0], [0], [1], [0, 0, 1, 1], [], []>} : vector<8x32xf32>, vector<32x96xf32>, vector<8x96xf32> -> vector<8x96xf32>
    %604 = arith.addf %603, %54 : vector<8x96xf32>
    %cst_163 = arith.constant dense<0.000000e+00> : vector<8x96xf32>
    %605 = tpu.matmul %576, %42, %cst_163 {dimension_numbers = #tpu.dot_dimension_numbers<[1], [0], [0], [1], [0, 0, 1, 1], [], []>} : vector<8x32xf32>, vector<32x96xf32>, vector<8x96xf32> -> vector<8x96xf32>
    %606 = arith.addf %605, %57 : vector<8x96xf32>
    %607 = vector.extract_strided_slice %604 {offsets = [0, 0], sizes = [8, 64], strides = [1, 1]} : vector<8x96xf32> to vector<8x64xf32>
    %608 = vector.extract_strided_slice %606 {offsets = [0, 0], sizes = [8, 64], strides = [1, 1]} : vector<8x96xf32> to vector<8x64xf32>
    %609 = arith.addf %607, %608 : vector<8x64xf32>
    %610 = arith.negf %609 : vector<8x64xf32>
    %611 = math.exp %610 : vector<8x64xf32>
    %cst_164 = arith.constant 1.000000e+00 : f32
    %612 = vector.broadcast %cst_164 : f32 to vector<8x64xf32>
    %613 = arith.addf %612, %611 : vector<8x64xf32>
    %614 = arith.divf %612, %613 : vector<8x64xf32>
    %615 = vector.extract_strided_slice %614 {offsets = [0, 0], sizes = [8, 32], strides = [1, 1]} : vector<8x64xf32> to vector<8x32xf32>
    %616 = vector.extract_strided_slice %614 {offsets = [0, 32], sizes = [8, 32], strides = [1, 1]} : vector<8x64xf32> to vector<8x32xf32>
    %617 = vector.extract_strided_slice %604 {offsets = [0, 64], sizes = [8, 32], strides = [1, 1]} : vector<8x96xf32> to vector<8x32xf32>
    %618 = vector.extract_strided_slice %606 {offsets = [0, 64], sizes = [8, 32], strides = [1, 1]} : vector<8x96xf32> to vector<8x32xf32>
    %619 = arith.mulf %615, %618 : vector<8x32xf32>
    %620 = arith.addf %617, %619 : vector<8x32xf32>
    %621 = math.tanh %620 : vector<8x32xf32>
    %cst_165 = arith.constant 1.000000e+00 : f32
    %622 = vector.broadcast %cst_165 : f32 to vector<8x32xf32>
    %623 = arith.subf %622, %616 : vector<8x32xf32>
    %624 = arith.mulf %623, %621 : vector<8x32xf32>
    %625 = arith.mulf %616, %576 : vector<8x32xf32>
    %626 = arith.addf %624, %625 : vector<8x32xf32>
    %c48_166 = arith.constant 48 : index
    %c0_167 = arith.constant 0 : index
    %627 = vector.load %arg25[%c48_166, %c0_167] : memref<64x32xf32, #tpu.memory_space<vmem>>, vector<8x32xf32>
    tpu.vector_store %arg25[%c48_166, %c0_167], %626 {strides = array<i32>} : memref<64x32xf32, #tpu.memory_space<vmem>>, vector<8x32xf32>,
    %628 = arith.addf %527, %601 : vector<8x32xf32>
    %cst_168 = arith.constant dense<0.000000e+00> : vector<8x96xf32>
    %629 = tpu.matmul %628, %41, %cst_168 {dimension_numbers = #tpu.dot_dimension_numbers<[1], [0], [0], [1], [0, 0, 1, 1], [], []>} : vector<8x32xf32>, vector<32x96xf32>, vector<8x96xf32> -> vector<8x96xf32>
    %630 = arith.addf %629, %54 : vector<8x96xf32>
    %cst_169 = arith.constant dense<0.000000e+00> : vector<8x96xf32>
    %631 = tpu.matmul %626, %42, %cst_169 {dimension_numbers = #tpu.dot_dimension_numbers<[1], [0], [0], [1], [0, 0, 1, 1], [], []>} : vector<8x32xf32>, vector<32x96xf32>, vector<8x96xf32> -> vector<8x96xf32>
    %632 = arith.addf %631, %57 : vector<8x96xf32>
    %633 = vector.extract_strided_slice %630 {offsets = [0, 0], sizes = [8, 64], strides = [1, 1]} : vector<8x96xf32> to vector<8x64xf32>
    %634 = vector.extract_strided_slice %632 {offsets = [0, 0], sizes = [8, 64], strides = [1, 1]} : vector<8x96xf32> to vector<8x64xf32>
    %635 = arith.addf %633, %634 : vector<8x64xf32>
    %636 = arith.negf %635 : vector<8x64xf32>
    %637 = math.exp %636 : vector<8x64xf32>
    %cst_170 = arith.constant 1.000000e+00 : f32
    %638 = vector.broadcast %cst_170 : f32 to vector<8x64xf32>
    %639 = arith.addf %638, %637 : vector<8x64xf32>
    %640 = arith.divf %638, %639 : vector<8x64xf32>
    %641 = vector.extract_strided_slice %640 {offsets = [0, 0], sizes = [8, 32], strides = [1, 1]} : vector<8x64xf32> to vector<8x32xf32>
    %642 = vector.extract_strided_slice %640 {offsets = [0, 32], sizes = [8, 32], strides = [1, 1]} : vector<8x64xf32> to vector<8x32xf32>
    %643 = vector.extract_strided_slice %630 {offsets = [0, 64], sizes = [8, 32], strides = [1, 1]} : vector<8x96xf32> to vector<8x32xf32>
    %644 = vector.extract_strided_slice %632 {offsets = [0, 64], sizes = [8, 32], strides = [1, 1]} : vector<8x96xf32> to vector<8x32xf32>
    %645 = arith.mulf %641, %644 : vector<8x32xf32>
    %646 = arith.addf %643, %645 : vector<8x32xf32>
    %647 = math.tanh %646 : vector<8x32xf32>
    %cst_171 = arith.constant 1.000000e+00 : f32
    %648 = vector.broadcast %cst_171 : f32 to vector<8x32xf32>
    %649 = arith.subf %648, %642 : vector<8x32xf32>
    %650 = arith.mulf %649, %647 : vector<8x32xf32>
    %651 = arith.mulf %642, %626 : vector<8x32xf32>
    %652 = arith.addf %650, %651 : vector<8x32xf32>
    %c56_172 = arith.constant 56 : index
    %c0_173 = arith.constant 0 : index
    %653 = vector.load %arg25[%c56_172, %c0_173] : memref<64x32xf32, #tpu.memory_space<vmem>>, vector<8x32xf32>
    tpu.vector_store %arg25[%c56_172, %c0_173], %652 {strides = array<i32>} : memref<64x32xf32, #tpu.memory_space<vmem>>, vector<8x32xf32>,
    %654 = vector.extract_strided_slice %527 {offsets = [0, 0], sizes = [2, 32], strides = [1, 1]} : vector<8x32xf32> to vector<2x32xf32>
    %c0_174 = arith.constant 0 : index
    %c0_175 = arith.constant 0 : index
    %c0_176 = arith.constant 0 : index
    %655 = vector.load %arg21[%c0_174, %c0_175, %c0_176] : memref<1x2x32xf32, #tpu.memory_space<vmem>>, vector<1x2x32xf32>
    %656 = vector.shape_cast %655 : vector<1x2x32xf32> to vector<2x32xf32>
    %657 = vector.shape_cast %654 : vector<2x32xf32> to vector<1x2x32xf32>
    tpu.vector_store %arg21[%c0_174, %c0_175, %c0_176], %657 {strides = array<i32>} : memref<1x2x32xf32, #tpu.memory_space<vmem>>, vector<1x2x32xf32>,
    %658 = vector.extract_strided_slice %601 {offsets = [0, 0], sizes = [2, 32], strides = [1, 1]} : vector<8x32xf32> to vector<2x32xf32>
    %c0_177 = arith.constant 0 : index
    %c0_178 = arith.constant 0 : index
    %c0_179 = arith.constant 0 : index
    %659 = vector.load %arg22[%c0_177, %c0_178, %c0_179] : memref<1x2x32xf32, #tpu.memory_space<vmem>>, vector<1x2x32xf32>
    %660 = vector.shape_cast %659 : vector<1x2x32xf32> to vector<2x32xf32>
    %661 = vector.shape_cast %658 : vector<2x32xf32> to vector<1x2x32xf32>
    tpu.vector_store %arg22[%c0_177, %c0_178, %c0_179], %661 {strides = array<i32>} : memref<1x2x32xf32, #tpu.memory_space<vmem>>, vector<1x2x32xf32>,
    %662 = vector.extract_strided_slice %652 {offsets = [0, 0], sizes = [2, 32], strides = [1, 1]} : vector<8x32xf32> to vector<2x32xf32>
    %c0_180 = arith.constant 0 : index
    %c0_181 = arith.constant 0 : index
    %c0_182 = arith.constant 0 : index
    %663 = vector.load %arg23[%c0_180, %c0_181, %c0_182] : memref<1x2x32xf32, #tpu.memory_space<vmem>>, vector<1x2x32xf32>
    %664 = vector.shape_cast %663 : vector<1x2x32xf32> to vector<2x32xf32>
    %665 = vector.shape_cast %662 : vector<2x32xf32> to vector<1x2x32xf32>
    tpu.vector_store %arg23[%c0_180, %c0_181, %c0_182], %665 {strides = array<i32>} : memref<1x2x32xf32, #tpu.memory_space<vmem>>, vector<1x2x32xf32>,
    %c0_183 = arith.constant 0 : index
    %c0_184 = arith.constant 0 : index
    %666 = tpu.strided_load %arg25[%c0_183, %c0_184] {strides = array<i32: 8, 1>} : memref<64x32xf32, #tpu.memory_space<vmem>>, vector<8x32xf32>
    %c0_185 = arith.constant 0 : index
    %c0_186 = arith.constant 0 : index
    %667 = vector.load %arg20[%c0_185, %c0_186] : memref<16x32xf32, #tpu.memory_space<vmem>>, vector<8x32xf32>
    tpu.vector_store %arg20[%c0_185, %c0_186], %666 {strides = array<i32>} : memref<16x32xf32, #tpu.memory_space<vmem>>, vector<8x32xf32>,
    %c1_187 = arith.constant 1 : index
    %c0_188 = arith.constant 0 : index
    %668 = tpu.strided_load %arg25[%c1_187, %c0_188] {strides = array<i32: 8, 1>} : memref<64x32xf32, #tpu.memory_space<vmem>>, vector<8x32xf32>
    %c8_189 = arith.constant 8 : index
    %c0_190 = arith.constant 0 : index
    %669 = vector.load %arg20[%c8_189, %c0_190] : memref<16x32xf32, #tpu.memory_space<vmem>>, vector<8x32xf32>
    tpu.vector_store %arg20[%c8_189, %c0_190], %668 {strides = array<i32>} : memref<16x32xf32, #tpu.memory_space<vmem>>, vector<8x32xf32>,
    return
  }
}

</mosaic_0001>

<bundles_post_ra>
// kernel: attention_thingy_forward.1
= control target key start
LH: loop header
LB: loop body
LE: loop exit
PB: predicated region body
PF: predicated region fallthrough
CT: control target
= control target key end

     0   :  { %s7052_s0 = inlined_call_operand.hbm [shape: f32[16,16], index: 0, kind: input, shape index: {}]   ;;  %s7053_s1 = inlined_call_operand.vmem [shape: f32[16,16], index: 1, kind: input, shape index: {}]   ;;  %s7054_s2 = inlined_call_operand.hbm [shape: f32[1,16], index: 2, kind: input, shape index: {}]   ;;  %s7055_s3 = inlined_call_operand.vmem [shape: f32[16,32], index: 3, kind: input, shape index: {}]   ;;  %s7056_s4 = inlined_call_operand.vmem [shape: f32[1,32], index: 4, kind: input, shape index: {}]   ;;  %s7057_s5 = inlined_call_operand.hbm [shape: f32[32,96], index: 5, kind: input, shape index: {}]   ;;  %s7058_s6 = inlined_call_operand.hbm [shape: f32[32,96], index: 6, kind: input, shape index: {}]   ;;  %s7059_s7 = inlined_call_operand.hbm [shape: f32[1,96], index: 7, kind: input, shape index: {}]   ;;  %s7060_s8 = inlined_call_operand.hbm [shape: f32[1,96], index: 8, kind: input, shape index: {}]   ;;  %s7061_s9 = inlined_call_operand.vmem [shape: f32[32,96], index: 9, kind: input, shape index: {}]   ;;  %s7062_s10 = inlined_call_operand.hbm [shape: f32[32,96], index: 10, kind: input, shape index: {}]   ;;  %s7063_s11 = inlined_call_operand.hbm [shape: f32[1,96], index: 11, kind: input, shape index: {}]   ;;  %s7064_s12 = inlined_call_operand.hbm [shape: f32[1,96], index: 12, kind: input, shape index: {}]   ;;  %s7065_s13 = inlined_call_operand.hbm [shape: f32[32,96], index: 13, kind: input, shape index: {}]   ;;  %s7066_s14 = inlined_call_operand.hbm [shape: f32[32,96], index: 14, kind: input, shape index: {}]   ;;  %s7067_s15 = inlined_call_operand.hbm [shape: f32[1,96], index: 15, kind: input, shape index: {}]   ;;  %s7068_s16 = inlined_call_operand.hbm [shape: f32[1,96], index: 16, kind: input, shape index: {}]   ;;  %s7069_s17 = inlined_call_operand.vmem [shape: f32[1,2,32], index: 17, kind: input, shape index: {}, may-alias: {17,21}]   ;;  %s7070_s18 = inlined_call_operand.vmem [shape: f32[1,2,32], index: 18, kind: input, shape index: {}, may-alias: {18,22}]   ;;  %s7071_s19 = inlined_call_operand.vmem [shape: f32[1,2,32], index: 19, kind: input, shape index: {}, may-alias: {19,23}]   ;;  %s7072_s20 = inlined_call_operand.hbm [shape: f32[16,32], index: 20, kind: output, shape index: {0}]   ;;  %s7073_s21 = inlined_call_operand.vmem [shape: f32[1,2,32], index: 21, kind: output, shape index: {1}, may-alias: {17,21}]   ;;  %s7074_s22 = inlined_call_operand.vmem [shape: f32[1,2,32], index: 22, kind: output, shape index: {2}, may-alias: {18,22}]   ;;  %s7075_s23 = inlined_call_operand.vmem [shape: f32[1,2,32], index: 23, kind: output, shape index: {3}, may-alias: {19,23}]  }
   0x1   :  { %7084 = sst [smem:[#allocation34_spill]] %s7052_s0 }
   0x2   :  { %7085 = sst [smem:[#allocation35_spill]] %s7053_s1 }
   0x3   :  { %7086 = sst [smem:[#allocation36_spill]] %s7054_s2 }
   0x4   :  { %7087 = sst [smem:[#allocation37_spill]] %s7055_s3 }
   0x5   :  { %7088 = sst [smem:[#allocation38_spill]] %s7056_s4 }
   0x6   :  { %7089 = sst [smem:[#allocation39_spill]] %s7057_s5 }
   0x7   :  { %7090 = sst [smem:[#allocation40_spill]] %s7058_s6 }
   0x8   :  { %7091 = sst [smem:[#allocation41_spill]] %s7059_s7 }
   0x9   :  { %7092 = sst [smem:[#allocation42_spill]] %s7072_s20 }
   0xa   :  { %29 = vsyncpa [#allocation5], 0 }
   0xb   :  { %30 = vsyncpa [#allocation8], 0 }
   0xc   :  { %31 = vsyncpa [#allocation11], 0 }
   0xd   :  { %32 = vsyncpa [#allocation14], 0 }
   0xe   :  { %33 = vsyncpa [#allocation17], 0 }
   0xf   :  { %34 = vsyncpa [#allocation20], 0 }
  0x10   :  { %35 = vsyncpa [#allocation23], 0 }
  0x11   :  { %36 = vsyncpa [#allocation6], 0  ;;  %s6011_s4 = smov [#allocation7]   ;;  %s7093_s5 = sld [smem:[#allocation36_spill]] }
  0x12   :  { %s57_s30 = sshll.u32 %s6011_s4, 4  ;;  %s58_s30 = int_to_ptr.vmem [resolvable:$true] %s57_s30 }
  0x17   :  { %s5687_s1 = scalar_lea.hbm %s7093_s5, 16 }
  0x18   :  { %p5688_p0 = scmp.ne.s32.totalorder %s7093_s5, %s5687_s1  ;;  %p5691_p1 = scmp.lt.u32.totalorder %s5687_s1, %s7093_s5 }
  0x1a   :  { %p5693_p2 = pnand %p5691_p1, %p5688_p0 }
  0x1c   :  { %5696 = shalt.err (!%p5693_p2)
}
  0x1d   :  { %s5697_s7 = scalar_lea.vmem %s58_s30, 16  ;;  %s5701_s28 = scalar_lea.vmem %s58_s30, 32 }
  0x1e   :  { %p5698_p3 = scmp.ne.s32.totalorder %s58_s30, %s5697_s7  ;;  %p5702_p4 = scmp.lt.s32.totalorder %s58_s30, %s58_s30 }
  0x1f   :  { %p5703_p5 = scmp.lt.s32.totalorder %s5701_s28, %s5697_s7 }
  0x21   :  { %p5704_p6 = por %p5703_p5, %p5702_p4 }
  0x23   :  { %p5705_p7 = pnand %p5704_p6, %p5698_p3 }
  0x25   :  { %5708 = shalt.err (!%p5705_p7)
}
  0x26   :  { %60 = dma.hbm_to_vmem [thread:$0]  %s7093_s5, 16, %s58_s30, [#allocation8]  }
  0x27   :  { %s6012_s0 = smov [#allocation10]   ;;  %s6013_s24 = smov [#allocation13]  }
  0x28   :  { %s82_s4 = sshll.u32 %s6012_s0, 4  ;;  %s105_s25 = sshll.u32 %s6013_s24, 4  ;;  %s83_s4 = int_to_ptr.vmem [resolvable:$true] %s82_s4  ;;  %s106_s25 = int_to_ptr.vmem [resolvable:$true] %s105_s25 }
  0x29   :  { %s7094_s2 = sld [smem:[#allocation40_spill]] }
  0x2f   :  { %s5709_s6 = scalar_lea.hbm %s7094_s2, 512 }
  0x30   :  { %p5710_p8 = scmp.ne.s32.totalorder %s7094_s2, %s5709_s6  ;;  %p5713_p9 = scmp.lt.u32.totalorder %s5709_s6, %s7094_s2 }
  0x32   :  { %p5715_p10 = pnand %p5713_p9, %p5710_p8 }
  0x34   :  { %5718 = shalt.err (!%p5715_p10)
}
  0x35   :  { %s5719_s30 = scalar_lea.vmem %s83_s4, 512  ;;  %p5724_p12 = scmp.lt.s32.totalorder %s83_s4, %s83_s4 }
  0x36   :  { %p5720_p11 = scmp.ne.s32.totalorder %s83_s4, %s5719_s30  ;;  %p5725_p13 = scmp.lt.s32.totalorder %s5719_s30, %s5719_s30 }
  0x38   :  { %p5726_p0 = por %p5725_p13, %p5724_p12 }
  0x3a   :  { %p5727_p1 = pnand %p5726_p0, %p5720_p11 }
  0x3c   :  { %5730 = shalt.err (!%p5727_p1)
}
  0x3d   :  { %s6014_s5 = smov 128   ;;  %s6015_s29 = smov 8  }
  0x3e   :  { %88 = dma.hbm_to_vmem [thread:$0]  %s7094_s2, 512, %s83_s4, [#allocation11], %s6014_s5, %s6014_s5, %s6015_s29  }
  0x3f   :  { %s5731_s1 = scalar_lea.hbm %s7060_s8, 16 }
  0x40   :  { %p5732_p2 = scmp.ne.s32.totalorder %s7060_s8, %s5731_s1  ;;  %p5735_p3 = scmp.lt.u32.totalorder %s5731_s1, %s7060_s8 }
  0x42   :  { %p5737_p4 = pnand %p5735_p3, %p5732_p2 }
  0x44   :  { %5740 = shalt.err (!%p5737_p4)
}
  0x45   :  { %s5741_s28 = scalar_lea.vmem %s106_s25, 16  ;;  %s5745_s30 = scalar_lea.vmem %s106_s25, 32 }
  0x46   :  { %p5742_p5 = scmp.ne.s32.totalorder %s106_s25, %s5741_s28  ;;  %p5746_p6 = scmp.lt.s32.totalorder %s106_s25, %s106_s25 }
  0x47   :  { %p5747_p7 = scmp.lt.s32.totalorder %s5745_s30, %s5741_s28 }
  0x49   :  { %p5748_p8 = por %p5747_p7, %p5746_p6 }
  0x4b   :  { %p5749_p9 = pnand %p5748_p8, %p5742_p5 }
  0x4d   :  { %5752 = shalt.err (!%p5749_p9)
}
  0x4e   :  { %108 = dma.hbm_to_vmem [thread:$0]  %s7060_s8, 16, %s106_s25, [#allocation14]  }
  0x4f   :  { %s6016_s20 = smov [#allocation16]   ;;  %s6017_s0 = smov [#allocation19]  }
  0x50   :  { %s129_s3 = sshll.u32 %s6016_s20, 4  ;;  %s148_s24 = sshll.u32 %s6017_s0, 4  ;;  %s130_s3 = int_to_ptr.vmem [resolvable:$true] %s129_s3  ;;  %s149_s24 = int_to_ptr.vmem [resolvable:$true] %s148_s24 }
  0x51   :  { %s5753_s6 = scalar_lea.hbm %s7063_s11, 16 }
  0x52   :  { %p5754_p10 = scmp.ne.s32.totalorder %s7063_s11, %s5753_s6  ;;  %p5757_p11 = scmp.lt.u32.totalorder %s5753_s6, %s7063_s11 }
  0x54   :  { %p5759_p12 = pnand %p5757_p11, %p5754_p10 }
  0x56   :  { %5762 = shalt.err (!%p5759_p12)
}
  0x57   :  { %s5763_s8 = scalar_lea.vmem %s130_s3, 16  ;;  %s5767_s25 = scalar_lea.vmem %s130_s3, 32 }
  0x58   :  { %p5764_p13 = scmp.ne.s32.totalorder %s130_s3, %s5763_s8  ;;  %p5768_p0 = scmp.lt.s32.totalorder %s130_s3, %s130_s3 }
  0x59   :  { %p5769_p1 = scmp.lt.s32.totalorder %s5767_s25, %s5763_s8 }
  0x5b   :  { %p5770_p2 = por %p5769_p1, %p5768_p0 }
  0x5d   :  { %p5771_p3 = pnand %p5770_p2, %p5764_p13 }
  0x5f   :  { %5774 = shalt.err (!%p5771_p3)
}
  0x60   :  { %132 = dma.hbm_to_vmem [thread:$0]  %s7063_s11, 16, %s130_s3, [#allocation17]  }
  0x61   :  { %s5775_s1 = scalar_lea.hbm %s7065_s13, 512 }
  0x62   :  { %p5776_p4 = scmp.ne.s32.totalorder %s7065_s13, %s5775_s1  ;;  %p5779_p5 = scmp.lt.u32.totalorder %s5775_s1, %s7065_s13 }
  0x64   :  { %p5781_p6 = pnand %p5779_p5, %p5776_p4 }
  0x66   :  { %5784 = shalt.err (!%p5781_p6)
}
  0x67   :  { %s5785_s28 = scalar_lea.vmem %s149_s24, 512  ;;  %p5790_p8 = scmp.lt.s32.totalorder %s149_s24, %s149_s24 }
  0x68   :  { %p5786_p7 = scmp.ne.s32.totalorder %s149_s24, %s5785_s28  ;;  %p5791_p9 = scmp.lt.s32.totalorder %s5785_s28, %s5785_s28 }
  0x6a   :  { %p5792_p10 = por %p5791_p9, %p5790_p8 }
  0x6c   :  { %p5793_p11 = pnand %p5792_p10, %p5786_p7 }
  0x6e   :  { %5796 = shalt.err (!%p5793_p11)
}
  0x6f   :  { %154 = dma.hbm_to_vmem [thread:$0]  %s7065_s13, 512, %s149_s24, [#allocation20], %s6014_s5, %s6014_s5, %s6015_s29  }
  0x70   :  { %s6018_s30 = smov [#allocation22]   ;;  %s6019_s25 = smov [#allocation4]  }
  0x71   :  { %s173_s8 = sshll.u32 %s6018_s30, 4  ;;  %s42_s4 = sshll.u32 %s6019_s25, 4  ;;  %s174_s8 = int_to_ptr.vmem [resolvable:$true] %s173_s8  ;;  %s43_s4 = int_to_ptr.vmem [resolvable:$true] %s42_s4 }
  0x72   :  { %s5797_s0 = scalar_lea.hbm %s7067_s15, 16 }
  0x73   :  { %p5798_p12 = scmp.ne.s32.totalorder %s7067_s15, %s5797_s0  ;;  %p5801_p13 = scmp.lt.u32.totalorder %s5797_s0, %s7067_s15 }
  0x75   :  { %p5803_p0 = pnand %p5801_p13, %p5798_p12 }
  0x77   :  { %5806 = shalt.err (!%p5803_p0)
}
  0x78   :  { %s5807_s13 = scalar_lea.vmem %s174_s8, 16  ;;  %s5811_s24 = scalar_lea.vmem %s174_s8, 32 }
  0x79   :  { %p5808_p1 = scmp.ne.s32.totalorder %s174_s8, %s5807_s13  ;;  %p5812_p2 = scmp.lt.s32.totalorder %s174_s8, %s174_s8 }
  0x7a   :  { %p5813_p3 = scmp.lt.s32.totalorder %s5811_s24, %s5807_s13 }
  0x7c   :  { %p5814_p4 = por %p5813_p3, %p5812_p2 }
  0x7e   :  { %p5815_p5 = pnand %p5814_p4, %p5808_p1 }
  0x80   :  { %5818 = shalt.err (!%p5815_p5)
}
  0x81   :  { %176 = dma.hbm_to_vmem [thread:$0]  %s7067_s15, 16, %s174_s8, [#allocation23]  }
  0x82   :  { %s7095_s30 = sld [smem:[#allocation34_spill]] }
  0x88   :  { %s5819_s25 = scalar_lea.hbm %s7095_s30, 256 }
  0x89   :  { %p5820_p6 = scmp.ne.s32.totalorder %s7095_s30, %s5819_s25  ;;  %p5823_p7 = scmp.lt.u32.totalorder %s5819_s25, %s7095_s30 }
  0x8b   :  { %p5825_p8 = pnand %p5823_p7, %p5820_p6 }
  0x8d   :  { %5828 = shalt.err (!%p5825_p8)
}
  0x8e   :  { %s5829_s26 = scalar_lea.vmem %s43_s4, 256  ;;  %p5834_p10 = scmp.lt.s32.totalorder %s43_s4, %s43_s4 }
  0x8f   :  { %p5830_p9 = scmp.ne.s32.totalorder %s43_s4, %s5829_s26  ;;  %p5835_p11 = scmp.lt.s32.totalorder %s5829_s26, %s5829_s26 }
  0x91   :  { %p5836_p12 = por %p5835_p11, %p5834_p10 }
  0x93   :  { %p5837_p13 = pnand %p5836_p12, %p5830_p9 }
  0x95   :  { %5840 = shalt.err (!%p5837_p13)
}
  0x96   :  { %48 = dma.hbm_to_vmem [thread:$0]  %s7095_s30, 256, %s43_s4, [#allocation5], %s6014_s5, %s6014_s5, %s6015_s29  }
  0x97   :  { %s6020_s6 = smov [#allocation9]   ;;  %s6021_s13 = smov [#allocation12]  }
  0x98   :  { %s70_s27 = sshll.u32 %s6020_s6, 4  ;;  %s95_s24 = sshll.u32 %s6021_s13, 4  ;;  %s71_s27 = int_to_ptr.vmem [resolvable:$true] %s70_s27  ;;  %s96_s24 = int_to_ptr.vmem [resolvable:$true] %s95_s24 }
  0x99   :  { %s7096_s11 = sld [smem:[#allocation39_spill]] }
  0x9f   :  { %s5841_s3 = scalar_lea.hbm %s7096_s11, 512 }
  0xa0   :  { %p5842_p0 = scmp.ne.s32.totalorder %s7096_s11, %s5841_s3  ;;  %p5845_p1 = scmp.lt.u32.totalorder %s5841_s3, %s7096_s11 }
  0xa2   :  { %p5847_p2 = pnand %p5845_p1, %p5842_p0 }
  0xa4   :  { %5850 = shalt.err (!%p5847_p2)
}
  0xa5   :  { %s5851_s4 = scalar_lea.vmem %s71_s27, 512  ;;  %p5856_p4 = scmp.lt.s32.totalorder %s71_s27, %s71_s27 }
  0xa6   :  { %p5852_p3 = scmp.ne.s32.totalorder %s71_s27, %s5851_s4  ;;  %p5857_p5 = scmp.lt.s32.totalorder %s5851_s4, %s5851_s4 }
  0xa8   :  { %p5858_p6 = por %p5857_p5, %p5856_p4 }
  0xaa   :  { %p5859_p7 = pnand %p5858_p6, %p5852_p3 }
  0xac   :  { %5862 = shalt.err (!%p5859_p7)
}
  0xad   :  { %76 = dma.hbm_to_vmem [thread:$0]  %s7096_s11, 512, %s71_s27, [#allocation8], %s6014_s5, %s6014_s5, %s6015_s29  }
  0xae   :  { %s7097_s8 = sld [smem:[#allocation41_spill]] }
  0xb4   :  { %s5863_s6 = scalar_lea.hbm %s7097_s8, 16 }
  0xb5   :  { %p5864_p8 = scmp.ne.s32.totalorder %s7097_s8, %s5863_s6  ;;  %p5867_p9 = scmp.lt.u32.totalorder %s5863_s6, %s7097_s8 }
  0xb7   :  { %p5869_p10 = pnand %p5867_p9, %p5864_p8 }
  0xb9   :  { %5872 = shalt.err (!%p5869_p10)
}
  0xba   :  { %s5873_s25 = scalar_lea.vmem %s96_s24, 16  ;;  %s5877_s2 = scalar_lea.vmem %s96_s24, 32 }
  0xbb   :  { %p5874_p11 = scmp.ne.s32.totalorder %s96_s24, %s5873_s25  ;;  %p5878_p12 = scmp.lt.s32.totalorder %s96_s24, %s96_s24 }
  0xbc   :  { %p5879_p13 = scmp.lt.s32.totalorder %s5877_s2, %s5873_s25 }
  0xbe   :  { %p5880_p0 = por %p5879_p13, %p5878_p12 }
  0xc0   :  { %p5881_p1 = pnand %p5880_p0, %p5874_p11 }
  0xc2   :  { %5884 = shalt.err (!%p5881_p1)
}
  0xc3   :  { %98 = dma.hbm_to_vmem [thread:$0]  %s7097_s8, 16, %s96_s24, [#allocation11]  }
  0xc4   :  { %s6022_s20 = smov [#allocation15]   ;;  %s6023_s4 = smov [#allocation18]  }
  0xc5   :  { %s116_s0 = sshll.u32 %s6022_s20, 4  ;;  %s139_s30 = sshll.u32 %s6023_s4, 4  ;;  %s117_s0 = int_to_ptr.vmem [resolvable:$true] %s116_s0  ;;  %s140_s30 = int_to_ptr.vmem [resolvable:$true] %s139_s30 }
  0xc6   :  { %s5885_s15 = scalar_lea.hbm %s7062_s10, 512 }
  0xc7   :  { %p5886_p2 = scmp.ne.s32.totalorder %s7062_s10, %s5885_s15  ;;  %p5889_p3 = scmp.lt.u32.totalorder %s5885_s15, %s7062_s10 }
  0xc9   :  { %p5891_p4 = pnand %p5889_p3, %p5886_p2 }
  0xcb   :  { %5894 = shalt.err (!%p5891_p4)
}
  0xcc   :  { %s5895_s24 = scalar_lea.vmem %s117_s0, 512  ;;  %p5900_p6 = scmp.lt.s32.totalorder %s117_s0, %s117_s0 }
  0xcd   :  { %p5896_p5 = scmp.ne.s32.totalorder %s117_s0, %s5895_s24  ;;  %p5901_p7 = scmp.lt.s32.totalorder %s5895_s24, %s5895_s24 }
  0xcf   :  { %p5902_p8 = por %p5901_p7, %p5900_p6 }
  0xd1   :  { %p5903_p9 = pnand %p5902_p8, %p5896_p5 }
  0xd3   :  { %5906 = shalt.err (!%p5903_p9)
}
  0xd4   :  { %122 = dma.hbm_to_vmem [thread:$0]  %s7062_s10, 512, %s117_s0, [#allocation14], %s6014_s5, %s6014_s5, %s6015_s29  }
  0xd5   :  { %s5907_s27 = scalar_lea.hbm %s7064_s12, 16 }
  0xd6   :  { %p5908_p10 = scmp.ne.s32.totalorder %s7064_s12, %s5907_s27  ;;  %p5911_p11 = scmp.lt.u32.totalorder %s5907_s27, %s7064_s12 }
  0xd8   :  { %p5913_p12 = pnand %p5911_p11, %p5908_p10 }
  0xda   :  { %5916 = shalt.err (!%p5913_p12)
}
  0xdb   :  { %s5917_s26 = scalar_lea.vmem %s140_s30, 16  ;;  %s5921_s15 = scalar_lea.vmem %s140_s30, 32 }
  0xdc   :  { %p5918_p13 = scmp.ne.s32.totalorder %s140_s30, %s5917_s26  ;;  %p5922_p0 = scmp.lt.s32.totalorder %s140_s30, %s140_s30 }
  0xdd   :  { %p5923_p1 = scmp.lt.s32.totalorder %s5921_s15, %s5917_s26 }
  0xdf   :  { %p5924_p2 = por %p5923_p1, %p5922_p0 }
  0xe1   :  { %p5925_p3 = pnand %p5924_p2, %p5918_p13 }
  0xe3   :  { %5928 = shalt.err (!%p5925_p3)
}
  0xe4   :  { %142 = dma.hbm_to_vmem [thread:$0]  %s7064_s12, 16, %s140_s30, [#allocation17]  }
  0xe5   :  { %s6024_s6 = smov [#allocation21]   ;;  %s6025_s7 = smov [#allocation24]  }
  0xe6   :  { %s160_s13 = sshll.u32 %s6024_s6, 4  ;;  %s183_s28 = sshll.u32 %s6025_s7, 4  ;;  %s161_s13 = int_to_ptr.vmem [resolvable:$true] %s160_s13  ;;  %s184_s28 = int_to_ptr.vmem [resolvable:$true] %s183_s28 }
  0xe7   :  { %s5929_s3 = scalar_lea.hbm %s7066_s14, 512 }
  0xe8   :  { %p5930_p4 = scmp.ne.s32.totalorder %s7066_s14, %s5929_s3  ;;  %p5933_p5 = scmp.lt.u32.totalorder %s5929_s3, %s7066_s14 }
  0xea   :  { %p5935_p6 = pnand %p5933_p5, %p5930_p4 }
  0xec   :  { %5938 = shalt.err (!%p5935_p6)
}
  0xed   :  { %s5939_s12 = scalar_lea.vmem %s161_s13, 512  ;;  %p5944_p8 = scmp.lt.s32.totalorder %s161_s13, %s161_s13 }
  0xee   :  { %p5940_p7 = scmp.ne.s32.totalorder %s161_s13, %s5939_s12  ;;  %p5945_p9 = scmp.lt.s32.totalorder %s5939_s12, %s5939_s12 }
  0xf0   :  { %p5946_p10 = por %p5945_p9, %p5944_p8 }
  0xf2   :  { %p5947_p11 = pnand %p5946_p10, %p5940_p7 }
  0xf4   :  { %5950 = shalt.err (!%p5947_p11)
}
  0xf5   :  { %166 = dma.hbm_to_vmem [thread:$0]  %s7066_s14, 512, %s161_s13, [#allocation20], %s6014_s5, %s6014_s5, %s6015_s29  }
  0xf6   :  { %s5951_s26 = scalar_lea.hbm %s7068_s16, 16 }
  0xf7   :  { %p5952_p12 = scmp.ne.s32.totalorder %s7068_s16, %s5951_s26  ;;  %p5955_p13 = scmp.lt.u32.totalorder %s5951_s26, %s7068_s16 }
  0xf9   :  { %p5957_p0 = pnand %p5955_p13, %p5952_p12 }
  0xfb   :  { %5960 = shalt.err (!%p5957_p0)
}
  0xfc   :  { %s5961_s7 = scalar_lea.vmem %s184_s28, 16  ;;  %s5965_s24 = scalar_lea.vmem %s184_s28, 32 }
  0xfd   :  { %p5962_p1 = scmp.ne.s32.totalorder %s184_s28, %s5961_s7  ;;  %p5966_p2 = scmp.lt.s32.totalorder %s184_s28, %s184_s28 }
  0xfe   :  { %p5967_p3 = scmp.lt.s32.totalorder %s5965_s24, %s5961_s7 }
 0x100   :  { %p5968_p4 = por %p5967_p3, %p5966_p2 }
 0x102   :  { %p5969_p5 = pnand %p5968_p4, %p5962_p1 }
 0x104   :  { %5972 = shalt.err (!%p5969_p5)
}
 0x105   :  { %186 = dma.hbm_to_vmem [thread:$0]  %s7068_s16, 16, %s184_s28, [#allocation23]  }
 0x106   :  { %5995 = dma.done.wait [#allocation5], 256  }
 0x107   :  { %5996 = vsyncadd [#allocation5], 4294967040 }
 0x108   :  { %5997 = dma.done.wait [#allocation8], 528  }
 0x109   :  { %5998 = vsyncadd [#allocation8], 4294966768 }
 0x10a   :  { %5999 = dma.done.wait [#allocation11], 528  }
 0x10b   :  { %6000 = vsyncadd [#allocation11], 4294966768 }
 0x10c   :  { %6001 = dma.done.wait [#allocation14], 528  }
 0x10d   :  { %6002 = vsyncadd [#allocation14], 4294966768 }
 0x10e   :  { %6003 = dma.done.wait [#allocation17], 32  }
 0x10f   :  { %6004 = vsyncadd [#allocation17], 4294967264 }
 0x110   :  { %6005 = dma.done.wait [#allocation20], 1024  }
 0x111   :  { %6006 = vsyncadd [#allocation20], 4294966272 }
 0x112   :  { %6007 = dma.done.wait [#allocation23], 32  }
 0x113   :  { %6008 = vsyncadd [#allocation23], 4294967264  ;;  %vm232_vm0 = vcmask 130048   ;;  %v6026_v0 = vmov 0.0   ;;  %vm242_vm1 = vcmask 123904   ;;  %s7098_s8 = sld [smem:[#allocation35_spill]] }
 0x114   :  { %233 = vst.msk [vmem:[#allocation2] sm:$0xff] %vm232_vm0, %v6026_v0  ;;  %234 = vst.msk [vmem:[#allocation2 + $0x8] sm:$0xff] %vm232_vm0, %v6026_v0  ;;  %v241_v3 = vld [vmem:[#allocation4] ss:$8 sm:$0x3]  ;;  %s7099_s11 = sld [smem:[#allocation37_spill]] }
 0x115   :  { %235 = vst.msk [vmem:[#allocation2 + $0x10] sm:$0xff] %vm232_vm0, %v6026_v0  ;;  %236 = vst.msk [vmem:[#allocation2 + $0x18] sm:$0xff] %vm232_vm0, %v6026_v0  ;;  %v245_v5 = vld [vmem:[#allocation4 + $0x1] ss:$8 sm:$0x3]  ;;  %v6027_v23 = vmov 0.0|0.0  }
 0x116   :  { %237 = vst.msk [vmem:[#allocation2 + $0x20] sm:$0xff] %vm232_vm0, %v6026_v0  ;;  %238 = vst.msk [vmem:[#allocation2 + $0x28] sm:$0xff] %vm232_vm0, %v6026_v0  ;;  %v248_v6 = vld [vmem:[#allocation4 + $0x2] ss:$8 sm:$0x3]  ;;  %v565_v24 = vld [vmem:[#allocation9] sm:$0xff] }
 0x117   :  { %239 = vst.msk [vmem:[#allocation2 + $0x30] sm:$0xff] %vm232_vm0, %v6026_v0  ;;  %240 = vst.msk [vmem:[#allocation2 + $0x38] sm:$0xff] %vm232_vm0, %v6026_v0  ;;  %v251_v7 = vld [vmem:[#allocation4 + $0x3] ss:$8 sm:$0x3]  ;;  %v566_v25 = vld [vmem:[#allocation9 + $0x8] sm:$0xff] }
 0x118   :  { %243 = vst.msk [vmem:[#allocation2] sm:$0x3] %vm242_vm1, %v241_v3  ;;  %246 = vst.msk [vmem:[#allocation2 + $0x8] sm:$0x3] %vm242_vm1, %v245_v5  ;;  %v567_v26 = vld [vmem:[#allocation9 + $0x10] sm:$0xff]  ;;  %v5268_v27 = vpack.c.bf16 %v566_v25, %v565_v24  ;;  %v568_v28 = vld [vmem:[#allocation9 + $0x18] sm:$0xff] }
 0x119   :  { %v273_v1 = vld [vmem:[%s7098_s8] sm:$0xff]  ;;  %v274_v2 = vld [vmem:[%s7098_s8 + $0x8] sm:$0xff]  ;;  %249 = vst.msk [vmem:[#allocation2 + $0x10] sm:$0x3] %vm242_vm1, %v248_v6  ;;  %252 = vst.msk [vmem:[#allocation2 + $0x18] sm:$0x3] %vm242_vm1, %v251_v7  ;;  %v5272_v29 = vpack.c.bf16 %v568_v28, %v567_v26 }
 0x11a   :  { %v5260_v4 = vpack.c.bf16 %v274_v2, %v273_v1  ;;  %v254_v8 = vld [vmem:[#allocation4 + $0x4] ss:$8 sm:$0x3]  ;;  %v257_v9 = vld [vmem:[#allocation4 + $0x5] ss:$8 sm:$0x3] }
 0x11b   :  { %255 = vst.msk [vmem:[#allocation2 + $0x20] sm:$0x3] %vm242_vm1, %v254_v8  ;;  %v260_v10 = vld [vmem:[#allocation4 + $0x6] ss:$8 sm:$0x3]  ;;  %v706_v34 = vld [vmem:[#allocation10] sm:$0xff] }
 0x11c   :  { %5261 = vmatprep.subr.bf16.mxu0 %v5260_v4  ;;  %258 = vst.msk [vmem:[#allocation2 + $0x28] sm:$0x3] %vm242_vm1, %v257_v9  ;;  %261 = vst.msk [vmem:[#allocation2 + $0x30] sm:$0x3] %vm242_vm1, %v260_v10  ;;  %v419_v20 = vld [vmem:[%s7099_s11] sm:$0xff]  ;;  %v420_v21 = vld [vmem:[%s7099_s11 + $0x8] sm:$0xff] }
 0x11d   :  { %5263 = vmatpush3.bf16.msra.mxu0 %v5260_v4  ;;  %v263_v11 = vld [vmem:[#allocation4 + $0x7] ss:$8 sm:$0x3]  ;;  %v5264_v22 = vpack.c.bf16 %v420_v21, %v419_v20  ;;  %v4440_v30 = vld [vmem:[#allocation7] ss:$0 sm:$0xff]  ;;  %v707_v35 = vld [vmem:[#allocation10 + $0x8] sm:$0xff] }
 0x11e   :  { %264 = vst.msk [vmem:[#allocation2 + $0x38] sm:$0x3] %vm242_vm1, %v263_v11  ;;  %5269 = vmatprep.subr.bf16.mxu0 %v5268_v27  ;;  %v6373_v39 = vpack.c.bf16 %v707_v35, %v706_v34  ;;  %v708_v43 = vld [vmem:[#allocation10 + $0x10] sm:$0xff]  ;;  %v709_v44 = vld [vmem:[#allocation10 + $0x18] sm:$0xff]  ;;  %v761_v61 = vld [vmem:[%s7069_s17] sm:$0x3] }
 0x11f   :  { %v265_v12 = vld [vmem:[#allocation2] sm:$0xff]  ;;  %v266_v13 = vld [vmem:[#allocation2 + $0x8] sm:$0xff]  ;;  %5265 = vmatprep.subr.bf16.mxu1 %v5264_v22  ;;  %v6378_v49 = vpack.c.bf16 %v709_v44, %v708_v43  ;;  %vm762_vm2 = vcmask 1041408   ;;  %vm6028_vm3 = vmmov 0   ;;  %vm576_vm4 = vcmask 261120   ;;  %s7100_s26 = sld [smem:[#allocation38_spill]] }
 0x120   :  { %4772 = vmatprep.mubr.msk.f32.mxu0 %vm232_vm0, %v265_v12  ;;  %v267_v14 = vld [vmem:[#allocation2 + $0x10] sm:$0xff]  ;;  %v268_v15 = vld [vmem:[#allocation2 + $0x18] sm:$0xff]  ;;  %5267 = vmatpush3.bf16.msra.mxu1 %v5264_v22  ;;  %v6395_v62 = vsel %vm762_vm2, %v761_v61, 0.0  ;;  %s6029_s15 = smov 64   ;;  %s6030_s28 = smov 96   ;;  %vm4388_vm5 = vcmask 254976  }
 0x121   :  { %4773 = vmatmul.mubr.msk.f32.vlgmr.msra.gmra.mrb[0].mxu0 %vm232_vm0, %v266_v13  ;;  %5276 = vmatprep.subr.bf16.mxu1 %v6027_v23  ;;  %v6413_v24 = vld [vmem:[#allocation13] ss:$0 sm:$0xff]  ;;  %s6031_s8 = smov 32   ;;  %s6032_s30 = smov [#allocation25]  }
 0x122   :  { %4775 = vmatprep.mubr.msk.f32.mxu0 %vm232_vm0, %v267_v14  ;;  %v269_v16 = vld [vmem:[#allocation2 + $0x20] sm:$0xff]  ;;  %5271 = vmatpush3.bf16.msra.mxu0 %v5268_v27  ;;  %s4410_s20 = sshll.u32 %s6032_s30, 4  ;;  %s4411_s20 = int_to_ptr.vmem [resolvable:$true] %s4410_s20 }
 0x123   :  { %v270_v17 = vld [vmem:[#allocation2 + $0x28] sm:$0xff]  ;;  %v271_v18 = vld [vmem:[#allocation2 + $0x30] sm:$0xff]  ;;  %5273 = vmatprep.subr.bf16.mxu0 %v5272_v29  ;;  %p5978_p7 = scmp.lt.s32.totalorder %s4411_s20, %s4411_s20 }
 0x125   :  { %4776 = vmatmul.mubr.msk.f32.gmra.mrb[2].mxu0 %vm232_vm0, %v268_v15  ;;  %v272_v19 = vld [vmem:[#allocation2 + $0x38] sm:$0xff]  ;;  %v4449_v63 = vld [vmem:[%s7100_s26] ss:$0 sm:$0xff] }
 0x126   :  { %4778 = vmatprep.mubr.msk.f32.mxu0 %vm232_vm0, %v269_v16  ;;  %5275 = vmatpush3.bf16.msra.mxu0 %v5272_v29 }
 0x127   :  { %5288 = vmatprep.subr.bf16.mxu0 %v6027_v23 }
 0x129   :  { %4779 = vmatmul.mubr.msk.f32.gmra.mrb[4].mxu0 %vm232_vm0, %v270_v17 }
 0x12a   :  { %4781 = vmatprep.mubr.msk.f32.mxu0 %vm232_vm0, %v271_v18 }
 0x12d   :  { %4782 = vmatmul.mubr.msk.f32.gmra.mrb[6].mxu0 %vm232_vm0, %v272_v19 }
 0x1f4   :  { %v4774_v31 = vpop.f32.mrb[0].mxu0 }
 0x1f5   :  { %v378_v32 = vadd.f32 %v4774_v31, %v4440_v30  ;;  %v372_v33 = vpop.f32.mrb[1].mxu0 }
 0x1f6   :  { %v373_v36 = vadd.f32 %v4440_v30, %v372_v33 }
 0x1f7   :  { %v412_v40 = vmax.f32 %v378_v32, 0.0 }
 0x1f8   :  { %v411_v37 = vmax.f32 %v373_v36, 0.0  ;;  %v4777_v38 = vpop.f32.mrb[2].mxu0 }
 0x1f9   :  { %v388_v41 = vadd.f32 %v4777_v38, %v4440_v30  ;;  %v382_v42 = vpop.f32.mrb[3].mxu0 }
 0x1fa   :  { %4788 = vmatprep.mubr.msk.f32.mxu1 %vm232_vm0, %v411_v37  ;;  %v383_v45 = vadd.f32 %v4440_v30, %v382_v42 }
 0x1fb   :  { %4789 = vmatmul.mubr.msk.f32.vlgmr.msra.gmra.mrb[0].mxu1 %vm232_vm0, %v412_v40  ;;  %v414_v46 = vmax.f32 %v388_v41, 0.0 }
 0x1fc   :  { %v413_v47 = vmax.f32 %v383_v45, 0.0  ;;  %v4780_v48 = vpop.f32.mrb[4].mxu0  ;;  %5278 = vmatpush3.bf16.msra.mxu1 %v6373_v39 }
 0x1fd   :  { %v398_v50 = vadd.f32 %v4780_v48, %v4440_v30  ;;  %v392_v51 = vpop.f32.mrb[5].mxu0  ;;  %5279 = vmatprep.subr.bf16.mxu1 %v6027_v23 }
 0x1fe   :  { %v393_v52 = vadd.f32 %v4440_v30, %v392_v51  ;;  %4791 = vmatprep.mubr.msk.f32.mxu1 %vm232_vm0, %v413_v47 }
 0x1ff   :  { %v416_v53 = vmax.f32 %v398_v50, 0.0  ;;  %4792 = vmatmul.mubr.msk.f32.gmra.mrb[2].mxu1 %vm232_vm0, %v414_v46 }
 0x200   :  { %v415_v54 = vmax.f32 %v393_v52, 0.0  ;;  %v4783_v55 = vpop.f32.mrb[6].mxu0  ;;  %5281 = vmatpush3.bf16.msra.mxu1 %v6378_v49 }
 0x201   :  { %v408_v56 = vadd.f32 %v4783_v55, %v4440_v30  ;;  %v402_v57 = vpop.f32.mrb[7].mxu0  ;;  %5282 = vmatprep.subr.bf16.mxu1 %v6027_v23 }
 0x202   :  { %v403_v58 = vadd.f32 %v4440_v30, %v402_v57  ;;  %4794 = vmatprep.mubr.msk.f32.mxu1 %vm232_vm0, %v415_v54  ;;  %v4458_v30 = vld [vmem:[#allocation12] ss:$0 sm:$0xff] }
 0x203   :  { %v418_v59 = vmax.f32 %v408_v56, 0.0  ;;  %4795 = vmatmul.mubr.msk.f32.gmra.mrb[4].mxu1 %vm232_vm0, %v416_v53 }
 0x204   :  { %v417_v60 = vmax.f32 %v403_v58, 0.0  ;;  %v710_v58 = vld [vmem:[%s7061_s9] sm:$0xff] }
 0x206   :  { %4797 = vmatprep.mubr.msk.f32.mxu1 %vm232_vm0, %v417_v60  ;;  %v712_v60 = vld [vmem:[%s7061_s9 + $0x10] sm:$0xff] }
 0x207   :  { %4798 = vmatmul.mubr.msk.f32.gmra.mrb[6].mxu1 %vm232_vm0, %v418_v59  ;;  %v711_v59 = vld [vmem:[%s7061_s9 + $0x8] sm:$0xff] }
 0x208   :  { %4828 = vmatprep.mubr.msk.f32.mxu1 %vm6028_vm3, %v6026_v0  ;;  %v6446_v61 = vpack.c.bf16 %v711_v59, %v710_v58 }
 0x20b   :  { %4829 = vmatmul.mubr.msk.f32.vlgmr.msra.gmra.mrb[8].mxu1 %vm576_vm4, %v6395_v62 }
 0x20c   :  { %5284 = vmatpush3.bf16.msra.mxu1 %v6373_v39  ;;  %4839 = vmatprep.mubr.msk.f32.mxu1 %vm6028_vm3, %v6026_v0 }
 0x20d   :  { %5285 = vmatprep.subr.bf16.mxu1 %v6027_v23 }
 0x210   :  { %5287 = vmatpush3.bf16.msra.mxu1 %v6378_v49 }
 0x211   :  { %5294 = vmatprep.subr.bf16.mxu1 %v6027_v23 }
 0x2ce   :  { %v4790_v1 = vpop.f32.mrb[0].mxu1 }
 0x2cf   :  { %v524_v2 = vadd.f32 %v4790_v1, %v4449_v63  ;;  %v518_v3 = vpop.f32.mrb[1].mxu1 }
 0x2d0   :  { %v519_v4 = vadd.f32 %v4449_v63, %v518_v3 }
 0x2d1   :  { %v558_v7 = vmax.f32 %v524_v2, 0.0 }
 0x2d2   :  { %v557_v5 = vmax.f32 %v519_v4, 0.0  ;;  %v4793_v6 = vpop.f32.mrb[2].mxu1 }
 0x2d3   :  { %v534_v8 = vadd.f32 %v4793_v6, %v4449_v63  ;;  %v528_v9 = vpop.f32.mrb[3].mxu1 }
 0x2d4   :  { %4808 = vmatprep.mubr.msk.f32.mxu0 %vm576_vm4, %v557_v5  ;;  %v529_v10 = vadd.f32 %v4449_v63, %v528_v9  ;;  %v714_v9 = vld [vmem:[#allocation15] sm:$0xff] }
 0x2d5   :  { %4809 = vmatmul.mubr.msk.f32.vlgmr.msra.gmra.mrb[8].mxu0 %vm576_vm4, %v558_v7  ;;  %v560_v11 = vmax.f32 %v534_v8, 0.0 }
 0x2d6   :  { %v559_v12 = vmax.f32 %v529_v10, 0.0  ;;  %v4796_v13 = vpop.f32.mrb[4].mxu1  ;;  %5290 = vmatpush3.bf16.msra.mxu0 %v6446_v61  ;;  %v715_v10 = vld [vmem:[#allocation15 + $0x8] sm:$0xff] }
 0x2d7   :  { %v544_v14 = vadd.f32 %v4796_v13, %v4449_v63  ;;  %v538_v15 = vpop.f32.mrb[5].mxu1  ;;  %5291 = vmatprep.subr.bf16.mxu0 %v6027_v23  ;;  %v717_v13 = vld [vmem:[#allocation15 + $0x18] sm:$0xff] }
 0x2d8   :  { %v539_v16 = vadd.f32 %v4449_v63, %v538_v15  ;;  %4811 = vmatprep.mubr.msk.f32.mxu0 %vm576_vm4, %v559_v12  ;;  %v716_v12 = vld [vmem:[#allocation15 + $0x10] sm:$0xff]  ;;  %v764_v15 = vld [vmem:[%s7070_s18] sm:$0x3] }
 0x2d9   :  { %v562_v17 = vmax.f32 %v544_v14, 0.0  ;;  %4812 = vmatmul.mubr.msk.f32.gmra.mrb[10].mxu0 %vm576_vm4, %v560_v11  ;;  %v6464_v11 = vpack.c.bf16 %v715_v10, %v714_v9 }
 0x2da   :  { %v561_v18 = vmax.f32 %v539_v16, 0.0  ;;  %v4799_v19 = vpop.f32.mrb[6].mxu1  ;;  %v765_v16 = vsel %vm762_vm2, %v764_v15, 0.0  ;;  %v720_v15 = vld [vmem:[#allocation19 + $0x10] sm:$0xff] }
 0x2db   :  { %v554_v20 = vadd.f32 %v4799_v19, %v4449_v63  ;;  %v548_v21 = vpop.f32.mrb[7].mxu1 }
 0x2dc   :  { %v549_v22 = vadd.f32 %v4449_v63, %v548_v21  ;;  %4814 = vmatprep.mubr.msk.f32.mxu0 %vm576_vm4, %v561_v18  ;;  %v713_v63 = vld [vmem:[%s7061_s9 + $0x18] sm:$0xff] }
 0x2dd   :  { %v564_v25 = vmax.f32 %v554_v20, 0.0  ;;  %4815 = vmatmul.mubr.msk.f32.gmra.mrb[12].mxu0 %vm576_vm4, %v562_v17  ;;  %v6452_v1 = vpack.c.bf16 %v713_v63, %v712_v60 }
 0x2de   :  { %v563_v26 = vmax.f32 %v549_v22, 0.0  ;;  %v837_v27 = vpop.f32.mrb[8].mxu1  ;;  %v6495_v22 = vld [vmem:[#allocation18] ss:$0 sm:$0xff] }
 0x2df   :  { %v838_v28 = vadd.f32 %v6413_v24, %v837_v27  ;;  %v4830_v29 = vpop.f32.mrb[9].mxu1  ;;  %5293 = vmatpush3.bf16.msra.mxu0 %v6452_v1 }
 0x2e0   :  { %4817 = vmatprep.mubr.msk.f32.mxu0 %vm576_vm4, %v563_v26  ;;  %5300 = vmatprep.subr.bf16.mxu0 %v6027_v23  ;;  %v6500_v29 = vld [vmem:[#allocation16] ss:$0 sm:$0xff] }
 0x2e1   :  { %4818 = vmatmul.mubr.msk.f32.gmra.mrb[14].mxu0 %vm576_vm4, %v564_v25  ;;  %849 = vrot.lane.b32.xlu0 %v838_v28, %s6029_s15 }
 0x2e2   :  { %4850 = vmatprep.mubr.msk.f32.mxu0 %vm6028_vm3, %v6026_v0 }
 0x353   :  { %v850_v53 = vpop.permute.xlu0 %849 }
 0x3a8   :  { %v4810_v31 = vpop.f32.mrb[8].mxu0 }
 0x3a9   :  { %v6422_v32 = vadd.f32 %v4810_v31, %v4458_v30  ;;  %v667_v33 = vpop.f32.mrb[9].mxu0 }
 0x3aa   :  { %v668_v34 = vadd.f32 %v4458_v30, %v667_v33 }
 0x3ac   :  { %v841_v35 = vadd.f32 %v838_v28, %v668_v34  ;;  %v4813_v36 = vpop.f32.mrb[10].mxu0 }
 0x3ad   :  { %v6424_v37 = vadd.f32 %v4813_v36, %v4458_v30  ;;  %v677_v38 = vpop.f32.mrb[11].mxu0 }
 0x3ae   :  { %v4473_v40 = vmul.f32 -1.442695, %v841_v35  ;;  %v6426_v41 = vadd.f32 %v4458_v30, %v677_v38 }
 0x3b0   :  { %5538 = vpow2.f32 %v4473_v40  ;;  %v4816_v42 = vpop.f32.mrb[12].mxu0 }
 0x3b1   :  { %v6428_v43 = vadd.f32 %v4816_v42, %v4458_v30  ;;  %v687_v44 = vpop.f32.mrb[13].mxu0 }
 0x3b2   :  { %v6430_v45 = vadd.f32 %v4458_v30, %v687_v44 }
 0x3b4   :  { %v4819_v46 = vpop.f32.mrb[14].mxu0 }
 0x3b5   :  { %v6432_v47 = vadd.f32 %v4819_v46, %v4458_v30  ;;  %v697_v48 = vpop.f32.mrb[15].mxu0 }
 0x3b6   :  { %v6434_v50 = vadd.f32 %v4458_v30, %v697_v48 }
 0x3ba   :  { %v5539_v51 = vpop.eup %5538 }
 0x3bb   :  { %v845_v52 = vadd.f32 1.0, %v5539_v51 }
 0x3bd   :  { %5540 = vrcp.f32 %v845_v52 }
 0x3c7   :  { %v5541_v54 = vpop.eup %5540 }
 0x3c8   :  { %v852_v55 = vmul.f32 %v5541_v54, %v850_v53  ;;  %v859_v4 = vsub.f32 1.0, %v5541_v54 }
 0x3ca   :  { %854 = vrot.lane.b32.xlu0 %v852_v55, %s6029_s15 }
 0x43c   :  { %v855_v56 = vpop.permute.xlu0 %854 }
 0x43d   :  { %v857_v57 = vadd.f32 %v855_v56, %v668_v34 }
 0x43f   :  { %5542 = vtanh.f32 %v857_v57 }
 0x449   :  { %v5543_v2 = vpop.eup %5542 }
 0x44a   :  { %861 = vrot.lane.b32.xlu1 %v5543_v2, %s6030_s28 }
 0x44e   :  { %865 = vrot.lane.b32.xlu1 %v6395_v62, %s6031_s8  ;;  %v6469_v62 = vpack.c.bf16 %v717_v13, %v716_v12  ;;  %v718_v12 = vld [vmem:[#allocation19] sm:$0xff]  ;;  %v719_v13 = vld [vmem:[#allocation19 + $0x8] sm:$0xff] }
 0x4bc   :  { %v862_v3 = vpop.permute.xlu1 %861 }
 0x4bd   :  { %v864_v6 = vmul.f32 %v862_v3, %v859_v4 }
 0x4c0   :  { %v866_v5 = vpop.permute.xlu1 %865 }
 0x4c1   :  { %v868_v7 = vmul.f32 %v5541_v54, %v866_v5 }
 0x4c3   :  { %v6460_v8 = vadd.f32 %v868_v7, %v864_v6 }
 0x4c5   :  { %871 = vrot.lane.b32.xlu0 %v6460_v8, %s6030_s28 }
 0x537   :  { %v872_v14 = vpop.permute.xlu0 %871 }
 0x538   :  { %4840 = vmatmul.mubr.msk.f32.vlgmr.msra.gmra.mrb[10].mxu1 %vm576_vm4, %v872_v14  ;;  %4851 = vmatmul.mubr.msk.f32.vlgmr.msra.gmra.mrb[16].mxu0 %vm576_vm4, %v872_v14  ;;  %v6521_v14 = vpack.c.bf16 %v719_v13, %v718_v12 }
 0x539   :  { %5296 = vmatpush3.bf16.msra.mxu1 %v6464_v11  ;;  %4861 = vmatprep.mubr.msk.f32.mxu1 %vm6028_vm3, %v6026_v0 }
 0x53a   :  { %5297 = vmatprep.subr.bf16.mxu1 %v6027_v23  ;;  %5302 = vmatpush3.bf16.msra.mxu0 %v6373_v39 }
 0x53b   :  { %5303 = vmatprep.subr.bf16.mxu0 %v6027_v23  ;;  %4872 = vmatprep.mubr.msk.f32.mxu0 %vm6028_vm3, %v6026_v0 }
 0x53d   :  { %5299 = vmatpush3.bf16.msra.mxu1 %v6469_v62 }
 0x53e   :  { %5306 = vmatprep.subr.bf16.mxu1 %v6027_v23  ;;  %5305 = vmatpush3.bf16.msra.mxu0 %v6378_v49 }
 0x53f   :  { %5312 = vmatprep.subr.bf16.mxu0 %v6027_v23 }
 0x540   :  { %4862 = vmatmul.mubr.msk.f32.vlgmr.msra.gmra.mrb[12].mxu1 %vm576_vm4, %v765_v16 }
 0x541   :  { %5308 = vmatpush3.bf16.msra.mxu1 %v6446_v61  ;;  %4883 = vmatprep.mubr.msk.f32.mxu1 %vm6028_vm3, %v6026_v0 }
 0x542   :  { %5309 = vmatprep.subr.bf16.mxu1 %v6027_v23 }
 0x545   :  { %5311 = vmatpush3.bf16.msra.mxu1 %v6452_v1 }
 0x546   :  { %5318 = vmatprep.subr.bf16.mxu1 %v6027_v23 }
 0x60b   :  { %v941_v17 = vpop.f32.mrb[10].mxu1  ;;  %v1037_v18 = vpop.f32.mrb[16].mxu0 }
 0x60c   :  { %v942_v19 = vadd.f32 %v6413_v24, %v941_v17  ;;  %v4841_v20 = vpop.f32.mrb[11].mxu1  ;;  %v4852_v21 = vpop.f32.mrb[17].mxu0  ;;  %v1038_v31 = vadd.f32 %v6500_v29, %v1037_v18 }
 0x60d   :  { %v724_v21 = vld [vmem:[#allocation21 + $0x10] sm:$0xff] }
 0x60e   :  { %953 = vrot.lane.b32.xlu1 %v942_v19, %s6029_s15  ;;  %v945_v28 = vadd.f32 %v942_v19, %v6422_v32  ;;  %v723_v19 = vld [vmem:[#allocation21 + $0x8] sm:$0xff] }
 0x610   :  { %v4475_v30 = vmul.f32 -1.442695, %v945_v28 }
 0x612   :  { %5544 = vpow2.f32 %v4475_v30  ;;  %v766_v30 = vld [vmem:[%s7071_s19] sm:$0x3] }
 0x613   :  { %v1110_v25 = vpop.f32.mrb[12].mxu1 }
 0x614   :  { %v1111_v26 = vadd.f32 %v6495_v22, %v1110_v25  ;;  %v4863_v27 = vpop.f32.mrb[13].mxu1  ;;  %v725_v25 = vld [vmem:[#allocation21 + $0x18] sm:$0xff] }
 0x615   :  { %v6543_v28 = vpack.c.bf16 %v725_v25, %v724_v21 }
 0x616   :  { %1122 = vrot.lane.b32.xlu0 %v1111_v26, %s6029_s15  ;;  %v1114_v33 = vadd.f32 %v1111_v26, %v1038_v31 }
 0x618   :  { %v4478_v34 = vmul.f32 -1.442695, %v1114_v33 }
 0x61a   :  { %5546 = vpow2.f32 %v4478_v34 }
 0x61c   :  { %v5545_v35 = vpop.eup %5544 }
 0x61d   :  { %v949_v36 = vadd.f32 1.0, %v5545_v35 }
 0x61f   :  { %5548 = vrcp.f32 %v949_v36 }
 0x624   :  { %v5547_v38 = vpop.eup %5546 }
 0x625   :  { %v1118_v40 = vadd.f32 1.0, %v5547_v38 }
 0x627   :  { %5550 = vrcp.f32 %v1118_v40 }
 0x629   :  { %v5549_v42 = vpop.eup %5548 }
 0x62a   :  { %v963_v59 = vsub.f32 1.0, %v5549_v42  ;;  %v969_v63 = vmul.f32 %v5549_v42, %v6460_v8 }
 0x631   :  { %v5551_v48 = vpop.eup %5550 }
 0x632   :  { %v1132_v4 = vsub.f32 1.0, %v5551_v48 }
 0x680   :  { %v954_v44 = vpop.permute.xlu1 %953 }
 0x681   :  { %v956_v46 = vmul.f32 %v5549_v42, %v954_v44 }
 0x683   :  { %958 = vrot.lane.b32.xlu1 %v956_v46, %s6029_s15 }
 0x688   :  { %v1123_v51 = vpop.permute.xlu0 %1122 }
 0x689   :  { %v1125_v52 = vmul.f32 %v5551_v48, %v1123_v51  ;;  %v6575_v51 = vld [vmem:[#allocation24] ss:$0 sm:$0xff] }
 0x68b   :  { %1127 = vrot.lane.b32.xlu0 %v1125_v52, %s6029_s15 }
 0x6f5   :  { %v959_v53 = vpop.permute.xlu1 %958 }
 0x6f6   :  { %v961_v54 = vadd.f32 %v959_v53, %v6422_v32 }
 0x6f8   :  { %5552 = vtanh.f32 %v961_v54 }
 0x6fd   :  { %v1128_v55 = vpop.permute.xlu0 %1127 }
 0x6fe   :  { %v1130_v56 = vadd.f32 %v1128_v55, %v1038_v31  ;;  %v6558_v31 = vsel %vm762_vm2, %v766_v30, 0.0 }
 0x700   :  { %5554 = vtanh.f32 %v1130_v56 }
 0x702   :  { %v5553_v57 = vpop.eup %5552 }
 0x703   :  { %965 = vrot.lane.b32.xlu1 %v5553_v57, %s6030_s28 }
 0x707   :  { %1138 = vrot.lane.b32.xlu1 %v765_v16, %s6031_s8  ;;  %v721_v16 = vld [vmem:[#allocation19 + $0x18] sm:$0xff] }
 0x708   :  { %v6527_v18 = vpack.c.bf16 %v721_v16, %v720_v15 }
 0x70a   :  { %v5555_v58 = vpop.eup %5554 }
 0x70b   :  { %1134 = vrot.lane.b32.xlu0 %v5555_v58, %s6030_s28 }
 0x775   :  { %v966_v60 = vpop.permute.xlu1 %965 }
 0x776   :  { %v968_v2 = vmul.f32 %v966_v60, %v963_v59  ;;  %v6581_v59 = vld [vmem:[#allocation22] ss:$0 sm:$0xff] }
 0x778   :  { %v6510_v3 = vadd.f32 %v969_v63, %v968_v2 }
 0x779   :  { %v1139_v32 = vpop.permute.xlu1 %1138 }
 0x77a   :  { %1144 = vrot.lane.b32.xlu0 %v6510_v3, %s6030_s28  ;;  %v1141_v6 = vmul.f32 %v5551_v48, %v1139_v32 }
 0x77d   :  { %v1135_v5 = vpop.permute.xlu0 %1134 }
 0x77e   :  { %v1137_v7 = vmul.f32 %v1135_v5, %v1132_v4 }
 0x780   :  { %v6514_v9 = vadd.f32 %v1141_v6, %v1137_v7 }
 0x782   :  { %1315 = vrot.lane.b32.xlu1 %v6514_v9, %s6030_s28  ;;  %v1415_v10 = vadd.f32 %v6514_v9, %v6460_v8  ;;  %v722_v8 = vld [vmem:[#allocation21] sm:$0xff] }
 0x783   :  { %v6537_v20 = vpack.c.bf16 %v723_v19, %v722_v8 }
 0x784   :  { %1417 = vrot.lane.b32.xlu0 %v1415_v10, %s6030_s28 }
 0x7ec   :  { %v1145_v17 = vpop.permute.xlu0 %1144 }
 0x7ed   :  { %4873 = vmatmul.mubr.msk.f32.vlgmr.msra.gmra.mrb[18].mxu0 %vm576_vm4, %v1145_v17  ;;  %4884 = vmatmul.mubr.msk.f32.vlgmr.msra.gmra.mrb[14].mxu1 %vm576_vm4, %v1145_v17 }
 0x7ee   :  { %5314 = vmatpush3.bf16.msra.mxu0 %v6464_v11  ;;  %5320 = vmatpush3.bf16.msra.mxu1 %v6521_v14 }
 0x7ef   :  { %5315 = vmatprep.subr.bf16.mxu0 %v6027_v23  ;;  %5321 = vmatprep.subr.bf16.mxu1 %v6027_v23 }
 0x7f0   :  { %4894 = vmatprep.mubr.msk.f32.mxu0 %vm6028_vm3, %v6026_v0  ;;  %4905 = vmatprep.mubr.msk.f32.mxu1 %vm6028_vm3, %v6026_v0 }
 0x7f2   :  { %5317 = vmatpush3.bf16.msra.mxu0 %v6469_v62  ;;  %5323 = vmatpush3.bf16.msra.mxu1 %v6527_v18 }
 0x7f3   :  { %5324 = vmatprep.subr.bf16.mxu0 %v6027_v23  ;;  %5330 = vmatprep.subr.bf16.mxu1 %v6027_v23 }
 0x7f4   :  { %v1316_v26 = vpop.permute.xlu1 %1315 }
 0x7f5   :  { %4895 = vmatmul.mubr.msk.f32.vlgmr.msra.gmra.mrb[20].mxu0 %vm576_vm4, %v1316_v26 }
 0x7f6   :  { %5326 = vmatpush3.bf16.msra.mxu0 %v6537_v20  ;;  %v1418_v27 = vpop.permute.xlu0 %1417  ;;  %4916 = vmatprep.mubr.msk.f32.mxu0 %vm6028_vm3, %v6026_v0 }
 0x7f7   :  { %4906 = vmatmul.mubr.msk.f32.vlgmr.msra.gmra.mrb[16].mxu1 %vm576_vm4, %v1418_v27  ;;  %5327 = vmatprep.subr.bf16.mxu0 %v6027_v23 }
 0x7f8   :  { %5332 = vmatpush3.bf16.msra.mxu1 %v6373_v39  ;;  %4927 = vmatprep.mubr.msk.f32.mxu1 %vm6028_vm3, %v6026_v0 }
 0x7f9   :  { %5333 = vmatprep.subr.bf16.mxu1 %v6027_v23 }
 0x7fa   :  { %5329 = vmatpush3.bf16.msra.mxu0 %v6543_v28 }
 0x7fb   :  { %5336 = vmatprep.subr.bf16.mxu0 %v6027_v23 }
 0x7fc   :  { %5335 = vmatpush3.bf16.msra.mxu1 %v6378_v49 }
 0x7fd   :  { %4917 = vmatmul.mubr.msk.f32.vlgmr.msra.gmra.mrb[22].mxu0 %vm576_vm4, %v6558_v31  ;;  %5342 = vmatprep.subr.bf16.mxu1 %v6027_v23 }
 0x7fe   :  { %5338 = vmatpush3.bf16.msra.mxu0 %v6446_v61  ;;  %4938 = vmatprep.mubr.msk.f32.mxu0 %vm6028_vm3, %v6026_v0 }
 0x7ff   :  { %5339 = vmatprep.subr.bf16.mxu0 %v6027_v23 }
 0x802   :  { %5341 = vmatpush3.bf16.msra.mxu0 %v6452_v1 }
 0x803   :  { %5348 = vmatprep.subr.bf16.mxu0 %v6027_v23 }
 0x8c0   :  { %v1214_v33 = vpop.f32.mrb[18].mxu0  ;;  %v1310_v34 = vpop.f32.mrb[14].mxu1 }
 0x8c1   :  { %v1215_v35 = vadd.f32 %v6413_v24, %v1214_v33  ;;  %v4874_v36 = vpop.f32.mrb[19].mxu0  ;;  %v4885_v38 = vpop.f32.mrb[15].mxu1  ;;  %v1311_v57 = vadd.f32 %v6500_v29, %v1310_v34 }
 0x8c3   :  { %1226 = vrot.lane.b32.xlu1 %v1215_v35, %s6029_s15  ;;  %v1218_v55 = vadd.f32 %v1215_v35, %v6426_v41 }
 0x8c5   :  { %v4480_v56 = vmul.f32 -1.442695, %v1218_v55 }
 0x8c7   :  { %5556 = vpow2.f32 %v4480_v56 }
 0x8c8   :  { %v1385_v40 = vpop.f32.mrb[20].mxu0 }
 0x8c9   :  { %v1386_v42 = vadd.f32 %v6495_v22, %v1385_v40  ;;  %v4896_v44 = vpop.f32.mrb[21].mxu0 }
 0x8ca   :  { %v1487_v46 = vpop.f32.mrb[16].mxu1 }
 0x8cb   :  { %1397 = vrot.lane.b32.xlu0 %v1386_v42, %s6029_s15  ;;  %v4907_v48 = vpop.f32.mrb[17].mxu1  ;;  %v1389_v58 = vadd.f32 %v1386_v42, %v1311_v57  ;;  %v1488_v63 = vadd.f32 %v6581_v59, %v1487_v46 }
 0x8cd   :  { %v4483_v60 = vmul.f32 -1.442695, %v1389_v58 }
 0x8cf   :  { %5558 = vpow2.f32 %v4483_v60 }
 0x8d0   :  { %v1560_v52 = vpop.f32.mrb[22].mxu0 }
 0x8d1   :  { %v1561_v53 = vadd.f32 %v6575_v51, %v1560_v52  ;;  %v4918_v54 = vpop.f32.mrb[23].mxu0  ;;  %v5557_v32 = vpop.eup %5556 }
 0x8d2   :  { %v1222_v5 = vadd.f32 1.0, %v5557_v32 }
 0x8d3   :  { %1572 = vrot.lane.b32.xlu1 %v1561_v53, %s6029_s15  ;;  %v1564_v2 = vadd.f32 %v1561_v53, %v1488_v63 }
 0x8d5   :  { %v4486_v4 = vmul.f32 -1.442695, %v1564_v2 }
 0x8d7   :  { %5560 = vpow2.f32 %v4486_v4 }
 0x8d8   :  { %5562 = vrcp.f32 %v1222_v5 }
 0x8d9   :  { %v5559_v6 = vpop.eup %5558 }
 0x8da   :  { %v1393_v7 = vadd.f32 1.0, %v5559_v6 }
 0x8dc   :  { %5564 = vrcp.f32 %v1393_v7 }
 0x8e1   :  { %v5561_v10 = vpop.eup %5560 }
 0x8e2   :  { %v5563_v12 = vpop.eup %5562  ;;  %v1568_v16 = vadd.f32 1.0, %v5561_v10 }
 0x8e3   :  { %v1242_v46 = vmul.f32 %v5563_v12, %v6510_v3 }
 0x8e4   :  { %5566 = vrcp.f32 %v1568_v16 }
 0x8e6   :  { %v5565_v17 = vpop.eup %5564 }
 0x8e7   :  { %v1407_v53 = vsub.f32 1.0, %v5565_v17  ;;  %v1413_v55 = vmul.f32 %v5565_v17, %v6514_v9 }
 0x8ee   :  { %v5567_v21 = vpop.eup %5566 }
 0x8ef   :  { %v1582_v58 = vsub.f32 1.0, %v5567_v21 }
 0x935   :  { %v1227_v13 = vpop.permute.xlu1 %1226 }
 0x936   :  { %v1229_v15 = vmul.f32 %v5563_v12, %v1227_v13 }
 0x938   :  { %1231 = vrot.lane.b32.xlu0 %v1229_v15, %s6029_s15 }
 0x93d   :  { %v1398_v8 = vpop.permute.xlu0 %1397 }
 0x93e   :  { %v1400_v19 = vmul.f32 %v5565_v17, %v1398_v8 }
 0x940   :  { %1402 = vrot.lane.b32.xlu1 %v1400_v19, %s6029_s15 }
 0x945   :  { %v1573_v25 = vpop.permute.xlu1 %1572 }
 0x946   :  { %v1575_v26 = vmul.f32 %v5567_v21, %v1573_v25 }
 0x948   :  { %1577 = vrot.lane.b32.xlu0 %v1575_v26, %s6029_s15 }
 0x9aa   :  { %v1232_v27 = vpop.permute.xlu0 %1231 }
 0x9ab   :  { %v1234_v30 = vadd.f32 %v1232_v27, %v6426_v41  ;;  %v1236_v41 = vsub.f32 1.0, %v5563_v12 }
 0x9ad   :  { %5568 = vtanh.f32 %v1234_v30 }
 0x9b2   :  { %v1403_v33 = vpop.permute.xlu1 %1402 }
 0x9b3   :  { %v1405_v34 = vadd.f32 %v1403_v33, %v1311_v57 }
 0x9b5   :  { %5570 = vtanh.f32 %v1405_v34 }
 0x9b7   :  { %v5569_v35 = vpop.eup %5568 }
 0x9b8   :  { %1238 = vrot.lane.b32.xlu1 %v5569_v35, %s6030_s28 }
 0x9ba   :  { %v1578_v36 = vpop.permute.xlu0 %1577 }
 0x9bb   :  { %v1580_v38 = vadd.f32 %v1578_v36, %v1488_v63 }
 0x9bd   :  { %5572 = vtanh.f32 %v1580_v38 }
 0x9bf   :  { %v5571_v40 = vpop.eup %5570 }
 0x9c0   :  { %1409 = vrot.lane.b32.xlu0 %v5571_v40, %s6030_s28 }
 0x9c4   :  { %1588 = vrot.lane.b32.xlu0 %v6558_v31, %s6031_s8 }
 0x9c7   :  { %v5573_v42 = vpop.eup %5572 }
 0x9c8   :  { %1584 = vrot.lane.b32.xlu1 %v5573_v42, %s6030_s28 }
 0xa2a   :  { %v1239_v44 = vpop.permute.xlu1 %1238 }
 0xa2b   :  { %v1241_v48 = vmul.f32 %v1239_v44, %v1236_v41 }
 0xa2d   :  { %v6594_v52 = vadd.f32 %v1242_v46, %v1241_v48 }
 0xa2f   :  { %1599 = vrot.lane.b32.xlu1 %v6594_v52, %s6030_s28 }
 0xa32   :  { %v1410_v54 = vpop.permute.xlu0 %1409 }
 0xa33   :  { %v1412_v56 = vmul.f32 %v1410_v54, %v1407_v53 }
 0xa35   :  { %v6599_v57 = vadd.f32 %v1413_v55, %v1412_v56 }
 0xa36   :  { %v1589_v31 = vpop.permute.xlu0 %1588 }
 0xa37   :  { %1770 = vrot.lane.b32.xlu0 %v6599_v57, %s6030_s28  ;;  %v1870_v60 = vadd.f32 %v6599_v57, %v6510_v3  ;;  %v1591_v2 = vmul.f32 %v5567_v21, %v1589_v31 }
 0xa3a   :  { %v1585_v63 = vpop.permute.xlu1 %1584 }
 0xa3b   :  { %v1587_v32 = vmul.f32 %v1585_v63, %v1582_v58  ;;  %1872 = vrot.lane.b32.xlu0 %v1870_v60, %s6030_s28 }
 0xa3d   :  { %v6606_v4 = vadd.f32 %v1591_v2, %v1587_v32 }
 0xa3f   :  { %1594 = vrot.lane.b32.xlu1 %v6606_v4, %s6030_s28 }
 0xaa1   :  { %v1600_v9 = vpop.permute.xlu1 %1599 }
 0xaa2   :  { %4928 = vmatmul.mubr.msk.f32.vlgmr.msra.gmra.mrb[18].mxu1 %vm576_vm4, %v1600_v9  ;;  %4939 = vmatmul.mubr.msk.f32.vlgmr.msra.gmra.mrb[24].mxu0 %vm576_vm4, %v1600_v9 }
 0xaa3   :  { %5344 = vmatpush3.bf16.msra.mxu1 %v6464_v11  ;;  %5350 = vmatpush3.bf16.msra.mxu0 %v6521_v14 }
 0xaa4   :  { %5345 = vmatprep.subr.bf16.mxu1 %v6027_v23  ;;  %4949 = vmatprep.mubr.msk.f32.mxu1 %vm6028_vm3, %v6026_v0 }
 0xaa5   :  { %5351 = vmatprep.subr.bf16.mxu0 %v6027_v23  ;;  %4960 = vmatprep.mubr.msk.f32.mxu0 %vm6028_vm3, %v6026_v0 }
 0xaa7   :  { %5347 = vmatpush3.bf16.msra.mxu1 %v6469_v62  ;;  %5353 = vmatpush3.bf16.msra.mxu0 %v6527_v18 }
 0xaa8   :  { %5354 = vmatprep.subr.bf16.mxu1 %v6027_v23  ;;  %5360 = vmatprep.subr.bf16.mxu0 %v6027_v23 }
 0xaa9   :  { %v1771_v3 = vpop.permute.xlu0 %1770 }
 0xaaa   :  { %4950 = vmatmul.mubr.msk.f32.vlgmr.msra.gmra.mrb[20].mxu1 %vm576_vm4, %v1771_v3 }
 0xaab   :  { %5356 = vmatpush3.bf16.msra.mxu1 %v6537_v20  ;;  %4971 = vmatprep.mubr.msk.f32.mxu1 %vm6028_vm3, %v6026_v0 }
 0xaac   :  { %5357 = vmatprep.subr.bf16.mxu1 %v6027_v23 }
 0xaad   :  { %v1873_v5 = vpop.permute.xlu0 %1872 }
 0xaae   :  { %4961 = vmatmul.mubr.msk.f32.vlgmr.msra.gmra.mrb[26].mxu0 %vm576_vm4, %v1873_v5 }
 0xaaf   :  { %5359 = vmatpush3.bf16.msra.mxu1 %v6543_v28  ;;  %5362 = vmatpush3.bf16.msra.mxu0 %v6373_v39 }
 0xab0   :  { %5366 = vmatprep.subr.bf16.mxu1 %v6027_v23  ;;  %5363 = vmatprep.subr.bf16.mxu0 %v6027_v23 }
 0xab1   :  { %v1595_v6 = vpop.permute.xlu1 %1594  ;;  %4982 = vmatprep.mubr.msk.f32.mxu0 %vm6028_vm3, %v6026_v0 }
 0xab2   :  { %1597 = vst.msk [vmem:[#allocation3] sm:$0xff] %vm576_vm4, %v1595_v6  ;;  %4972 = vmatmul.mubr.msk.f32.vlgmr.msra.gmra.mrb[22].mxu1 %vm576_vm4, %v1595_v6 }
 0xab3   :  { %5368 = vmatpush3.bf16.msra.mxu1 %v6446_v61  ;;  %5365 = vmatpush3.bf16.msra.mxu0 %v6378_v49 }
 0xab4   :  { %5369 = vmatprep.subr.bf16.mxu1 %v6027_v23  ;;  %4993 = vmatprep.mubr.msk.f32.mxu1 %vm6028_vm3, %v6026_v0 }
 0xab5   :  { %5372 = vmatprep.subr.bf16.mxu0 %v6027_v23 }
 0xab7   :  { %5371 = vmatpush3.bf16.msra.mxu1 %v6452_v1 }
 0xab8   :  { %5378 = vmatprep.subr.bf16.mxu1 %v6027_v23 }
 0xb75   :  { %v1669_v7 = vpop.f32.mrb[18].mxu1  ;;  %v1765_v10 = vpop.f32.mrb[24].mxu0 }
 0xb76   :  { %v1670_v12 = vadd.f32 %v6413_v24, %v1669_v7  ;;  %v4929_v13 = vpop.f32.mrb[19].mxu1  ;;  %v4940_v15 = vpop.f32.mrb[25].mxu0  ;;  %v1766_v34 = vadd.f32 %v6500_v29, %v1765_v10 }
 0xb78   :  { %1681 = vrot.lane.b32.xlu1 %v1670_v12, %s6029_s15  ;;  %v1673_v30 = vadd.f32 %v1670_v12, %v6424_v37 }
 0xb7a   :  { %v4488_v33 = vmul.f32 -1.442695, %v1673_v30 }
 0xb7c   :  { %5574 = vpow2.f32 %v4488_v33 }
 0xb7d   :  { %v1840_v16 = vpop.f32.mrb[20].mxu1 }
 0xb7e   :  { %v1841_v17 = vadd.f32 %v6495_v22, %v1840_v16  ;;  %v4951_v8 = vpop.f32.mrb[21].mxu1 }
 0xb80   :  { %1852 = vrot.lane.b32.xlu0 %v1841_v17, %s6029_s15  ;;  %v1844_v35 = vadd.f32 %v1841_v17, %v1766_v34 }
 0xb81   :  { %v1942_v19 = vpop.f32.mrb[26].mxu0 }
 0xb82   :  { %v4962_v21 = vpop.f32.mrb[27].mxu0  ;;  %v4491_v36 = vmul.f32 -1.442695, %v1844_v35  ;;  %v1943_v38 = vadd.f32 %v6581_v59, %v1942_v19 }
 0xb84   :  { %5576 = vpow2.f32 %v4491_v36 }
 0xb85   :  { %v2014_v25 = vpop.f32.mrb[22].mxu1 }
 0xb86   :  { %v2015_v26 = vadd.f32 %v6575_v51, %v2014_v25  ;;  %v4973_v27 = vpop.f32.mrb[23].mxu1  ;;  %v5575_v42 = vpop.eup %5574 }
 0xb87   :  { %v1677_v44 = vadd.f32 1.0, %v5575_v42 }
 0xb88   :  { %2026 = vrot.lane.b32.xlu1 %v2015_v26, %s6029_s15  ;;  %v2018_v40 = vadd.f32 %v2015_v26, %v1943_v38 }
 0xb8a   :  { %v4494_v41 = vmul.f32 -1.442695, %v2018_v40 }
 0xb8c   :  { %5578 = vpow2.f32 %v4494_v41 }
 0xb8d   :  { %5580 = vrcp.f32 %v1677_v44 }
 0xb8e   :  { %v5577_v46 = vpop.eup %5576 }
 0xb8f   :  { %v1848_v48 = vadd.f32 1.0, %v5577_v46 }
 0xb91   :  { %5582 = vrcp.f32 %v1848_v48 }
 0xb96   :  { %v5579_v53 = vpop.eup %5578 }
 0xb97   :  { %v5581_v54 = vpop.eup %5580  ;;  %v2022_v31 = vadd.f32 1.0, %v5579_v53 }
 0xb98   :  { %v1691_v17 = vsub.f32 1.0, %v5581_v54 }
 0xb99   :  { %5584 = vrcp.f32 %v2022_v31 }
 0xb9b   :  { %v5583_v58 = vpop.eup %5582 }
 0xb9c   :  { %v1862_v25 = vsub.f32 1.0, %v5583_v58  ;;  %v1868_v27 = vmul.f32 %v5583_v58, %v6599_v57 }
 0xba3   :  { %v5585_v2 = vpop.eup %5584 }
 0xbea   :  { %v1682_v55 = vpop.permute.xlu1 %1681 }
 0xbeb   :  { %v1684_v56 = vmul.f32 %v5581_v54, %v1682_v55 }
 0xbed   :  { %1686 = vrot.lane.b32.xlu0 %v1684_v56, %s6029_s15 }
 0xbf2   :  { %v1853_v60 = vpop.permute.xlu0 %1852 }
 0xbf3   :  { %v1855_v63 = vmul.f32 %v5583_v58, %v1853_v60 }
 0xbf5   :  { %1857 = vrot.lane.b32.xlu1 %v1855_v63, %s6029_s15 }
 0xbfa   :  { %v2027_v32 = vpop.permute.xlu1 %2026 }
 0xbfb   :  { %v2029_v9 = vmul.f32 %v5585_v2, %v2027_v32 }
 0xbfd   :  { %2031 = vrot.lane.b32.xlu0 %v2029_v9, %s6029_s15 }
 0xc5f   :  { %v1687_v3 = vpop.permute.xlu0 %1686 }
 0xc60   :  { %v1689_v5 = vadd.f32 %v1687_v3, %v6424_v37  ;;  %v1697_v37 = vmul.f32 %v5581_v54, %v6594_v52 }
 0xc62   :  { %5586 = vtanh.f32 %v1689_v5 }
 0xc67   :  { %v1858_v6 = vpop.permute.xlu1 %1857 }
 0xc68   :  { %v1860_v7 = vadd.f32 %v1858_v6, %v1766_v34  ;;  %v2036_v34 = vsub.f32 1.0, %v5585_v2 }
 0xc6a   :  { %5588 = vtanh.f32 %v1860_v7 }
 0xc6c   :  { %v5587_v10 = vpop.eup %5586 }
 0xc6d   :  { %1693 = vrot.lane.b32.xlu1 %v5587_v10, %s6030_s28 }
 0xc6f   :  { %v2032_v12 = vpop.permute.xlu0 %2031 }
 0xc70   :  { %v2034_v13 = vadd.f32 %v2032_v12, %v1943_v38  ;;  %v2042_v38 = vmul.f32 %v5585_v2, %v6606_v4 }
 0xc72   :  { %5590 = vtanh.f32 %v2034_v13 }
 0xc74   :  { %v5589_v15 = vpop.eup %5588 }
 0xc75   :  { %1864 = vrot.lane.b32.xlu0 %v5589_v15, %s6030_s28 }
 0xc7c   :  { %v5591_v16 = vpop.eup %5590 }
 0xc7d   :  { %2038 = vrot.lane.b32.xlu1 %v5591_v16, %s6030_s28 }
 0xcdf   :  { %v1694_v8 = vpop.permute.xlu1 %1693 }
 0xce0   :  { %v1696_v19 = vmul.f32 %v1694_v8, %v1691_v17 }
 0xce2   :  { %v6663_v21 = vadd.f32 %v1697_v37, %v1696_v19 }
 0xce4   :  { %2050 = vrot.lane.b32.xlu0 %v6663_v21, %s6030_s28 }
 0xce7   :  { %v1865_v26 = vpop.permute.xlu0 %1864 }
 0xce8   :  { %v1867_v30 = vmul.f32 %v1865_v26, %v1862_v25 }
 0xcea   :  { %v6668_v33 = vadd.f32 %v1868_v27, %v1867_v30 }
 0xcec   :  { %2221 = vrot.lane.b32.xlu1 %v6668_v33, %s6030_s28  ;;  %v2321_v35 = vadd.f32 %v6668_v33, %v6594_v52 }
 0xcef   :  { %v2039_v36 = vpop.permute.xlu1 %2038 }
 0xcf0   :  { %v2041_v40 = vmul.f32 %v2039_v36, %v2036_v34  ;;  %2323 = vrot.lane.b32.xlu1 %v2321_v35, %s6030_s28 }
 0xcf2   :  { %v6676_v42 = vadd.f32 %v2042_v38, %v2041_v40 }
 0xcf4   :  { %2045 = vrot.lane.b32.xlu0 %v6676_v42, %s6030_s28 }
 0xd56   :  { %v2051_v57 = vpop.permute.xlu0 %2050 }
 0xd57   :  { %4983 = vmatmul.mubr.msk.f32.vlgmr.msra.gmra.mrb[28].mxu0 %vm576_vm4, %v2051_v57  ;;  %4994 = vmatmul.mubr.msk.f32.vlgmr.msra.gmra.mrb[24].mxu1 %vm576_vm4, %v2051_v57 }
 0xd58   :  { %5374 = vmatpush3.bf16.msra.mxu0 %v6464_v11  ;;  %5380 = vmatpush3.bf16.msra.mxu1 %v6521_v14 }
 0xd59   :  { %5375 = vmatprep.subr.bf16.mxu0 %v6027_v23  ;;  %5004 = vmatprep.mubr.msk.f32.mxu0 %vm6028_vm3, %v6026_v0 }
 0xd5a   :  { %5381 = vmatprep.subr.bf16.mxu1 %v6027_v23  ;;  %5015 = vmatprep.mubr.msk.f32.mxu1 %vm6028_vm3, %v6026_v0 }
 0xd5c   :  { %5377 = vmatpush3.bf16.msra.mxu0 %v6469_v62  ;;  %5383 = vmatpush3.bf16.msra.mxu1 %v6527_v18 }
 0xd5d   :  { %5384 = vmatprep.subr.bf16.mxu0 %v6027_v23  ;;  %5390 = vmatprep.subr.bf16.mxu1 %v6027_v23 }
 0xd5e   :  { %v2222_v52 = vpop.permute.xlu1 %2221 }
 0xd5f   :  { %5005 = vmatmul.mubr.msk.f32.vlgmr.msra.gmra.mrb[30].mxu0 %vm576_vm4, %v2222_v52 }
 0xd60   :  { %5386 = vmatpush3.bf16.msra.mxu0 %v6537_v20  ;;  %5026 = vmatprep.mubr.msk.f32.mxu0 %vm6028_vm3, %v6026_v0 }
 0xd61   :  { %5387 = vmatprep.subr.bf16.mxu0 %v6027_v23 }
 0xd62   :  { %v2324_v4 = vpop.permute.xlu1 %2323 }
 0xd63   :  { %5016 = vmatmul.mubr.msk.f32.vlgmr.msra.gmra.mrb[26].mxu1 %vm576_vm4, %v2324_v4 }
 0xd64   :  { %5389 = vmatpush3.bf16.msra.mxu0 %v6543_v28  ;;  %5392 = vmatpush3.bf16.msra.mxu1 %v6373_v39 }
 0xd65   :  { %5396 = vmatprep.subr.bf16.mxu0 %v6027_v23  ;;  %5393 = vmatprep.subr.bf16.mxu1 %v6027_v23 }
 0xd66   :  { %v2046_v41 = vpop.permute.xlu0 %2045  ;;  %5037 = vmatprep.mubr.msk.f32.mxu1 %vm6028_vm3, %v6026_v0 }
 0xd67   :  { %2048 = vst.msk [vmem:[#allocation3 + $0x8] sm:$0xff] %vm576_vm4, %v2046_v41  ;;  %5027 = vmatmul.mubr.msk.f32.vlgmr.msra.gmra.mrb[32].mxu0 %vm576_vm4, %v2046_v41 }
 0xd68   :  { %5398 = vmatpush3.bf16.msra.mxu0 %v6446_v61  ;;  %5395 = vmatpush3.bf16.msra.mxu1 %v6378_v49 }
 0xd69   :  { %5399 = vmatprep.subr.bf16.mxu0 %v6027_v23  ;;  %5048 = vmatprep.mubr.msk.f32.mxu0 %vm6028_vm3, %v6026_v0 }
 0xd6a   :  { %5402 = vmatprep.subr.bf16.mxu1 %v6027_v23 }
 0xd6c   :  { %5401 = vmatpush3.bf16.msra.mxu0 %v6452_v1 }
 0xd6d   :  { %5408 = vmatprep.subr.bf16.mxu0 %v6027_v23 }
 0xe2a   :  { %v2120_v44 = vpop.f32.mrb[28].mxu0  ;;  %v2216_v46 = vpop.f32.mrb[24].mxu1 }
 0xe2b   :  { %v2121_v48 = vadd.f32 %v6413_v24, %v2120_v44  ;;  %v4984_v53 = vpop.f32.mrb[29].mxu0  ;;  %v4995_v54 = vpop.f32.mrb[25].mxu1  ;;  %v2217_v3 = vadd.f32 %v6500_v29, %v2216_v46 }
 0xe2d   :  { %2132 = vrot.lane.b32.xlu0 %v2121_v48, %s6029_s15  ;;  %v2124_v24 = vadd.f32 %v2121_v48, %v6430_v45 }
 0xe2f   :  { %v4496_v9 = vmul.f32 -1.442695, %v2124_v24 }
 0xe31   :  { %5592 = vpow2.f32 %v4496_v9 }
 0xe32   :  { %v2291_v55 = vpop.f32.mrb[30].mxu0 }
 0xe33   :  { %v2292_v56 = vadd.f32 %v6495_v22, %v2291_v55  ;;  %v5006_v31 = vpop.f32.mrb[31].mxu0 }
 0xe35   :  { %2303 = vrot.lane.b32.xlu1 %v2292_v56, %s6029_s15  ;;  %v2295_v5 = vadd.f32 %v2292_v56, %v2217_v3 }
 0xe36   :  { %v2393_v58 = vpop.f32.mrb[26].mxu1 }
 0xe37   :  { %v5017_v60 = vpop.f32.mrb[27].mxu1  ;;  %v4499_v6 = vmul.f32 -1.442695, %v2295_v5  ;;  %v2394_v7 = vadd.f32 %v6581_v59, %v2393_v58 }
 0xe39   :  { %5594 = vpow2.f32 %v4499_v6 }
 0xe3a   :  { %v2465_v63 = vpop.f32.mrb[32].mxu0 }
 0xe3b   :  { %v2466_v2 = vadd.f32 %v6575_v51, %v2465_v63  ;;  %v5028_v32 = vpop.f32.mrb[33].mxu0  ;;  %v5593_v12 = vpop.eup %5592 }
 0xe3c   :  { %v2128_v15 = vadd.f32 1.0, %v5593_v12 }
 0xe3d   :  { %2477 = vrot.lane.b32.xlu0 %v2466_v2, %s6029_s15  ;;  %v2469_v10 = vadd.f32 %v2466_v2, %v2394_v7 }
 0xe3f   :  { %v4502_v13 = vmul.f32 -1.442695, %v2469_v10 }
 0xe41   :  { %5596 = vpow2.f32 %v4502_v13 }
 0xe42   :  { %5598 = vrcp.f32 %v2128_v15  ;;  %v6786_v15 = vld [vmem:[#allocation13] ss:$0 sm:$0xff] }
 0xe43   :  { %v5595_v16 = vpop.eup %5594 }
 0xe44   :  { %v2299_v17 = vadd.f32 1.0, %v5595_v16 }
 0xe46   :  { %5600 = vrcp.f32 %v2299_v17 }
 0xe4b   :  { %v5597_v8 = vpop.eup %5596 }
 0xe4c   :  { %v5599_v37 = vpop.eup %5598  ;;  %v2473_v26 = vadd.f32 1.0, %v5597_v8 }
 0xe4d   :  { %v2142_v54 = vsub.f32 1.0, %v5599_v37 }
 0xe4e   :  { %5602 = vrcp.f32 %v2473_v26 }
 0xe50   :  { %v5601_v27 = vpop.eup %5600 }
 0xe51   :  { %v2313_v58 = vsub.f32 1.0, %v5601_v27  ;;  %v2319_v63 = vmul.f32 %v5601_v27, %v6668_v33 }
 0xe58   :  { %v5603_v35 = vpop.eup %5602 }
 0xe59   :  { %v2487_v24 = vsub.f32 1.0, %v5603_v35  ;;  %v2493_v5 = vmul.f32 %v5603_v35, %v6676_v42 }
 0xe9f   :  { %v2133_v19 = vpop.permute.xlu0 %2132 }
 0xea0   :  { %v2135_v25 = vmul.f32 %v5599_v37, %v2133_v19 }
 0xea2   :  { %2137 = vrot.lane.b32.xlu1 %v2135_v25, %s6029_s15 }
 0xea7   :  { %v2304_v30 = vpop.permute.xlu1 %2303 }
 0xea8   :  { %v2306_v34 = vmul.f32 %v5601_v27, %v2304_v30 }
 0xeaa   :  { %2308 = vrot.lane.b32.xlu0 %v2306_v34, %s6029_s15 }
 0xeaf   :  { %v2478_v36 = vpop.permute.xlu0 %2477 }
 0xeb0   :  { %v2480_v38 = vmul.f32 %v5603_v35, %v2478_v36 }
 0xeb2   :  { %2482 = vrot.lane.b32.xlu1 %v2480_v38, %s6029_s15 }
 0xf14   :  { %v2138_v40 = vpop.permute.xlu1 %2137 }
 0xf15   :  { %v2140_v57 = vadd.f32 %v2138_v40, %v6430_v45  ;;  %v2148_v45 = vmul.f32 %v5599_v37, %v6663_v21 }
 0xf17   :  { %5604 = vtanh.f32 %v2140_v57 }
 0xf1c   :  { %v2309_v52 = vpop.permute.xlu0 %2308 }
 0xf1d   :  { %v2311_v4 = vadd.f32 %v2309_v52, %v2217_v3 }
 0xf1f   :  { %5606 = vtanh.f32 %v2311_v4 }
 0xf21   :  { %v5605_v41 = vpop.eup %5604 }
 0xf22   :  { %2144 = vrot.lane.b32.xlu0 %v5605_v41, %s6030_s28 }
 0xf24   :  { %v2483_v44 = vpop.permute.xlu1 %2482 }
 0xf25   :  { %v2485_v46 = vadd.f32 %v2483_v44, %v2394_v7 }
 0xf27   :  { %5608 = vtanh.f32 %v2485_v46 }
 0xf29   :  { %v5607_v48 = vpop.eup %5606 }
 0xf2a   :  { %2315 = vrot.lane.b32.xlu1 %v5607_v48, %s6030_s28 }
 0xf31   :  { %v5609_v53 = vpop.eup %5608 }
 0xf32   :  { %2489 = vrot.lane.b32.xlu0 %v5609_v53, %s6030_s28 }
 0xf94   :  { %v2145_v55 = vpop.permute.xlu0 %2144 }
 0xf95   :  { %v2147_v56 = vmul.f32 %v2145_v55, %v2142_v54 }
 0xf97   :  { %v6733_v31 = vadd.f32 %v2148_v45, %v2147_v56 }
 0xf99   :  { %2501 = vrot.lane.b32.xlu1 %v6733_v31, %s6030_s28 }
 0xf9c   :  { %v2316_v60 = vpop.permute.xlu1 %2315 }
 0xf9d   :  { %v2318_v2 = vmul.f32 %v2316_v60, %v2313_v58 }
 0xf9f   :  { %v6738_v32 = vadd.f32 %v2319_v63, %v2318_v2 }
 0xfa1   :  { %2672 = vrot.lane.b32.xlu0 %v6738_v32, %s6030_s28  ;;  %v2772_v9 = vadd.f32 %v6738_v32, %v6663_v21 }
 0xfa4   :  { %v2490_v3 = vpop.permute.xlu0 %2489 }
 0xfa5   :  { %v2492_v6 = vmul.f32 %v2490_v3, %v2487_v24  ;;  %2774 = vrot.lane.b32.xlu0 %v2772_v9, %s6030_s28 }
 0xfa7   :  { %v6746_v7 = vadd.f32 %v2493_v5, %v2492_v6 }
 0xfa9   :  { %2496 = vrot.lane.b32.xlu1 %v6746_v7, %s6030_s28 }
0x100b   :  { %v2502_v33 = vpop.permute.xlu1 %2501 }
0x100c   :  { %5038 = vmatmul.mubr.msk.f32.vlgmr.msra.gmra.mrb[28].mxu1 %vm576_vm4, %v2502_v33  ;;  %5049 = vmatmul.mubr.msk.f32.vlgmr.msra.gmra.mrb[34].mxu0 %vm576_vm4, %v2502_v33 }
0x100d   :  { %5404 = vmatpush3.bf16.msra.mxu1 %v6464_v11  ;;  %5410 = vmatpush3.bf16.msra.mxu0 %v6521_v14 }
0x100e   :  { %5405 = vmatprep.subr.bf16.mxu1 %v6027_v23  ;;  %5059 = vmatprep.mubr.msk.f32.mxu1 %vm6028_vm3, %v6026_v0 }
0x100f   :  { %5411 = vmatprep.subr.bf16.mxu0 %v6027_v23  ;;  %5070 = vmatprep.mubr.msk.f32.mxu0 %vm6028_vm3, %v6026_v0 }
0x1011   :  { %5407 = vmatpush3.bf16.msra.mxu1 %v6469_v62  ;;  %5413 = vmatpush3.bf16.msra.mxu0 %v6527_v18 }
0x1012   :  { %5414 = vmatprep.subr.bf16.mxu1 %v6027_v23  ;;  %5420 = vmatprep.subr.bf16.mxu0 %v6027_v23 }
0x1013   :  { %v2673_v21 = vpop.permute.xlu0 %2672 }
0x1014   :  { %5060 = vmatmul.mubr.msk.f32.vlgmr.msra.gmra.mrb[30].mxu1 %vm576_vm4, %v2673_v21 }
0x1015   :  { %5416 = vmatpush3.bf16.msra.mxu1 %v6537_v20  ;;  %5081 = vmatprep.mubr.msk.f32.mxu1 %vm6028_vm3, %v6026_v0 }
0x1016   :  { %5417 = vmatprep.subr.bf16.mxu1 %v6027_v23 }
0x1017   :  { %v2775_v42 = vpop.permute.xlu0 %2774 }
0x1018   :  { %5071 = vmatmul.mubr.msk.f32.vlgmr.msra.gmra.mrb[36].mxu0 %vm576_vm4, %v2775_v42 }
0x1019   :  { %5419 = vmatpush3.bf16.msra.mxu1 %v6543_v28  ;;  %5422 = vmatpush3.bf16.msra.mxu0 %v6373_v39 }
0x101a   :  { %5426 = vmatprep.subr.bf16.mxu1 %v6027_v23  ;;  %5423 = vmatprep.subr.bf16.mxu0 %v6027_v23 }
0x101b   :  { %v2497_v10 = vpop.permute.xlu1 %2496  ;;  %5092 = vmatprep.mubr.msk.f32.mxu0 %vm6028_vm3, %v6026_v0 }
0x101c   :  { %2499 = vst.msk [vmem:[#allocation3 + $0x10] sm:$0xff] %vm576_vm4, %v2497_v10  ;;  %5082 = vmatmul.mubr.msk.f32.vlgmr.msra.gmra.mrb[32].mxu1 %vm576_vm4, %v2497_v10 }
0x101d   :  { %5428 = vmatpush3.bf16.msra.mxu1 %v6446_v61  ;;  %5425 = vmatpush3.bf16.msra.mxu0 %v6378_v49 }
0x101e   :  { %5429 = vmatprep.subr.bf16.mxu1 %v6027_v23  ;;  %5103 = vmatprep.mubr.msk.f32.mxu1 %vm6028_vm3, %v6026_v0 }
0x101f   :  { %5432 = vmatprep.subr.bf16.mxu0 %v6027_v23 }
0x1021   :  { %5431 = vmatpush3.bf16.msra.mxu1 %v6452_v1 }
0x1022   :  { %5438 = vmatprep.subr.bf16.mxu1 %v6027_v23 }
0x10df   :  { %v2571_v12 = vpop.f32.mrb[28].mxu1  ;;  %v2667_v13 = vpop.f32.mrb[34].mxu0 }
0x10e0   :  { %v2572_v16 = vadd.f32 %v6786_v15, %v2571_v12  ;;  %v5039_v17 = vpop.f32.mrb[29].mxu1  ;;  %v5050_v8 = vpop.f32.mrb[35].mxu0  ;;  %v2668_v40 = vadd.f32 %v6500_v29, %v2667_v13 }
0x10e2   :  { %2583 = vrot.lane.b32.xlu1 %v2572_v16, %s6029_s15  ;;  %v2575_v36 = vadd.f32 %v2572_v16, %v6428_v43 }
0x10e4   :  { %v4504_v38 = vmul.f32 -1.442695, %v2575_v36 }
0x10e6   :  { %5610 = vpow2.f32 %v4504_v38 }
0x10e7   :  { %v2742_v37 = vpop.f32.mrb[30].mxu1 }
0x10e8   :  { %v2743_v19 = vadd.f32 %v6495_v22, %v2742_v37  ;;  %v5061_v25 = vpop.f32.mrb[31].mxu1 }
0x10ea   :  { %2754 = vrot.lane.b32.xlu0 %v2743_v19, %s6029_s15  ;;  %v2746_v57 = vadd.f32 %v2743_v19, %v2668_v40 }
0x10eb   :  { %v2844_v26 = vpop.f32.mrb[36].mxu0 }
0x10ec   :  { %v5072_v27 = vpop.f32.mrb[37].mxu0  ;;  %v4507_v52 = vmul.f32 -1.442695, %v2746_v57  ;;  %v2845_v22 = vadd.f32 %v6581_v59, %v2844_v26 }
0x10ee   :  { %5612 = vpow2.f32 %v4507_v52 }
0x10ef   :  { %v2916_v30 = vpop.f32.mrb[32].mxu1 }
0x10f0   :  { %v2917_v34 = vadd.f32 %v6575_v51, %v2916_v30  ;;  %v5083_v35 = vpop.f32.mrb[33].mxu1  ;;  %v5611_v41 = vpop.eup %5610 }
0x10f1   :  { %v2579_v46 = vadd.f32 1.0, %v5611_v41 }
0x10f2   :  { %2928 = vrot.lane.b32.xlu1 %v2917_v34, %s6029_s15  ;;  %v2920_v4 = vadd.f32 %v2917_v34, %v2845_v22 }
0x10f4   :  { %v4510_v44 = vmul.f32 -1.442695, %v2920_v4 }
0x10f6   :  { %5614 = vpow2.f32 %v4510_v44 }
0x10f7   :  { %5616 = vrcp.f32 %v2579_v46  ;;  %v6860_v46 = vld [vmem:[#allocation18] ss:$0 sm:$0xff] }
0x10f8   :  { %v5613_v48 = vpop.eup %5612 }
0x10f9   :  { %v2750_v53 = vadd.f32 1.0, %v5613_v48 }
0x10fb   :  { %5618 = vrcp.f32 %v2750_v53 }
0x1100   :  { %v5615_v54 = vpop.eup %5614 }
0x1101   :  { %v5617_v55 = vpop.eup %5616  ;;  %v2924_v29 = vadd.f32 1.0, %v5615_v54 }
0x1102   :  { %v2593_v16 = vsub.f32 1.0, %v5617_v55 }
0x1103   :  { %5620 = vrcp.f32 %v2924_v29 }
0x1105   :  { %v5619_v58 = vpop.eup %5618 }
0x1106   :  { %v2764_v19 = vsub.f32 1.0, %v5619_v58  ;;  %v2770_v26 = vmul.f32 %v5619_v58, %v6738_v32 }
0x110d   :  { %v5621_v2 = vpop.eup %5620 }
0x110e   :  { %v2938_v34 = vsub.f32 1.0, %v5621_v2  ;;  %v2944_v38 = vmul.f32 %v5621_v2, %v6746_v7 }
0x1154   :  { %v2584_v45 = vpop.permute.xlu1 %2583 }
0x1155   :  { %v2586_v56 = vmul.f32 %v5617_v55, %v2584_v45 }
0x1157   :  { %2588 = vrot.lane.b32.xlu0 %v2586_v56, %s6029_s15 }
0x115c   :  { %v2755_v60 = vpop.permute.xlu0 %2754 }
0x115d   :  { %v2757_v63 = vmul.f32 %v5619_v58, %v2755_v60 }
0x115f   :  { %2759 = vrot.lane.b32.xlu1 %v2757_v63, %s6029_s15  ;;  %v6867_v63 = vld [vmem:[#allocation16] ss:$0 sm:$0xff] }
0x1164   :  { %v2929_v24 = vpop.permute.xlu1 %2928 }
0x1165   :  { %v2931_v9 = vmul.f32 %v5621_v2, %v2929_v24 }
0x1167   :  { %2933 = vrot.lane.b32.xlu0 %v2931_v9, %s6029_s15 }
0x11c9   :  { %v2589_v3 = vpop.permute.xlu0 %2588 }
0x11ca   :  { %v2591_v5 = vadd.f32 %v2589_v3, %v6428_v43  ;;  %v2599_v43 = vmul.f32 %v5617_v55, %v6733_v31 }
0x11cc   :  { %5622 = vtanh.f32 %v2591_v5 }
0x11d1   :  { %v2760_v6 = vpop.permute.xlu1 %2759 }
0x11d2   :  { %v2762_v33 = vadd.f32 %v2760_v6, %v2668_v40 }
0x11d4   :  { %5624 = vtanh.f32 %v2762_v33 }
0x11d6   :  { %v5623_v21 = vpop.eup %5622 }
0x11d7   :  { %2595 = vrot.lane.b32.xlu1 %v5623_v21, %s6030_s28 }
0x11d9   :  { %v2934_v42 = vpop.permute.xlu0 %2933 }
0x11da   :  { %v2936_v10 = vadd.f32 %v2934_v42, %v2845_v22 }
0x11dc   :  { %5626 = vtanh.f32 %v2936_v10 }
0x11de   :  { %v5625_v12 = vpop.eup %5624 }
0x11df   :  { %2766 = vrot.lane.b32.xlu0 %v5625_v12, %s6030_s28 }
0x11e6   :  { %v5627_v13 = vpop.eup %5626 }
0x11e7   :  { %2940 = vrot.lane.b32.xlu1 %v5627_v13, %s6030_s28 }
0x1249   :  { %v2596_v17 = vpop.permute.xlu1 %2595 }
0x124a   :  { %v2598_v8 = vmul.f32 %v2596_v17, %v2593_v16 }
0x124c   :  { %v6805_v37 = vadd.f32 %v2599_v43, %v2598_v8 }
0x124e   :  { %2952 = vrot.lane.b32.xlu0 %v6805_v37, %s6030_s28 }
0x1251   :  { %v2767_v25 = vpop.permute.xlu0 %2766 }
0x1252   :  { %v2769_v27 = vmul.f32 %v2767_v25, %v2764_v19 }
0x1254   :  { %v6810_v30 = vadd.f32 %v2770_v26, %v2769_v27 }
0x1256   :  { %3123 = vrot.lane.b32.xlu1 %v6810_v30, %s6030_s28  ;;  %v3223_v35 = vadd.f32 %v6810_v30, %v6733_v31 }
0x1259   :  { %v2941_v36 = vpop.permute.xlu1 %2940 }
0x125a   :  { %v2943_v40 = vmul.f32 %v2941_v36, %v2938_v34  ;;  %3225 = vrot.lane.b32.xlu1 %v3223_v35, %s6030_s28 }
0x125c   :  { %v6818_v57 = vadd.f32 %v2944_v38, %v2943_v40 }
0x125e   :  { %2947 = vrot.lane.b32.xlu0 %v6818_v57, %s6030_s28 }
0x12c0   :  { %v2953_v32 = vpop.permute.xlu0 %2952 }
0x12c1   :  { %5093 = vmatmul.mubr.msk.f32.vlgmr.msra.gmra.mrb[38].mxu0 %vm576_vm4, %v2953_v32  ;;  %5104 = vmatmul.mubr.msk.f32.vlgmr.msra.gmra.mrb[34].mxu1 %vm576_vm4, %v2953_v32 }
0x12c2   :  { %5434 = vmatpush3.bf16.msra.mxu0 %v6464_v11  ;;  %5440 = vmatpush3.bf16.msra.mxu1 %v6521_v14 }
0x12c3   :  { %5435 = vmatprep.subr.bf16.mxu0 %v6027_v23  ;;  %5114 = vmatprep.mubr.msk.f32.mxu0 %vm6028_vm3, %v6026_v0 }
0x12c4   :  { %5441 = vmatprep.subr.bf16.mxu1 %v6027_v23  ;;  %5125 = vmatprep.mubr.msk.f32.mxu1 %vm6028_vm3, %v6026_v0 }
0x12c6   :  { %5437 = vmatpush3.bf16.msra.mxu0 %v6469_v62  ;;  %5443 = vmatpush3.bf16.msra.mxu1 %v6527_v18 }
0x12c7   :  { %5444 = vmatprep.subr.bf16.mxu0 %v6027_v23  ;;  %5450 = vmatprep.subr.bf16.mxu1 %v6027_v23 }
0x12c8   :  { %v3124_v31 = vpop.permute.xlu1 %3123 }
0x12c9   :  { %5115 = vmatmul.mubr.msk.f32.vlgmr.msra.gmra.mrb[40].mxu0 %vm576_vm4, %v3124_v31 }
0x12ca   :  { %5446 = vmatpush3.bf16.msra.mxu0 %v6537_v20  ;;  %5136 = vmatprep.mubr.msk.f32.mxu0 %vm6028_vm3, %v6026_v0 }
0x12cb   :  { %5447 = vmatprep.subr.bf16.mxu0 %v6027_v23 }
0x12cc   :  { %v3226_v7 = vpop.permute.xlu1 %3225 }
0x12cd   :  { %5126 = vmatmul.mubr.msk.f32.vlgmr.msra.gmra.mrb[36].mxu1 %vm576_vm4, %v3226_v7 }
0x12ce   :  { %5449 = vmatpush3.bf16.msra.mxu0 %v6543_v28  ;;  %5452 = vmatpush3.bf16.msra.mxu1 %v6373_v39 }
0x12cf   :  { %5456 = vmatprep.subr.bf16.mxu0 %v6027_v23  ;;  %5453 = vmatprep.subr.bf16.mxu1 %v6027_v23 }
0x12d0   :  { %v2948_v52 = vpop.permute.xlu0 %2947  ;;  %5147 = vmatprep.mubr.msk.f32.mxu1 %vm6028_vm3, %v6026_v0 }
0x12d1   :  { %2950 = vst.msk [vmem:[#allocation3 + $0x18] sm:$0xff] %vm576_vm4, %v2948_v52  ;;  %5137 = vmatmul.mubr.msk.f32.vlgmr.msra.gmra.mrb[42].mxu0 %vm576_vm4, %v2948_v52 }
0x12d2   :  { %5458 = vmatpush3.bf16.msra.mxu0 %v6446_v61  ;;  %5455 = vmatpush3.bf16.msra.mxu1 %v6378_v49 }
0x12d3   :  { %5459 = vmatprep.subr.bf16.mxu0 %v6027_v23  ;;  %5158 = vmatprep.mubr.msk.f32.mxu0 %vm6028_vm3, %v6026_v0 }
0x12d4   :  { %5462 = vmatprep.subr.bf16.mxu1 %v6027_v23 }
0x12d6   :  { %5461 = vmatpush3.bf16.msra.mxu0 %v6452_v1 }
0x12d7   :  { %5468 = vmatprep.subr.bf16.mxu0 %v6027_v23 }
0x1394   :  { %v3022_v39 = vpop.f32.mrb[38].mxu0  ;;  %v3118_v22 = vpop.f32.mrb[34].mxu1 }
0x1395   :  { %v3023_v4 = vadd.f32 %v6786_v15, %v3022_v39  ;;  %v5094_v41 = vpop.f32.mrb[39].mxu0  ;;  %v5105_v44 = vpop.f32.mrb[35].mxu1  ;;  %v3119_v2 = vadd.f32 %v6867_v63, %v3118_v22 }
0x1397   :  { %3034 = vrot.lane.b32.xlu0 %v3023_v4, %s6029_s15  ;;  %v3026_v58 = vadd.f32 %v3023_v4, %v6434_v50 }
0x1399   :  { %v4512_v60 = vmul.f32 -1.442695, %v3026_v58 }
0x139b   :  { %5628 = vpow2.f32 %v4512_v60 }
0x139c   :  { %v3193_v49 = vpop.f32.mrb[40].mxu0 }
0x139d   :  { %v3194_v48 = vadd.f32 %v6860_v46, %v3193_v49  ;;  %v5116_v53 = vpop.f32.mrb[41].mxu0 }
0x139f   :  { %3205 = vrot.lane.b32.xlu1 %v3194_v48, %s6029_s15  ;;  %v3197_v24 = vadd.f32 %v3194_v48, %v3119_v2 }
0x13a0   :  { %v3295_v54 = vpop.f32.mrb[36].mxu1 }
0x13a1   :  { %v5127_v55 = vpop.f32.mrb[37].mxu1  ;;  %v4515_v9 = vmul.f32 -1.442695, %v3197_v24  ;;  %v3296_v3 = vadd.f32 %v6581_v59, %v3295_v54 }
0x13a3   :  { %5630 = vpow2.f32 %v4515_v9 }
0x13a4   :  { %v3367_v45 = vpop.f32.mrb[42].mxu0 }
0x13a5   :  { %v3368_v56 = vadd.f32 %v6575_v51, %v3367_v45  ;;  %v5138_v29 = vpop.f32.mrb[43].mxu0  ;;  %v5629_v6 = vpop.eup %5628 }
0x13a6   :  { %v3030_v51 = vadd.f32 1.0, %v5629_v6 }
0x13a7   :  { %3379 = vrot.lane.b32.xlu0 %v3368_v56, %s6029_s15  ;;  %v3371_v5 = vadd.f32 %v3368_v56, %v3296_v3 }
0x13a9   :  { %v4518_v33 = vmul.f32 -1.442695, %v3371_v5 }
0x13ab   :  { %5632 = vpow2.f32 %v4518_v33 }
0x13ac   :  { %5634 = vrcp.f32 %v3030_v51 }
0x13ad   :  { %v5631_v21 = vpop.eup %5630 }
0x13ae   :  { %v3201_v42 = vadd.f32 1.0, %v5631_v21 }
0x13b0   :  { %5636 = vrcp.f32 %v3201_v42 }
0x13b5   :  { %v5633_v10 = vpop.eup %5632 }
0x13b6   :  { %v5635_v12 = vpop.eup %5634  ;;  %v3375_v17 = vadd.f32 1.0, %v5633_v10 }
0x13b7   :  { %v3044_v52 = vsub.f32 1.0, %v5635_v12 }
0x13b8   :  { %5638 = vrcp.f32 %v3375_v17  ;;  %v6942_v17 = vld [vmem:[#allocation22] ss:$0 sm:$0xff] }
0x13ba   :  { %v5637_v43 = vpop.eup %5636 }
0x13bb   :  { %v3215_v41 = vsub.f32 1.0, %v5637_v43  ;;  %v3221_v49 = vmul.f32 %v5637_v43, %v6810_v30 }
0x13c2   :  { %v5639_v19 = vpop.eup %5638 }
0x13c3   :  { %v3389_v54 = vsub.f32 1.0, %v5639_v19  ;;  %v3395_v56 = vmul.f32 %v5639_v19, %v6818_v57 }
0x1409   :  { %v3035_v13 = vpop.permute.xlu0 %3034 }
0x140a   :  { %v3037_v16 = vmul.f32 %v5635_v12, %v3035_v13 }
0x140c   :  { %3039 = vrot.lane.b32.xlu1 %v3037_v16, %s6029_s15 }
0x1411   :  { %v3206_v59 = vpop.permute.xlu1 %3205 }
0x1412   :  { %v3208_v8 = vmul.f32 %v5637_v43, %v3206_v59 }
0x1414   :  { %3210 = vrot.lane.b32.xlu0 %v3208_v8, %s6029_s15 }
0x1419   :  { %v3380_v25 = vpop.permute.xlu0 %3379 }
0x141a   :  { %v3382_v26 = vmul.f32 %v5639_v19, %v3380_v25 }
0x141c   :  { %3384 = vrot.lane.b32.xlu1 %v3382_v26, %s6029_s15 }
0x147e   :  { %v3040_v27 = vpop.permute.xlu1 %3039 }
0x147f   :  { %v3042_v34 = vadd.f32 %v3040_v27, %v6434_v50  ;;  %v3050_v50 = vmul.f32 %v5635_v12, %v6805_v37 }
0x1481   :  { %5640 = vtanh.f32 %v3042_v34 }
0x1486   :  { %v3211_v35 = vpop.permute.xlu0 %3210 }
0x1487   :  { %v3213_v36 = vadd.f32 %v3211_v35, %v3119_v2 }
0x1489   :  { %5642 = vtanh.f32 %v3213_v36 }
0x148b   :  { %v5641_v38 = vpop.eup %5640 }
0x148c   :  { %3046 = vrot.lane.b32.xlu0 %v5641_v38, %s6030_s28 }
0x148e   :  { %v3385_v40 = vpop.permute.xlu1 %3384 }
0x148f   :  { %v3387_v32 = vadd.f32 %v3385_v40, %v3296_v3 }
0x1491   :  { %5644 = vtanh.f32 %v3387_v32 }
0x1493   :  { %v5643_v31 = vpop.eup %5642 }
0x1494   :  { %3217 = vrot.lane.b32.xlu1 %v5643_v31, %s6030_s28 }
0x149b   :  { %v5645_v7 = vpop.eup %5644 }
0x149c   :  { %3391 = vrot.lane.b32.xlu0 %v5645_v7, %s6030_s28 }
0x14fe   :  { %v3047_v39 = vpop.permute.xlu0 %3046 }
0x14ff   :  { %v3049_v22 = vmul.f32 %v3047_v39, %v3044_v52 }
0x1501   :  { %v6879_v4 = vadd.f32 %v3050_v50, %v3049_v22 }
0x1503   :  { %3403 = vrot.lane.b32.xlu1 %v6879_v4, %s6030_s28 }
0x1506   :  { %v3218_v44 = vpop.permute.xlu1 %3217 }
0x1507   :  { %v3220_v48 = vmul.f32 %v3218_v44, %v3215_v41 }
0x1509   :  { %v6884_v53 = vadd.f32 %v3221_v49, %v3220_v48 }
0x150b   :  { %3574 = vrot.lane.b32.xlu0 %v6884_v53, %s6030_s28  ;;  %v3674_v55 = vadd.f32 %v6884_v53, %v6805_v37 }
0x150e   :  { %v3392_v45 = vpop.permute.xlu0 %3391 }
0x150f   :  { %v3394_v29 = vmul.f32 %v3392_v45, %v3389_v54  ;;  %3676 = vrot.lane.b32.xlu0 %v3674_v55, %s6030_s28 }
0x1511   :  { %v6892_v58 = vadd.f32 %v3395_v56, %v3394_v29 }
0x1513   :  { %3398 = vrot.lane.b32.xlu1 %v6892_v58, %s6030_s28 }
0x1575   :  { %v3404_v30 = vpop.permute.xlu1 %3403 }
0x1576   :  { %5148 = vmatmul.mubr.msk.f32.vlgmr.msra.gmra.mrb[38].mxu1 %vm576_vm4, %v3404_v30  ;;  %5159 = vmatmul.mubr.msk.f32.vlgmr.msra.gmra.mrb[44].mxu0 %vm576_vm4, %v3404_v30 }
0x1577   :  { %5464 = vmatpush3.bf16.msra.mxu1 %v6464_v11  ;;  %5470 = vmatpush3.bf16.msra.mxu0 %v6521_v14 }
0x1578   :  { %5465 = vmatprep.subr.bf16.mxu1 %v6027_v23  ;;  %5169 = vmatprep.mubr.msk.f32.mxu1 %vm6028_vm3, %v6026_v0 }
0x1579   :  { %5471 = vmatprep.subr.bf16.mxu0 %v6027_v23  ;;  %5180 = vmatprep.mubr.msk.f32.mxu0 %vm6028_vm3, %v6026_v0 }
0x157b   :  { %5467 = vmatpush3.bf16.msra.mxu1 %v6469_v62  ;;  %5473 = vmatpush3.bf16.msra.mxu0 %v6527_v18 }
0x157c   :  { %5474 = vmatprep.subr.bf16.mxu1 %v6027_v23  ;;  %5480 = vmatprep.subr.bf16.mxu0 %v6027_v23 }
0x157d   :  { %v3575_v37 = vpop.permute.xlu0 %3574 }
0x157e   :  { %5170 = vmatmul.mubr.msk.f32.vlgmr.msra.gmra.mrb[40].mxu1 %vm576_vm4, %v3575_v37 }
0x157f   :  { %5476 = vmatpush3.bf16.msra.mxu1 %v6537_v20  ;;  %5191 = vmatprep.mubr.msk.f32.mxu1 %vm6028_vm3, %v6026_v0 }
0x1580   :  { %5477 = vmatprep.subr.bf16.mxu1 %v6027_v23 }
0x1581   :  { %v3677_v57 = vpop.permute.xlu0 %3676 }
0x1582   :  { %5181 = vmatmul.mubr.msk.f32.vlgmr.msra.gmra.mrb[46].mxu0 %vm576_vm4, %v3677_v57 }
0x1583   :  { %5479 = vmatpush3.bf16.msra.mxu1 %v6543_v28  ;;  %5482 = vmatpush3.bf16.msra.mxu0 %v6446_v61 }
0x1584   :  { %5486 = vmatprep.subr.bf16.mxu1 %v6027_v23  ;;  %5483 = vmatprep.subr.bf16.mxu0 %v6027_v23 }
0x1585   :  { %v3399_v60 = vpop.permute.xlu1 %3398  ;;  %5202 = vmatprep.mubr.msk.f32.mxu0 %vm6028_vm3, %v6026_v0 }
0x1586   :  { %3401 = vst.msk [vmem:[#allocation3 + $0x20] sm:$0xff] %vm576_vm4, %v3399_v60  ;;  %5192 = vmatmul.mubr.msk.f32.vlgmr.msra.gmra.mrb[42].mxu1 %vm576_vm4, %v3399_v60 }
0x1587   :  { %5488 = vmatpush3.bf16.msra.mxu1 %v6464_v11  ;;  %5213 = vmatprep.mubr.msk.f32.mxu1 %vm6028_vm3, %v6026_v0 }
0x1588   :  { %5489 = vmatprep.subr.bf16.mxu1 %v6027_v23  ;;  %5485 = vmatpush3.bf16.msra.mxu0 %v6452_v1 }
0x1589   :  { %5492 = vmatprep.subr.bf16.mxu0 %v6027_v23 }
0x158b   :  { %5491 = vmatpush3.bf16.msra.mxu1 %v6469_v62  ;;  %v6936_v62 = vld [vmem:[#allocation24] ss:$0 sm:$0xff] }
0x158c   :  { %5498 = vmatprep.subr.bf16.mxu1 %v6027_v23 }
0x1649   :  { %v3473_v61 = vpop.f32.mrb[38].mxu1  ;;  %v3569_v2 = vpop.f32.mrb[44].mxu0 }
0x164a   :  { %v5149_v24 = vpop.f32.mrb[39].mxu1  ;;  %v5160_v9 = vpop.f32.mrb[45].mxu0  ;;  %v3474_v33 = vadd.f32 %v6786_v15, %v3473_v61  ;;  %v3570_v10 = vadd.f32 %v6867_v63, %v3569_v2 }
0x164c   :  { %v3477_v13 = vadd.f32 %v3474_v33, %v6432_v47 }
0x164e   :  { %v4520_v43 = vmul.f32 -1.442695, %v3477_v13 }
0x1651   :  { %v3644_v3 = vpop.f32.mrb[40].mxu1 }
0x1652   :  { %v3645_v11 = vadd.f32 %v6860_v46, %v3644_v3  ;;  %v5171_v5 = vpop.f32.mrb[41].mxu1 }
0x1654   :  { %3656 = vrot.lane.b32.xlu1 %v3645_v11, %s6029_s15  ;;  %v3648_v12 = vadd.f32 %v3645_v11, %v3570_v10 }
0x1655   :  { %v3746_v6 = vpop.f32.mrb[46].mxu0 }
0x1656   :  { %v5182_v1 = vpop.f32.mrb[47].mxu0  ;;  %v4523_v16 = vmul.f32 -1.442695, %v3648_v12  ;;  %v3747_v15 = vadd.f32 %v6942_v17, %v3746_v6 }
0x1658   :  { %3485 = vrot.lane.b32.xlu1 %v3474_v33, %s6029_s15  ;;  %5646 = vpow2.f32 %v4523_v16 }
0x1659   :  { %v3818_v51 = vpop.f32.mrb[42].mxu1  ;;  %5648 = vpow2.f32 %v4520_v43 }
0x165a   :  { %v3819_v21 = vadd.f32 %v6936_v62, %v3818_v51  ;;  %v5193_v42 = vpop.f32.mrb[43].mxu1 }
0x165c   :  { %3830 = vrot.lane.b32.xlu0 %v3819_v21, %s6029_s15  ;;  %v3822_v59 = vadd.f32 %v3819_v21, %v3747_v15 }
0x165e   :  { %v4526_v8 = vmul.f32 -1.442695, %v3822_v59 }
0x1660   :  { %5650 = vpow2.f32 %v4526_v8 }
0x1662   :  { %v5647_v19 = vpop.eup %5646 }
0x1663   :  { %v3652_v25 = vadd.f32 1.0, %v5647_v19  ;;  %v5649_v26 = vpop.eup %5648 }
0x1664   :  { %v3481_v27 = vadd.f32 1.0, %v5649_v26 }
0x1665   :  { %5652 = vrcp.f32 %v3652_v25 }
0x1666   :  { %5654 = vrcp.f32 %v3481_v27 }
0x166a   :  { %v5651_v34 = vpop.eup %5650 }
0x166b   :  { %v3826_v35 = vadd.f32 1.0, %v5651_v34 }
0x166d   :  { %5656 = vrcp.f32 %v3826_v35 }
0x166f   :  { %v5653_v36 = vpop.eup %5652 }
0x1670   :  { %v5655_v32 = vpop.eup %5654  ;;  %v3666_v29 = vsub.f32 1.0, %v5653_v36  ;;  %v3672_v37 = vmul.f32 %v5653_v36, %v6884_v53 }
0x1671   :  { %v3501_v2 = vmul.f32 %v5655_v32, %v6879_v4 }
0x1677   :  { %v5657_v52 = vpop.eup %5656 }
0x1678   :  { %v3840_v3 = vsub.f32 1.0, %v5657_v52  ;;  %v3846_v5 = vmul.f32 %v5657_v52, %v6892_v58 }
0x16c6   :  { %v3657_v38 = vpop.permute.xlu1 %3656 }
0x16c7   :  { %v3659_v40 = vmul.f32 %v5653_v36, %v3657_v38 }
0x16c9   :  { %3661 = vrot.lane.b32.xlu0 %v3659_v40, %s6029_s15 }
0x16ca   :  { %v3486_v31 = vpop.permute.xlu1 %3485 }
0x16cb   :  { %v3488_v7 = vmul.f32 %v5655_v32, %v3486_v31 }
0x16cd   :  { %3490 = vrot.lane.b32.xlu0 %v3488_v7, %s6029_s15 }
0x16ce   :  { %v3831_v39 = vpop.permute.xlu0 %3830 }
0x16cf   :  { %v3833_v50 = vmul.f32 %v5657_v52, %v3831_v39 }
0x16d1   :  { %3835 = vrot.lane.b32.xlu1 %v3833_v50, %s6029_s15 }
0x173b   :  { %v3662_v22 = vpop.permute.xlu0 %3661 }
0x173c   :  { %v3664_v41 = vadd.f32 %v3662_v22, %v3570_v10 }
0x173e   :  { %5658 = vtanh.f32 %v3664_v41 }
0x173f   :  { %v3491_v44 = vpop.permute.xlu0 %3490 }
0x1740   :  { %v3493_v49 = vadd.f32 %v3491_v44, %v6432_v47  ;;  %v3495_v47 = vsub.f32 1.0, %v5655_v32 }
0x1742   :  { %5660 = vtanh.f32 %v3493_v49 }
0x1743   :  { %v3836_v48 = vpop.permute.xlu1 %3835 }
0x1744   :  { %v3838_v54 = vadd.f32 %v3836_v48, %v3747_v15 }
0x1746   :  { %5662 = vtanh.f32 %v3838_v54 }
0x1748   :  { %v5659_v55 = vpop.eup %5658 }
0x1749   :  { %3668 = vrot.lane.b32.xlu1 %v5659_v55, %s6030_s28 }
0x174c   :  { %v5661_v45 = vpop.eup %5660 }
0x174d   :  { %3497 = vrot.lane.b32.xlu1 %v5661_v45, %s6030_s28 }
0x1750   :  { %v5663_v56 = vpop.eup %5662 }
0x1751   :  { %3842 = vrot.lane.b32.xlu0 %v5663_v56, %s6030_s28 }
0x17bb   :  { %v3669_v30 = vpop.permute.xlu1 %3668 }
0x17bc   :  { %v3671_v57 = vmul.f32 %v3669_v30, %v3666_v29 }
0x17be   :  { %v6953_v60 = vadd.f32 %v3672_v37, %v3671_v57 }
0x17bf   :  { %v3498_v61 = vpop.permute.xlu1 %3497 }
0x17c0   :  { %v3500_v24 = vmul.f32 %v3498_v61, %v3495_v47  ;;  %3929 = vrot.lane.b32.xlu0 %v6953_v60, %s6030_s28  ;;  %v4029_v33 = vadd.f32 %v6953_v60, %v6879_v4 }
0x17c2   :  { %v6958_v9 = vadd.f32 %v3501_v2, %v3500_v24 }
0x17c3   :  { %v3843_v11 = vpop.permute.xlu0 %3842 }
0x17c4   :  { %v3845_v6 = vmul.f32 %v3843_v11, %v3840_v3  ;;  %3854 = vrot.lane.b32.xlu0 %v6958_v9, %s6030_s28 }
0x17c6   :  { %v6963_v53 = vadd.f32 %v3846_v5, %v3845_v6 }
0x17c8   :  { %3849 = vrot.lane.b32.xlu1 %v6963_v53, %s6030_s28 }
0x17cc   :  { %4031 = vrot.lane.b32.xlu1 %v4029_v33, %s6030_s28 }
0x1832   :  { %v3930_v1 = vpop.permute.xlu0 %3929 }
0x1833   :  { %5214 = vmatmul.mubr.msk.f32.vlgmr.msra.gmra.mrb[44].mxu1 %vm576_vm4, %v3930_v1 }
0x1834   :  { %5500 = vmatpush3.bf16.msra.mxu1 %v6537_v20  ;;  %5235 = vmatprep.mubr.msk.f32.mxu1 %vm6028_vm3, %v6026_v0 }
0x1835   :  { %5501 = vmatprep.subr.bf16.mxu1 %v6027_v23 }
0x1836   :  { %v3855_v58 = vpop.permute.xlu0 %3854 }
0x1837   :  { %4389 = vst.msk [vmem:[%s7073_s21] sm:$0x3] %vm4388_vm5, %v3855_v58  ;;  %5203 = vmatmul.mubr.msk.f32.vlgmr.msra.gmra.mrb[48].mxu0 %vm576_vm4, %v3855_v58 }
0x1838   :  { %5494 = vmatpush3.bf16.msra.mxu0 %v6521_v14  ;;  %5503 = vmatpush3.bf16.msra.mxu1 %v6543_v28 }
0x1839   :  { %5495 = vmatprep.subr.bf16.mxu0 %v6027_v23  ;;  %5224 = vmatprep.mubr.msk.f32.mxu0 %vm6028_vm3, %v6026_v0 }
0x183a   :  { %v3850_v4 = vpop.permute.xlu1 %3849  ;;  %5510 = vmatprep.subr.bf16.mxu1 %v6027_v23 }
0x183b   :  { %3852 = vst.msk [vmem:[#allocation3 + $0x28] sm:$0xff] %vm576_vm4, %v3850_v4  ;;  %5236 = vmatmul.mubr.msk.f32.vlgmr.msra.gmra.mrb[46].mxu1 %vm576_vm4, %v3850_v4 }
0x183c   :  { %5497 = vmatpush3.bf16.msra.mxu0 %v6527_v18  ;;  %5512 = vmatpush3.bf16.msra.mxu1 %v6537_v20 }
0x183d   :  { %5504 = vmatprep.subr.bf16.mxu0 %v6027_v23  ;;  %5513 = vmatprep.subr.bf16.mxu1 %v6027_v23 }
0x183e   :  { %v4032_v51 = vpop.permute.xlu1 %4031  ;;  %5257 = vmatprep.mubr.msk.f32.mxu1 %vm6028_vm3, %v6026_v0 }
0x183f   :  { %5225 = vmatmul.mubr.msk.f32.vlgmr.msra.gmra.mrb[50].mxu0 %vm576_vm4, %v4032_v51 }
0x1840   :  { %5506 = vmatpush3.bf16.msra.mxu0 %v6521_v14  ;;  %5246 = vmatprep.mubr.msk.f32.mxu0 %vm6028_vm3, %v6026_v0 }
0x1841   :  { %5507 = vmatprep.subr.bf16.mxu0 %v6027_v23  ;;  %5515 = vmatpush3.bf16.msra.mxu1 %v6543_v28 }
0x1844   :  { %5509 = vmatpush3.bf16.msra.mxu0 %v6527_v18 }
0x1906   :  { %v3999_v20 = vpop.f32.mrb[44].mxu1 }
0x1907   :  { %v4000_v21 = vadd.f32 %v6860_v46, %v3999_v20  ;;  %v5215_v42 = vpop.f32.mrb[45].mxu1 }
0x1909   :  { %4011 = vrot.lane.b32.xlu1 %v4000_v21, %s6029_s15 }
0x190a   :  { %v3924_v10 = vpop.f32.mrb[48].mxu0 }
0x190b   :  { %v5204_v12 = vpop.f32.mrb[49].mxu0  ;;  %v3925_v28 = vadd.f32 %v6867_v63, %v3924_v10 }
0x190c   :  { %v4396_v12 = vld [vmem:[#allocation3] ss:$8 sm:$0xf] }
0x190d   :  { %v4003_v15 = vadd.f32 %v4000_v21, %v3925_v28 }
0x190e   :  { %v4173_v13 = vpop.f32.mrb[46].mxu1 }
0x190f   :  { %v4174_v14 = vadd.f32 %v6936_v62, %v4173_v13  ;;  %v5237_v16 = vpop.f32.mrb[47].mxu1  ;;  %v4529_v18 = vmul.f32 -1.442695, %v4003_v15  ;;  %v4401_v13 = vld [vmem:[#allocation3 + $0x1] ss:$8 sm:$0xf] }
0x1911   :  { %4185 = vrot.lane.b32.xlu0 %v4174_v14, %s6029_s15  ;;  %5664 = vpow2.f32 %v4529_v18 }
0x1912   :  { %v4101_v0 = vpop.f32.mrb[50].mxu0 }
0x1913   :  { %v5226_v23 = vpop.f32.mrb[51].mxu0  ;;  %v4102_v43 = vadd.f32 %v6942_v17, %v4101_v0 }
0x1915   :  { %v4177_v46 = vadd.f32 %v4174_v14, %v4102_v43 }
0x1917   :  { %v4532_v59 = vmul.f32 -1.442695, %v4177_v46 }
0x1919   :  { %5666 = vpow2.f32 %v4532_v59 }
0x191b   :  { %v5665_v8 = vpop.eup %5664 }
0x191c   :  { %v4007_v19 = vadd.f32 1.0, %v5665_v8 }
0x191e   :  { %5668 = vrcp.f32 %v4007_v19 }
0x1923   :  { %v5667_v25 = vpop.eup %5666 }
0x1924   :  { %v4181_v26 = vadd.f32 1.0, %v5667_v25 }
0x1926   :  { %5670 = vrcp.f32 %v4181_v26 }
0x1928   :  { %v5669_v27 = vpop.eup %5668 }
0x1929   :  { %v4021_v50 = vsub.f32 1.0, %v5669_v27  ;;  %v4027_v41 = vmul.f32 %v5669_v27, %v6953_v60 }
0x1930   :  { %v5671_v63 = vpop.eup %5670 }
0x1931   :  { %v4195_v54 = vsub.f32 1.0, %v5671_v63  ;;  %v4201_v45 = vmul.f32 %v5671_v63, %v6963_v53 }
0x197b   :  { %v4012_v34 = vpop.permute.xlu1 %4011 }
0x197c   :  { %v4014_v35 = vmul.f32 %v5669_v27, %v4012_v34 }
0x197e   :  { %4016 = vrot.lane.b32.xlu1 %v4014_v35, %s6029_s15 }
0x1983   :  { %v4186_v36 = vpop.permute.xlu0 %4185 }
0x1984   :  { %v4188_v38 = vmul.f32 %v5671_v63, %v4186_v36 }
0x1986   :  { %4190 = vrot.lane.b32.xlu0 %v4188_v38, %s6029_s15 }
0x19f0   :  { %v4017_v40 = vpop.permute.xlu1 %4016 }
0x19f1   :  { %v4019_v32 = vadd.f32 %v4017_v40, %v3925_v28 }
0x19f3   :  { %5672 = vtanh.f32 %v4019_v32 }
0x19f8   :  { %v4191_v31 = vpop.permute.xlu0 %4190 }
0x19f9   :  { %v4193_v7 = vadd.f32 %v4191_v31, %v4102_v43 }
0x19fb   :  { %5674 = vtanh.f32 %v4193_v7 }
0x19fd   :  { %v5673_v52 = vpop.eup %5672 }
0x19fe   :  { %4023 = vrot.lane.b32.xlu1 %v5673_v52, %s6030_s28 }
0x1a05   :  { %v5675_v39 = vpop.eup %5674 }
0x1a06   :  { %4197 = vrot.lane.b32.xlu0 %v5675_v39, %s6030_s28 }
0x1a70   :  { %v4024_v22 = vpop.permute.xlu1 %4023 }
0x1a71   :  { %v4026_v44 = vmul.f32 %v4024_v22, %v4021_v50 }
0x1a73   :  { %v4028_v49 = vadd.f32 %v4027_v41, %v4026_v44 }
0x1a75   :  { %v4208_v48 = vadd.f32 %v4028_v49, %v6958_v9 }
0x1a77   :  { %4210 = vrot.lane.b32.xlu1 %v4208_v48, %s6030_s28 }
0x1a78   :  { %v4198_v55 = vpop.permute.xlu0 %4197 }
0x1a79   :  { %v4200_v56 = vmul.f32 %v4198_v55, %v4195_v54 }
0x1a7b   :  { %v4202_v29 = vadd.f32 %v4201_v45, %v4200_v56 }
0x1a7d   :  { %4204 = vrot.lane.b32.xlu0 %v4202_v29, %s6030_s28 }
0x1ae9   :  { %v4211_v30 = vpop.permute.xlu1 %4210 }
0x1aea   :  { %5247 = vmatmul.mubr.msk.f32.vlgmr.msra.gmra.mrb[52].mxu0 %vm576_vm4, %v4211_v30 }
0x1aef   :  { %v4205_v37 = vpop.permute.xlu0 %4204 }
0x1af0   :  { %4207 = vst.msk [vmem:[#allocation3 + $0x30] sm:$0xff] %vm576_vm4, %v4205_v37  ;;  %5258 = vmatmul.mubr.msk.f32.vlgmr.msra.gmra.mrb[48].mxu1 %vm576_vm4, %v4205_v37 }
0x1bbd   :  { %v4280_v57 = vpop.f32.mrb[52].mxu0 }
0x1bbe   :  { %v5248_v60 = vpop.f32.mrb[53].mxu0  ;;  %v4281_v24 = vadd.f32 %v6942_v17, %v4280_v57 }
0x1bc3   :  { %v4352_v47 = vpop.f32.mrb[48].mxu1 }
0x1bc4   :  { %v4353_v61 = vadd.f32 %v6936_v62, %v4352_v47  ;;  %v5259_v2 = vpop.f32.mrb[49].mxu1 }
0x1bc6   :  { %4364 = vrot.lane.b32.xlu0 %v4353_v61, %s6029_s15  ;;  %v4356_v9 = vadd.f32 %v4353_v61, %v4281_v24 }
0x1bc8   :  { %v4535_v3 = vmul.f32 -1.442695, %v4356_v9 }
0x1bca   :  { %5676 = vpow2.f32 %v4535_v3 }
0x1bd4   :  { %v5677_v11 = vpop.eup %5676 }
0x1bd5   :  { %v4360_v5 = vadd.f32 1.0, %v5677_v11 }
0x1bd7   :  { %5678 = vrcp.f32 %v4360_v5 }
0x1be1   :  { %v5679_v6 = vpop.eup %5678 }
0x1be2   :  { %v4374_v17 = vsub.f32 1.0, %v5679_v6  ;;  %v4380_v51 = vmul.f32 %v5679_v6, %v4202_v29 }
0x1c38   :  { %v4365_v53 = vpop.permute.xlu0 %4364 }
0x1c39   :  { %v4367_v33 = vmul.f32 %v5679_v6, %v4365_v53 }
0x1c3b   :  { %4369 = vrot.lane.b32.xlu1 %v4367_v33, %s6029_s15 }
0x1cad   :  { %v4370_v1 = vpop.permute.xlu1 %4369 }
0x1cae   :  { %v4372_v58 = vadd.f32 %v4370_v1, %v4281_v24 }
0x1cb0   :  { %5680 = vtanh.f32 %v4372_v58 }
0x1cba   :  { %v5681_v62 = vpop.eup %5680 }
0x1cbb   :  { %4376 = vrot.lane.b32.xlu0 %v5681_v62, %s6030_s28 }
0x1cbf   :  { %4391 = vrot.lane.b32.xlu0 %v4028_v49, %s6030_s28 }
0x1d2d   :  { %v4377_v4 = vpop.permute.xlu0 %4376 }
0x1d2e   :  { %v4379_v20 = vmul.f32 %v4377_v4, %v4374_v17 }
0x1d30   :  { %v4381_v21 = vadd.f32 %v4380_v51, %v4379_v20 }
0x1d31   :  { %v4392_v42 = vpop.permute.xlu0 %4391 }
0x1d32   :  { %4394 = vst.msk [vmem:[%s7074_s22] sm:$0x3] %vm4388_vm5, %v4392_v42  ;;  %4383 = vrot.lane.b32.xlu1 %v4381_v21, %s6030_s28  ;;  %s5973_s22 = scalar_lea.vmem %s4411_s20, 256 }
0x1d33   :  { %p5974_p6 = scmp.ne.s32.totalorder %s4411_s20, %s5973_s22  ;;  %p5979_p8 = scmp.lt.s32.totalorder %s5973_s22, %s5973_s22 }
0x1d35   :  { %p5980_p9 = por %p5979_p8, %p5978_p7 }
0x1d37   :  { %p5981_p10 = pnand %p5980_p9, %p5974_p6 }
0x1da4   :  { %v4384_v10 = vpop.permute.xlu1 %4383 }
0x1da5   :  { %4386 = vst.msk [vmem:[#allocation3 + $0x38] sm:$0xff] %vm576_vm4, %v4384_v10 }
0x1da6   :  { %4395 = vst.msk [vmem:[%s7075_s23] sm:$0x3] %vm4388_vm5, %v4384_v10 }
0x1dac   :  { %v4397_v14 = vld [vmem:[#allocation3] ss:$8 sm:$0xf0]  ;;  %v4402_v16 = vld [vmem:[#allocation3 + $0x1] ss:$8 sm:$0xf0] }
0x1dad   :  { %v4398_v0 = vor.u32 %v4397_v14, %v4396_v12  ;;  %v4403_v23 = vor.u32 %v4402_v16, %v4401_v13 }
0x1daf   :  { %4399 = vst.msk [vmem:[#allocation25] sm:$0xff] %vm576_vm4, %v4398_v0  ;;  %4404 = vst.msk [vmem:[#allocation25 + $0x8] sm:$0xff] %vm576_vm4, %v4403_v23 }
0x1db0   :  { %5984 = shalt.err (!%p5981_p10)
}
0x1db1   :  { %s7101_s17 = sld [smem:[#allocation42_spill]] }
0x1db7   :  { %s5985_s1 = scalar_lea.hbm %s7101_s17, 256 }
0x1db8   :  { %p5986_p11 = scmp.ne.s32.totalorder %s7101_s17, %s5985_s1  ;;  %p5989_p12 = scmp.lt.u32.totalorder %s5985_s1, %s7101_s17 }
0x1dba   :  { %p5991_p13 = pnand %p5989_p12, %p5986_p11 }
0x1dbc   :  { %5994 = shalt.err (!%p5991_p13)
}
0x1dbd   :  { %4416 = dma.vmem_to_hbm [thread:$0]  %s4411_s20, 256, %s7101_s17, [#allocation6], %s6014_s5, %s6014_s5, %s6015_s29  }
0x1dbe   :  { %6009 = dma.done.wait [#allocation6], 256  }
0x1dbf   :  { %6010 = vsyncadd [#allocation6], 4294967040 }
0x1dc0   :  { %4432 = vsyncpa [#allocation5], 1 }
0x1dc1   :  { %4433 = vsyncpa [#allocation8], 1 }
0x1dc2   :  { %4434 = vsyncpa [#allocation11], 1 }
0x1dc3   :  { %4435 = vsyncpa [#allocation14], 1 }
0x1dc4   :  { %4436 = vsyncpa [#allocation17], 1 }
0x1dc5   :  { %4437 = vsyncpa [#allocation20], 1 }
0x1dc6   :  { %4438 = vsyncpa [#allocation23], 1 }
0x1dc7   :  { %4439 = vsyncpa [#allocation6], 1 }

</bundles_post_ra>
